<compile_context>
chip_gen: v7x
topology: tpu7x:2x2x1
jax: 0.10.0
libtpu: 0.0.40
codegen_flags: <defaults>
</compile_context>

<pallas_src>
import jax
import jax.numpy as jnp
from jax.experimental import pallas as pl
from jax.experimental.pallas import tpu as pltpu


# ----------------------------------------------------------------------------
# Pallas kernels
# ----------------------------------------------------------------------------
def conv_relu_pool_kernel(cols_ref, w_ref, b_ref, o_ref):
    """Fused 3x3-conv matmul + bias + ReLU + 2x2 max-pool.

    cols_ref: (4, tm, K)  im2col patches; plane p holds the patches of the p-th
              pre-pool pixel of every 2x2 pooling window; rows ordered (b,ho,wo).
    w_ref:    (K, Cout)   HWIO-flattened conv weight (K zero-padded if needed).
    b_ref:    (1, Cout)
    o_ref:    (tm, Cout)  pooled activations, rows ordered (b, ho, wo).
    """
    tm = o_ref.shape[0]
    k = cols_ref.shape[-1]
    cout = o_ref.shape[1]
    # Layout-trivial merge of the two leading dims (tm % 8 == 0): one long
    # (4*tm, K) x (K, Cout) matmul instead of four short per-plane dots.
    lhs = cols_ref[...].reshape(4 * tm, k)
    acc = jnp.dot(lhs, w_ref[...], preferred_element_type=jnp.float32)
    acc = acc.reshape(4, tm, cout)          # layout-trivial split back
    acc = jnp.max(acc, axis=0)              # 4-way plane max: pure VPU work
    # max-pool commutes with the shared bias add and with ReLU (both monotone).
    acc = jnp.maximum(acc + b_ref[...], 0.0)
    o_ref[...] = acc.astype(o_ref.dtype)


def fc_relu_fc_kernel(x_ref, w1_ref, b1_ref, w2_ref, b2_ref, o_ref):
    """Fused fc1 (bf16 operands, f32 accumulate) + ReLU + (eval Dropout) + fc2."""
    h = jnp.dot(x_ref[...], w1_ref[...], preferred_element_type=jnp.float32)
    h = jnp.maximum(h + b1_ref[...], 0.0)
    # Dropout(p=0.5) is eval-mode identity here.
    o = jnp.dot(h, w2_ref[...], preferred_element_type=jnp.float32) + b2_ref[...]
    o_ref[...] = o.astype(o_ref.dtype)


# ----------------------------------------------------------------------------
# Pallas wrappers
# ----------------------------------------------------------------------------
def _rows_per_step(batch, rows_per_image, target_rows):
    """Rows per conv grid step: as many whole images as fit under target_rows,
    dividing the batch, while leaving >= 2 grid steps when batch >= 2 (keeps
    both v7x TensorCores busy; harmless on single-TC v5e/v6e)."""
    best = 1
    for ips in range(1, batch + 1):
        if batch % ips != 0:
            continue
        if batch >= 2 and batch // ips < 2:
            continue
        if ips * rows_per_image <= target_rows:
            best = max(best, ips)
    return best * rows_per_image


def conv3x3_relu_pool(cols4, w, b, *, rows_per_step):
    """cols4: (4, M, K), w: (K, Cout), b: (Cout,) -> (M, Cout) pooled output."""
    _, M, K = cols4.shape
    Cout = w.shape[1]
    assert M % rows_per_step == 0 and rows_per_step % 8 == 0, (M, rows_per_step)
    return pl.pallas_call(
        conv_relu_pool_kernel,
        out_shape=jax.ShapeDtypeStruct((M, Cout), cols4.dtype),
        grid=(M // rows_per_step,),
        in_specs=[
            pl.BlockSpec((4, rows_per_step, K), lambda i: (0, i, 0)),
            pl.BlockSpec((K, Cout), lambda i: (0, 0)),
            pl.BlockSpec((1, Cout), lambda i: (0, 0)),
        ],
        out_specs=pl.BlockSpec((rows_per_step, Cout), lambda i: (i, 0)),
        compiler_params=pltpu.CompilerParams(dimension_semantics=("parallel",)),
    )(cols4, w, b.reshape(1, Cout))


def fc1_relu_fc2(x, w1, b1, w2, b2):
    """x: (M, K) -> fc2(relu(fc1(x))): (M, N).

    fc1 operands are cast to bf16 (f32 accumulation) since the call is bound by
    the 2 MiB f32 weight stream; fc2 (K=128, N=2) stays f32.  Rows are padded
    to >= 8 sublanes; VMEM use (~2 MiB bf16 x block + 1 MiB w1, double
    buffered) stays under v5e's 16 MiB scoped-VMEM default.
    """
    M, K = x.shape
    H = w1.shape[1]
    N = w2.shape[1]
    xb = x.astype(jnp.bfloat16)
    w1b = w1.astype(jnp.bfloat16)
    tile = 256
    if M <= tile:
        m_pad = max(8, ((M + 7) // 8) * 8)
        tm = m_pad
    else:
        m_pad = ((M + tile - 1) // tile) * tile
        tm = tile
    if m_pad != M:
        xb = jnp.pad(xb, ((0, m_pad - M), (0, 0)))
    out = pl.pallas_call(
        fc_relu_fc_kernel,
        out_shape=jax.ShapeDtypeStruct((m_pad, N), jnp.float32),
        grid=(m_pad // tm,),
        in_specs=[
            pl.BlockSpec((tm, K), lambda i: (i, 0)),
            pl.BlockSpec((K, H), lambda i: (0, 0)),
            pl.BlockSpec((1, H), lambda i: (0, 0)),
            pl.BlockSpec((H, N), lambda i: (0, 0)),
            pl.BlockSpec((1, N), lambda i: (0, 0)),
        ],
        out_specs=pl.BlockSpec((tm, N), lambda i: (i, 0)),
        compiler_params=pltpu.CompilerParams(dimension_semantics=("parallel",)),
    )(xb, w1b, b1.reshape(1, H), w2, b2.reshape(1, N))
    return out[:M]


# ----------------------------------------------------------------------------
# Host glue: pool-window-ordered im2col (plain JAX, runs once per conv)
# ----------------------------------------------------------------------------
def window_im2col_3x3(x_nhwc, k_pad=None):
    """im2col for a 3x3 'SAME' conv, rows grouped by 2x2 max-pool window.

    Returns (4, B*(H//2)*(W//2), 9*C [zero-padded to k_pad]).  Plane p = 2*h2+w2
    holds the patches of pre-pool pixel (2*ho+h2, 2*wo+w2); rows are ordered
    (b, ho, wo); columns are ordered (dy, dx, cin), matching an HWIO weight
    reshaped to (9*C, Cout).
    """
    B, H, W, C = x_nhwc.shape
    xp = jnp.pad(x_nhwc, ((0, 0), (1, 1), (1, 1), (0, 0)))
    planes = []
    for h2 in range(2):
        for w2 in range(2):
            taps = [
                xp[:, h2 + dy:h2 + dy + H:2, w2 + dx:w2 + dx + W:2, :]
                for dy in range(3) for dx in range(3)
            ]
            p = jnp.stack(taps, axis=3)                      # (B, H/2, W/2, 9, C)
            planes.append(p.reshape(B * (H // 2) * (W // 2), 9 * C))
    cols = jnp.stack(planes, axis=0)                         # (4, B*Ho*Wo, 9*C)
    if k_pad is not None and k_pad > 9 * C:
        cols = jnp.pad(cols, ((0, 0), (0, 0), (0, k_pad - 9 * C)))
    return cols


# ----------------------------------------------------------------------------
# Model: parameters + forward
# ----------------------------------------------------------------------------
def init_params(key, dtype=jnp.float32):
    """Conv weights are HWIO (kh, kw, cin, cout); fc weights are (in, out).

    w_fc1's 4096 input rows are ordered (h, w, c) over the final (8, 8, 64)
    feature map (PyTorch's fc1.weight.T would need a one-time row permutation
    from the (c, h, w) flatten order at load time); this removes the
    per-forward flatten transpose.
    """
    ks = jax.random.split(key, 8)
    s = 0.05
    return {
        "w1": (s * jax.random.normal(ks[0], (3, 3, 3, 32))).astype(dtype),
        "b1": (s * jax.random.normal(ks[1], (32,))).astype(dtype),
        "w2": (s * jax.random.normal(ks[2], (3, 3, 32, 64))).astype(dtype),
        "b2": (s * jax.random.normal(ks[3], (64,))).astype(dtype),
        "w_fc1": (s * jax.random.normal(ks[4], (64 * 8 * 8, 128))).astype(dtype),
        "b_fc1": (s * jax.random.normal(ks[5], (128,))).astype(dtype),
        "w_fc2": (s * jax.random.normal(ks[6], (128, 2))).astype(dtype),
        "b_fc2": (s * jax.random.normal(ks[7], (2,))).astype(dtype),
    }


@jax.jit
def traffic_light_cnn_forward(x_nchw, params):
    B = x_nchw.shape[0]
    x = jnp.transpose(x_nchw, (0, 2, 3, 1))                  # NCHW -> NHWC

    # conv1 (3->32) + ReLU + 2x2 maxpool; contraction dim zero-padded 27 -> 32.
    cols1 = window_im2col_3x3(x, k_pad=32)                   # (4, B*256, 32)
    w1 = jnp.pad(params["w1"].reshape(27, 32), ((0, 5), (0, 0)))
    y = conv3x3_relu_pool(cols1, w1, params["b1"],
                          rows_per_step=_rows_per_step(B, 256, 1024))
    y = y.reshape(B, 16, 16, 32)                             # pooled NHWC

    # conv2 (32->64) + ReLU + 2x2 maxpool.
    cols2 = window_im2col_3x3(y)                             # (4, B*64, 288)
    y = conv3x3_relu_pool(cols2, params["w2"].reshape(288, 64), params["b2"],
                          rows_per_step=_rows_per_step(B, 64, 512))

    # Flatten: rows are already in (h, w, c) order, and w_fc1 is stored with
    # the same row order, so no transpose of the activation is needed.
    y = y.reshape(B, 64 * 8 * 8)

    # fc1 (bf16) + ReLU + (eval-mode Dropout) + fc2, fused in a single kernel.
    return fc1_relu_fc2(y, params["w_fc1"], params["b_fc1"],
                        params["w_fc2"], params["b_fc2"])


# ----------------------------------------------------------------------------
# Plain-JAX reference (same semantics as the PyTorch module in eval mode)
# ----------------------------------------------------------------------------
@jax.jit
def reference_forward(x_nchw, params):
    hp = jax.lax.Precision.HIGHEST
    dn = ("NHWC", "HWIO", "NHWC")
    x = jnp.transpose(x_nchw, (0, 2, 3, 1))
    y = jax.lax.conv_general_dilated(x, params["w1"], (1, 1), "SAME",
                                     dimension_numbers=dn, precision=hp)
    y = jax.nn.relu(y + params["b1"])
    y = jax.lax.reduce_window(y, -jnp.inf, jax.lax.max,
                              (1, 2, 2, 1), (1, 2, 2, 1), "VALID")
    y = jax.lax.conv_general_dilated(y, params["w2"], (1, 1), "SAME",
                                     dimension_numbers=dn, precision=hp)
    y = jax.nn.relu(y + params["b2"])
    y = jax.lax.reduce_window(y, -jnp.inf, jax.lax.max,
                              (1, 2, 2, 1), (1, 2, 2, 1), "VALID")
    y = y.reshape(x.shape[0], -1)                            # (h, w, c) order
    y = jax.nn.relu(jnp.dot(y, params["w_fc1"], precision=hp) + params["b_fc1"])
    return jnp.dot(y, params["w_fc2"], precision=hp) + params["b_fc2"]


if __name__ == "__main__":
    key = jax.random.PRNGKey(0)
    k_param, k_x = jax.random.split(key)
    params = init_params(k_param)
    # Input implied by fc1 = Linear(64*8*8, 128) with two /2 pools: 32x32 RGB.
    x = jax.random.normal(k_x, (2, 3, 32, 32), dtype=jnp.float32)

    out = jax.block_until_ready(traffic_light_cnn_forward(x, params))
    assert out.shape == (2, 2) and out.dtype == jnp.float32

    ref = jax.block_until_ready(reference_forward(x, params))
    # fc1 runs with bf16 operands (f32 accumulation) and the convs use default
    # MXU f32 precision vs the reference's Precision.HIGHEST -> compare at 1e-2.
    assert bool(jnp.allclose(out, ref, atol=1e-2, rtol=1e-2)), (out, ref)
    print("KERNEL_OK")
</pallas_src>

<mosaic_0001>
module attributes {stable_mosaic.version = 11 : i64} {
  func.func @conv_relu_pool_kernel(%arg0: i32, %arg1: memref<4x256x32xf32, #tpu.memory_space<vmem>>, %arg2: memref<32x32xf32, #tpu.memory_space<vmem>>, %arg3: memref<1x32xf32, #tpu.memory_space<vmem>>, %arg4: memref<256x32xf32, #tpu.memory_space<vmem>>) attributes {dimension_semantics = [#tpu.dimension_semantics<parallel>], iteration_bounds = array<i64: 2>, scalar_prefetch = 0 : i64, scratch_operands = 0 : i64, tpu.core_type = #tpu.core_type<tc>, window_params = [{transform_indices = @transform_0, window_bounds = array<i64: 4, 256, 32>}, {pipeline_mode = #tpu.pipeline_mode<synchronous>, transform_indices = @transform_1, window_bounds = array<i64: 32, 32>}, {pipeline_mode = #tpu.pipeline_mode<synchronous>, transform_indices = @transform_2, window_bounds = array<i64: 1, 32>}, {transform_indices = @transform_3, window_bounds = array<i64: 256, 32>}]} {
    %c0 = arith.constant 0 : index
    %c0_0 = arith.constant 0 : index
    %c0_1 = arith.constant 0 : index
    %0 = vector.load %arg1[%c0, %c0_0, %c0_1] : memref<4x256x32xf32, #tpu.memory_space<vmem>>, vector<4x256x32xf32>
    %1 = vector.shape_cast %0 : vector<4x256x32xf32> to vector<1024x32xf32>
    %c0_2 = arith.constant 0 : index
    %c0_3 = arith.constant 0 : index
    %2 = vector.load %arg2[%c0_2, %c0_3] : memref<32x32xf32, #tpu.memory_space<vmem>>, vector<32x32xf32>
    %cst = arith.constant dense<0.000000e+00> : vector<1024x32xf32>
    %3 = tpu.matmul %1, %2, %cst {dimension_numbers = #tpu.dot_dimension_numbers<[1], [0], [0], [1], [0, 0, 1, 1], [], []>} : vector<1024x32xf32>, vector<32x32xf32>, vector<1024x32xf32> -> vector<1024x32xf32>
    %4 = vector.shape_cast %3 : vector<1024x32xf32> to vector<4x256x32xf32>
    %cst_4 = arith.constant dense<0xFF800000> : vector<256x32xf32>
    %5 = vector.multi_reduction <maximumf>, %4, %cst_4 [0] : vector<4x256x32xf32> to vector<256x32xf32>
    %c0_5 = arith.constant 0 : index
    %c0_6 = arith.constant 0 : index
    %6 = vector.load %arg3[%c0_5, %c0_6] : memref<1x32xf32, #tpu.memory_space<vmem>>, vector<1x32xf32>
    %7 = vector.broadcast %6 : vector<1x32xf32> to vector<256x32xf32>
    %8 = arith.addf %5, %7 : vector<256x32xf32>
    %cst_7 = arith.constant 0.000000e+00 : f32
    %9 = vector.broadcast %cst_7 : f32 to vector<256x32xf32>
    %10 = arith.maximumf %8, %9 : vector<256x32xf32>
    %c0_8 = arith.constant 0 : index
    %c0_9 = arith.constant 0 : index
    %11 = vector.load %arg4[%c0_8, %c0_9] : memref<256x32xf32, #tpu.memory_space<vmem>>, vector<256x32xf32>
    tpu.vector_store %arg4[%c0_8, %c0_9], %10 {strides = array<i32>} : memref<256x32xf32, #tpu.memory_space<vmem>>, vector<256x32xf32>,
    return
  }
  func.func @transform_0(%arg0: i32) -> (i32, i32, i32) {
    %c0_i32 = arith.constant 0 : i32
    %c0_i32_0 = arith.constant 0 : i32
    %c0_i32_1 = arith.constant 0 : i32
    return %c0_i32, %arg0, %c0_i32_0 : i32, i32, i32
  }
  func.func @transform_1(%arg0: i32) -> (i32, i32) {
    %c0_i32 = arith.constant 0 : i32
    %c0_i32_0 = arith.constant 0 : i32
    %c0_i32_1 = arith.constant 0 : i32
    return %c0_i32, %c0_i32_0 : i32, i32
  }
  func.func @transform_2(%arg0: i32) -> (i32, i32) {
    %c0_i32 = arith.constant 0 : i32
    %c0_i32_0 = arith.constant 0 : i32
    %c0_i32_1 = arith.constant 0 : i32
    return %c0_i32, %c0_i32_0 : i32, i32
  }
  func.func @transform_3(%arg0: i32) -> (i32, i32) {
    %c0_i32 = arith.constant 0 : i32
    %c0_i32_0 = arith.constant 0 : i32
    return %arg0, %c0_i32 : i32, i32
  }
}

module attributes {stable_mosaic.version = 11 : i64} {
  func.func @conv_relu_pool_kernel(%arg0: i32, %arg1: memref<4x64x288xf32, #tpu.memory_space<vmem>>, %arg2: memref<288x64xf32, #tpu.memory_space<vmem>>, %arg3: memref<1x64xf32, #tpu.memory_space<vmem>>, %arg4: memref<64x64xf32, #tpu.memory_space<vmem>>) attributes {dimension_semantics = [#tpu.dimension_semantics<parallel>], iteration_bounds = array<i64: 2>, scalar_prefetch = 0 : i64, scratch_operands = 0 : i64, tpu.core_type = #tpu.core_type<tc>, window_params = [{transform_indices = @transform_0, window_bounds = array<i64: 4, 64, 288>}, {pipeline_mode = #tpu.pipeline_mode<synchronous>, transform_indices = @transform_1, window_bounds = array<i64: 288, 64>}, {pipeline_mode = #tpu.pipeline_mode<synchronous>, transform_indices = @transform_2, window_bounds = array<i64: 1, 64>}, {transform_indices = @transform_3, window_bounds = array<i64: 64, 64>}]} {
    %c0 = arith.constant 0 : index
    %c0_0 = arith.constant 0 : index
    %c0_1 = arith.constant 0 : index
    %0 = vector.load %arg1[%c0, %c0_0, %c0_1] : memref<4x64x288xf32, #tpu.memory_space<vmem>>, vector<4x64x288xf32>
    %1 = vector.shape_cast %0 : vector<4x64x288xf32> to vector<256x288xf32>
    %c0_2 = arith.constant 0 : index
    %c0_3 = arith.constant 0 : index
    %2 = vector.load %arg2[%c0_2, %c0_3] : memref<288x64xf32, #tpu.memory_space<vmem>>, vector<288x64xf32>
    %cst = arith.constant dense<0.000000e+00> : vector<256x64xf32>
    %3 = tpu.matmul %1, %2, %cst {dimension_numbers = #tpu.dot_dimension_numbers<[1], [0], [0], [1], [0, 0, 1, 1], [], []>} : vector<256x288xf32>, vector<288x64xf32>, vector<256x64xf32> -> vector<256x64xf32>
    %4 = vector.shape_cast %3 : vector<256x64xf32> to vector<4x64x64xf32>
    %cst_4 = arith.constant dense<0xFF800000> : vector<64x64xf32>
    %5 = vector.multi_reduction <maximumf>, %4, %cst_4 [0] : vector<4x64x64xf32> to vector<64x64xf32>
    %c0_5 = arith.constant 0 : index
    %c0_6 = arith.constant 0 : index
    %6 = vector.load %arg3[%c0_5, %c0_6] : memref<1x64xf32, #tpu.memory_space<vmem>>, vector<1x64xf32>
    %7 = vector.broadcast %6 : vector<1x64xf32> to vector<64x64xf32>
    %8 = arith.addf %5, %7 : vector<64x64xf32>
    %cst_7 = arith.constant 0.000000e+00 : f32
    %9 = vector.broadcast %cst_7 : f32 to vector<64x64xf32>
    %10 = arith.maximumf %8, %9 : vector<64x64xf32>
    %c0_8 = arith.constant 0 : index
    %c0_9 = arith.constant 0 : index
    %11 = vector.load %arg4[%c0_8, %c0_9] : memref<64x64xf32, #tpu.memory_space<vmem>>, vector<64x64xf32>
    tpu.vector_store %arg4[%c0_8, %c0_9], %10 {strides = array<i32>} : memref<64x64xf32, #tpu.memory_space<vmem>>, vector<64x64xf32>,
    return
  }
  func.func @transform_0(%arg0: i32) -> (i32, i32, i32) {
    %c0_i32 = arith.constant 0 : i32
    %c0_i32_0 = arith.constant 0 : i32
    %c0_i32_1 = arith.constant 0 : i32
    return %c0_i32, %arg0, %c0_i32_0 : i32, i32, i32
  }
  func.func @transform_1(%arg0: i32) -> (i32, i32) {
    %c0_i32 = arith.constant 0 : i32
    %c0_i32_0 = arith.constant 0 : i32
    %c0_i32_1 = arith.constant 0 : i32
    return %c0_i32, %c0_i32_0 : i32, i32
  }
  func.func @transform_2(%arg0: i32) -> (i32, i32) {
    %c0_i32 = arith.constant 0 : i32
    %c0_i32_0 = arith.constant 0 : i32
    %c0_i32_1 = arith.constant 0 : i32
    return %c0_i32, %c0_i32_0 : i32, i32
  }
  func.func @transform_3(%arg0: i32) -> (i32, i32) {
    %c0_i32 = arith.constant 0 : i32
    %c0_i32_0 = arith.constant 0 : i32
    return %arg0, %c0_i32 : i32, i32
  }
}

module attributes {stable_mosaic.version = 11 : i64} {
  func.func @fc_relu_fc_kernel(%arg0: i32, %arg1: memref<8x4096xbf16, #tpu.memory_space<vmem>>, %arg2: memref<4096x128xbf16, #tpu.memory_space<vmem>>, %arg3: memref<1x128xf32, #tpu.memory_space<vmem>>, %arg4: memref<128x2xf32, #tpu.memory_space<vmem>>, %arg5: memref<1x2xf32, #tpu.memory_space<vmem>>, %arg6: memref<8x2xf32, #tpu.memory_space<vmem>>) attributes {dimension_semantics = [#tpu.dimension_semantics<parallel>], iteration_bounds = array<i64: 1>, scalar_prefetch = 0 : i64, scratch_operands = 0 : i64, tpu.core_type = #tpu.core_type<tc>, window_params = [{transform_indices = @transform_0, window_bounds = array<i64: 8, 4096>}, {pipeline_mode = #tpu.pipeline_mode<synchronous>, transform_indices = @transform_1, window_bounds = array<i64: 4096, 128>}, {pipeline_mode = #tpu.pipeline_mode<synchronous>, transform_indices = @transform_2, window_bounds = array<i64: 1, 128>}, {pipeline_mode = #tpu.pipeline_mode<synchronous>, transform_indices = @transform_3, window_bounds = array<i64: 128, 2>}, {pipeline_mode = #tpu.pipeline_mode<synchronous>, transform_indices = @transform_4, window_bounds = array<i64: 1, 2>}, {transform_indices = @transform_5, window_bounds = array<i64: 8, 2>}]} {
    %c0 = arith.constant 0 : index
    %c0_0 = arith.constant 0 : index
    %0 = vector.load %arg1[%c0, %c0_0] : memref<8x4096xbf16, #tpu.memory_space<vmem>>, vector<8x4096xbf16>
    %c0_1 = arith.constant 0 : index
    %c0_2 = arith.constant 0 : index
    %1 = vector.load %arg2[%c0_1, %c0_2] : memref<4096x128xbf16, #tpu.memory_space<vmem>>, vector<4096x128xbf16>
    %cst = arith.constant dense<0.000000e+00> : vector<8x128xf32>
    %2 = tpu.matmul %0, %1, %cst {dimension_numbers = #tpu.dot_dimension_numbers<[1], [0], [0], [1], [0, 0, 1, 1], [], []>} : vector<8x4096xbf16>, vector<4096x128xbf16>, vector<8x128xf32> -> vector<8x128xf32>
    %c0_3 = arith.constant 0 : index
    %c0_4 = arith.constant 0 : index
    %3 = vector.load %arg3[%c0_3, %c0_4] : memref<1x128xf32, #tpu.memory_space<vmem>>, vector<1x128xf32>
    %4 = vector.broadcast %3 : vector<1x128xf32> to vector<8x128xf32>
    %5 = arith.addf %2, %4 : vector<8x128xf32>
    %cst_5 = arith.constant 0.000000e+00 : f32
    %6 = vector.broadcast %cst_5 : f32 to vector<8x128xf32>
    %7 = arith.maximumf %5, %6 : vector<8x128xf32>
    %c0_6 = arith.constant 0 : index
    %c0_7 = arith.constant 0 : index
    %8 = vector.load %arg4[%c0_6, %c0_7] : memref<128x2xf32, #tpu.memory_space<vmem>>, vector<128x2xf32>
    %cst_8 = arith.constant dense<0.000000e+00> : vector<8x2xf32>
    %9 = tpu.matmul %7, %8, %cst_8 {dimension_numbers = #tpu.dot_dimension_numbers<[1], [0], [0], [1], [0, 0, 1, 1], [], []>} : vector<8x128xf32>, vector<128x2xf32>, vector<8x2xf32> -> vector<8x2xf32>
    %c0_9 = arith.constant 0 : index
    %c0_10 = arith.constant 0 : index
    %10 = vector.load %arg5[%c0_9, %c0_10] : memref<1x2xf32, #tpu.memory_space<vmem>>, vector<1x2xf32>
    %11 = vector.broadcast %10 : vector<1x2xf32> to vector<8x2xf32>
    %12 = arith.addf %9, %11 : vector<8x2xf32>
    %c0_11 = arith.constant 0 : index
    %c0_12 = arith.constant 0 : index
    %13 = vector.load %arg6[%c0_11, %c0_12] : memref<8x2xf32, #tpu.memory_space<vmem>>, vector<8x2xf32>
    tpu.vector_store %arg6[%c0_11, %c0_12], %12 {strides = array<i32>} : memref<8x2xf32, #tpu.memory_space<vmem>>, vector<8x2xf32>,
    return
  }
  func.func @transform_0(%arg0: i32) -> (i32, i32) {
    %c0_i32 = arith.constant 0 : i32
    %c0_i32_0 = arith.constant 0 : i32
    return %arg0, %c0_i32 : i32, i32
  }
  func.func @transform_1(%arg0: i32) -> (i32, i32) {
    %c0_i32 = arith.constant 0 : i32
    %c0_i32_0 = arith.constant 0 : i32
    %c0_i32_1 = arith.constant 0 : i32
    return %c0_i32, %c0_i32_0 : i32, i32
  }
  func.func @transform_2(%arg0: i32) -> (i32, i32) {
    %c0_i32 = arith.constant 0 : i32
    %c0_i32_0 = arith.constant 0 : i32
    %c0_i32_1 = arith.constant 0 : i32
    return %c0_i32, %c0_i32_0 : i32, i32
  }
  func.func @transform_3(%arg0: i32) -> (i32, i32) {
    %c0_i32 = arith.constant 0 : i32
    %c0_i32_0 = arith.constant 0 : i32
    %c0_i32_1 = arith.constant 0 : i32
    return %c0_i32, %c0_i32_0 : i32, i32
  }
  func.func @transform_4(%arg0: i32) -> (i32, i32) {
    %c0_i32 = arith.constant 0 : i32
    %c0_i32_0 = arith.constant 0 : i32
    %c0_i32_1 = arith.constant 0 : i32
    return %c0_i32, %c0_i32_0 : i32, i32
  }
  func.func @transform_5(%arg0: i32) -> (i32, i32) {
    %c0_i32 = arith.constant 0 : i32
    %c0_i32_0 = arith.constant 0 : i32
    return %arg0, %c0_i32 : i32, i32
  }
}

</mosaic_0001>

<bundles_post_ra>
// kernel: traffic_light_cnn_forward.3
= control target key start
LH: loop header
LB: loop body
LE: loop exit
PB: predicated region body
PF: predicated region fallthrough
CT: control target
= control target key end

     0   :  { %s2882_s12 = smov 0   ;;  %s2884_s13 = smov 0   ;;  %s4031_s0 = inlined_call_operand.vmem [shape: f32[4,512,32], index: 0, kind: input, shape index: {}]   ;;  %s4032_s1 = inlined_call_operand.vmem [shape: f32[32,32], index: 1, kind: input, shape index: {}]   ;;  %s4033_s2 = inlined_call_operand.vmem [shape: f32[1,32], index: 2, kind: input, shape index: {}]   ;;  %s4034_s3 = inlined_call_operand.vmem [shape: f32[512,32], index: 3, kind: output, shape index: {}]  }
   0x1   :  { %s2886_s14 = smov 0  }
   0x2 LB: > { %s2327_s15 = sadd.s32 4294967295, %s2860_s14   ;;  %s2899_s16 = sadd.s32 1, %s2860_s14   ;;  %s2860_s14 = sphi %s2886_s14, %s4067_s14   ;;  %s2856_s13 = sphi %s2884_s13, %s4066_s13   ;;  %s2852_s12 = sphi %s2882_s12, %s4065_s12  }
   0x3   : > { %s17_s17 = ssub.s32 %s2860_s14, %s2899_s16  ;;  %s20_s18 = sadd.s32 1, %s2856_s13 }
   0x4   : > { %p18_p0 = scmp.eq.s32.totalorder %s17_s17, 0  ;;  %p27_p1 = scmp.ne.s32.totalorder %s2856_s13, %s2852_s12 }
   0x5   : > { %p28_p2 = scmp.eq.s32.totalorder %s2860_s14, 0  ;;  %p2330_p4 = scmp.ge.s32.totalorder %s2860_s14, 2 }
   0x6   : > { %s2908_s19 = scalar_select %p18_p0, %s2856_s13, %s20_s18  }
   0x7   : > { %p29_p3 = por %p28_p2, %p27_p1  ;;  %127 = sbr.rel (%p2330_p4) target bundleno = 82 (0x52), region = 24 }
   0xe   : > { %130 = sbr.rel (!%p29_p3) target bundleno = 82 (0x52), region = 28  ;;  %s132_s20 = sand.u32 (%p29_p3), 1, %s2856_s13  }
   0xf   : > { %s2469_s21 = sshll.u32 (%p29_p3), %s2860_s14, 8  ;;  %s2331_s22 = sshll.u32 (%p29_p3), %s132_s20, 10 }
  0x10   : > { %s2916_s25 = scalar_lea.vmem (%p29_p3), %s4031_s0, %s2469_s21  ;;  %s2921_s26 = scalar_lea.vmem (%p29_p3), [#allocation2], %s2331_s22 }
  0x11   : > { %v419_v0 = vld [vmem:[%s2916_s25] sm:$0xff] (%p29_p3)  ;;  %v421_v1 = vld [vmem:[%s2916_s25 + $0x8] sm:$0xff] (%p29_p3)  ;;  %v423_v2 = vld [vmem:[%s2916_s25 + $0x10] sm:$0xff] (%p29_p3) }
  0x12   : > { %420 = vst [vmem:[%s2921_s26] sm:$0xff] (%p29_p3), %v419_v0  ;;  %422 = vst [vmem:[%s2921_s26 + $0x8] sm:$0xff] (%p29_p3), %v421_v1  ;;  %v425_v3 = vld [vmem:[%s2916_s25 + $0x18] sm:$0xff] (%p29_p3)  ;;  %v427_v4 = vld [vmem:[%s2916_s25 + $0x20] sm:$0xff] (%p29_p3) }
  0x13   : > { %424 = vst [vmem:[%s2921_s26 + $0x10] sm:$0xff] (%p29_p3), %v423_v2  ;;  %v429_v5 = vld [vmem:[%s2916_s25 + $0x28] sm:$0xff] (%p29_p3)  ;;  %426 = vst [vmem:[%s2921_s26 + $0x18] sm:$0xff] (%p29_p3), %v425_v3  ;;  %v431_v6 = vld [vmem:[%s2916_s25 + $0x30] sm:$0xff] (%p29_p3) }
  0x14   : > { %428 = vst [vmem:[%s2921_s26 + $0x20] sm:$0xff] (%p29_p3), %v427_v4  ;;  %430 = vst [vmem:[%s2921_s26 + $0x28] sm:$0xff] (%p29_p3), %v429_v5  ;;  %v433_v7 = vld [vmem:[%s2916_s25 + $0x38] sm:$0xff] (%p29_p3)  ;;  %v435_v8 = vld [vmem:[%s2916_s25 + $0x40] sm:$0xff] (%p29_p3) }
  0x15   : > { %432 = vst [vmem:[%s2921_s26 + $0x30] sm:$0xff] %v431_v6  ;;  %434 = vst [vmem:[%s2921_s26 + $0x38] sm:$0xff] %v433_v7  ;;  %v437_v9 = vld [vmem:[%s2916_s25 + $0x48] sm:$0xff]  ;;  %v439_v10 = vld [vmem:[%s2916_s25 + $0x50] sm:$0xff] }
  0x16   : > { %436 = vst [vmem:[%s2921_s26 + $0x40] sm:$0xff] %v435_v8  ;;  %v441_v11 = vld [vmem:[%s2916_s25 + $0x58] sm:$0xff]  ;;  %438 = vst [vmem:[%s2921_s26 + $0x48] sm:$0xff] %v437_v9  ;;  %v443_v12 = vld [vmem:[%s2916_s25 + $0x60] sm:$0xff] }
  0x17   : > { %440 = vst [vmem:[%s2921_s26 + $0x50] sm:$0xff] %v439_v10  ;;  %442 = vst [vmem:[%s2921_s26 + $0x58] sm:$0xff] %v441_v11  ;;  %v445_v13 = vld [vmem:[%s2916_s25 + $0x68] sm:$0xff]  ;;  %v447_v14 = vld [vmem:[%s2916_s25 + $0x70] sm:$0xff] }
  0x18   : > { %444 = vst [vmem:[%s2921_s26 + $0x60] sm:$0xff] %v443_v12  ;;  %446 = vst [vmem:[%s2921_s26 + $0x68] sm:$0xff] %v445_v13  ;;  %v449_v15 = vld [vmem:[%s2916_s25 + $0x78] sm:$0xff]  ;;  %v451_v16 = vld [vmem:[%s2916_s25 + $0x80] sm:$0xff] }
  0x19   : > { %448 = vst [vmem:[%s2921_s26 + $0x70] sm:$0xff] %v447_v14  ;;  %v453_v17 = vld [vmem:[%s2916_s25 + $0x88] sm:$0xff]  ;;  %450 = vst [vmem:[%s2921_s26 + $0x78] sm:$0xff] %v449_v15  ;;  %v455_v18 = vld [vmem:[%s2916_s25 + $0x90] sm:$0xff] }
  0x1a   : > { %452 = vst [vmem:[%s2921_s26 + $0x80] sm:$0xff] %v451_v16  ;;  %454 = vst [vmem:[%s2921_s26 + $0x88] sm:$0xff] %v453_v17  ;;  %v457_v19 = vld [vmem:[%s2916_s25 + $0x98] sm:$0xff]  ;;  %v459_v20 = vld [vmem:[%s2916_s25 + $0xa0] sm:$0xff] }
  0x1b   : > { %456 = vst [vmem:[%s2921_s26 + $0x90] sm:$0xff] %v455_v18  ;;  %458 = vst [vmem:[%s2921_s26 + $0x98] sm:$0xff] %v457_v19  ;;  %v461_v21 = vld [vmem:[%s2916_s25 + $0xa8] sm:$0xff]  ;;  %v463_v22 = vld [vmem:[%s2916_s25 + $0xb0] sm:$0xff] }
  0x1c   : > { %460 = vst [vmem:[%s2921_s26 + $0xa0] sm:$0xff] %v459_v20  ;;  %v465_v23 = vld [vmem:[%s2916_s25 + $0xb8] sm:$0xff]  ;;  %462 = vst [vmem:[%s2921_s26 + $0xa8] sm:$0xff] %v461_v21  ;;  %v467_v24 = vld [vmem:[%s2916_s25 + $0xc0] sm:$0xff] }
  0x1d   : > { %464 = vst [vmem:[%s2921_s26 + $0xb0] sm:$0xff] %v463_v22  ;;  %466 = vst [vmem:[%s2921_s26 + $0xb8] sm:$0xff] %v465_v23  ;;  %v469_v25 = vld [vmem:[%s2916_s25 + $0xc8] sm:$0xff]  ;;  %v471_v26 = vld [vmem:[%s2916_s25 + $0xd0] sm:$0xff] }
  0x1e   : > { %468 = vst [vmem:[%s2921_s26 + $0xc0] sm:$0xff] %v467_v24  ;;  %470 = vst [vmem:[%s2921_s26 + $0xc8] sm:$0xff] %v469_v25  ;;  %v473_v27 = vld [vmem:[%s2916_s25 + $0xd8] sm:$0xff]  ;;  %v475_v28 = vld [vmem:[%s2916_s25 + $0xe0] sm:$0xff] }
  0x1f   : > { %472 = vst [vmem:[%s2921_s26 + $0xd0] sm:$0xff] %v471_v26  ;;  %v477_v29 = vld [vmem:[%s2916_s25 + $0xe8] sm:$0xff]  ;;  %474 = vst [vmem:[%s2921_s26 + $0xd8] sm:$0xff] %v473_v27  ;;  %v479_v30 = vld [vmem:[%s2916_s25 + $0xf0] sm:$0xff] }
  0x20   : > { %476 = vst [vmem:[%s2921_s26 + $0xe0] sm:$0xff] %v475_v28  ;;  %478 = vst [vmem:[%s2921_s26 + $0xe8] sm:$0xff] %v477_v29  ;;  %v481_v31 = vld [vmem:[%s2916_s25 + $0xf8] sm:$0xff]  ;;  %v483_v32 = vld [vmem:[%s2916_s25 + $0x200] sm:$0xff] }
  0x21   : > { %480 = vst [vmem:[%s2921_s26 + $0xf0] sm:$0xff] %v479_v30  ;;  %482 = vst [vmem:[%s2921_s26 + $0xf8] sm:$0xff] %v481_v31  ;;  %v485_v33 = vld [vmem:[%s2916_s25 + $0x208] sm:$0xff]  ;;  %v487_v34 = vld [vmem:[%s2916_s25 + $0x210] sm:$0xff] }
  0x22   : > { %484 = vst [vmem:[%s2921_s26 + $0x100] sm:$0xff] %v483_v32  ;;  %v489_v35 = vld [vmem:[%s2916_s25 + $0x218] sm:$0xff]  ;;  %486 = vst [vmem:[%s2921_s26 + $0x108] sm:$0xff] %v485_v33  ;;  %v491_v36 = vld [vmem:[%s2916_s25 + $0x220] sm:$0xff] }
  0x23   : > { %488 = vst [vmem:[%s2921_s26 + $0x110] sm:$0xff] %v487_v34  ;;  %490 = vst [vmem:[%s2921_s26 + $0x118] sm:$0xff] %v489_v35  ;;  %v493_v37 = vld [vmem:[%s2916_s25 + $0x228] sm:$0xff]  ;;  %v495_v38 = vld [vmem:[%s2916_s25 + $0x230] sm:$0xff] }
  0x24   : > { %492 = vst [vmem:[%s2921_s26 + $0x120] sm:$0xff] %v491_v36  ;;  %494 = vst [vmem:[%s2921_s26 + $0x128] sm:$0xff] %v493_v37  ;;  %v497_v39 = vld [vmem:[%s2916_s25 + $0x238] sm:$0xff]  ;;  %v499_v40 = vld [vmem:[%s2916_s25 + $0x240] sm:$0xff] }
  0x25   : > { %496 = vst [vmem:[%s2921_s26 + $0x130] sm:$0xff] %v495_v38  ;;  %v501_v41 = vld [vmem:[%s2916_s25 + $0x248] sm:$0xff]  ;;  %498 = vst [vmem:[%s2921_s26 + $0x138] sm:$0xff] %v497_v39  ;;  %v503_v42 = vld [vmem:[%s2916_s25 + $0x250] sm:$0xff] }
  0x26   : > { %500 = vst [vmem:[%s2921_s26 + $0x140] sm:$0xff] %v499_v40  ;;  %502 = vst [vmem:[%s2921_s26 + $0x148] sm:$0xff] %v501_v41  ;;  %v505_v43 = vld [vmem:[%s2916_s25 + $0x258] sm:$0xff]  ;;  %v507_v44 = vld [vmem:[%s2916_s25 + $0x260] sm:$0xff] }
  0x27   : > { %504 = vst [vmem:[%s2921_s26 + $0x150] sm:$0xff] %v503_v42  ;;  %506 = vst [vmem:[%s2921_s26 + $0x158] sm:$0xff] %v505_v43  ;;  %v509_v45 = vld [vmem:[%s2916_s25 + $0x268] sm:$0xff]  ;;  %v511_v46 = vld [vmem:[%s2916_s25 + $0x270] sm:$0xff] }
  0x28   : > { %508 = vst [vmem:[%s2921_s26 + $0x160] sm:$0xff] %v507_v44  ;;  %v513_v47 = vld [vmem:[%s2916_s25 + $0x278] sm:$0xff]  ;;  %510 = vst [vmem:[%s2921_s26 + $0x168] sm:$0xff] %v509_v45  ;;  %v515_v48 = vld [vmem:[%s2916_s25 + $0x280] sm:$0xff] }
  0x29   : > { %512 = vst [vmem:[%s2921_s26 + $0x170] sm:$0xff] %v511_v46  ;;  %514 = vst [vmem:[%s2921_s26 + $0x178] sm:$0xff] %v513_v47  ;;  %v517_v49 = vld [vmem:[%s2916_s25 + $0x288] sm:$0xff]  ;;  %v519_v50 = vld [vmem:[%s2916_s25 + $0x290] sm:$0xff] }
  0x2a   : > { %516 = vst [vmem:[%s2921_s26 + $0x180] sm:$0xff] %v515_v48  ;;  %518 = vst [vmem:[%s2921_s26 + $0x188] sm:$0xff] %v517_v49  ;;  %v521_v51 = vld [vmem:[%s2916_s25 + $0x298] sm:$0xff]  ;;  %v523_v52 = vld [vmem:[%s2916_s25 + $0x2a0] sm:$0xff] }
  0x2b   : > { %520 = vst [vmem:[%s2921_s26 + $0x190] sm:$0xff] %v519_v50  ;;  %v525_v53 = vld [vmem:[%s2916_s25 + $0x2a8] sm:$0xff]  ;;  %522 = vst [vmem:[%s2921_s26 + $0x198] sm:$0xff] %v521_v51  ;;  %v527_v54 = vld [vmem:[%s2916_s25 + $0x2b0] sm:$0xff] }
  0x2c   : > { %524 = vst [vmem:[%s2921_s26 + $0x1a0] sm:$0xff] %v523_v52  ;;  %526 = vst [vmem:[%s2921_s26 + $0x1a8] sm:$0xff] %v525_v53  ;;  %v529_v55 = vld [vmem:[%s2916_s25 + $0x2b8] sm:$0xff]  ;;  %v531_v56 = vld [vmem:[%s2916_s25 + $0x2c0] sm:$0xff] }
  0x2d   : > { %528 = vst [vmem:[%s2921_s26 + $0x1b0] sm:$0xff] %v527_v54  ;;  %530 = vst [vmem:[%s2921_s26 + $0x1b8] sm:$0xff] %v529_v55  ;;  %v533_v57 = vld [vmem:[%s2916_s25 + $0x2c8] sm:$0xff]  ;;  %v535_v58 = vld [vmem:[%s2916_s25 + $0x2d0] sm:$0xff] }
  0x2e   : > { %532 = vst [vmem:[%s2921_s26 + $0x1c0] sm:$0xff] %v531_v56  ;;  %v537_v59 = vld [vmem:[%s2916_s25 + $0x2d8] sm:$0xff]  ;;  %534 = vst [vmem:[%s2921_s26 + $0x1c8] sm:$0xff] %v533_v57  ;;  %v539_v60 = vld [vmem:[%s2916_s25 + $0x2e0] sm:$0xff] }
  0x2f   : > { %536 = vst [vmem:[%s2921_s26 + $0x1d0] sm:$0xff] %v535_v58  ;;  %538 = vst [vmem:[%s2921_s26 + $0x1d8] sm:$0xff] %v537_v59  ;;  %v541_v61 = vld [vmem:[%s2916_s25 + $0x2e8] sm:$0xff]  ;;  %v543_v62 = vld [vmem:[%s2916_s25 + $0x2f0] sm:$0xff] }
  0x30   : > { %540 = vst [vmem:[%s2921_s26 + $0x1e0] sm:$0xff] %v539_v60  ;;  %542 = vst [vmem:[%s2921_s26 + $0x1e8] sm:$0xff] %v541_v61  ;;  %v545_v63 = vld [vmem:[%s2916_s25 + $0x2f8] sm:$0xff]  ;;  %v547_v0 = vld [vmem:[%s2916_s25 + $0x400] sm:$0xff] }
  0x31   : > { %544 = vst [vmem:[%s2921_s26 + $0x1f0] sm:$0xff] %v543_v62  ;;  %v549_v1 = vld [vmem:[%s2916_s25 + $0x408] sm:$0xff]  ;;  %546 = vst [vmem:[%s2921_s26 + $0x1f8] sm:$0xff] %v545_v63  ;;  %v551_v2 = vld [vmem:[%s2916_s25 + $0x410] sm:$0xff] }
  0x32   : > { %548 = vst [vmem:[%s2921_s26 + $0x200] sm:$0xff] %v547_v0  ;;  %550 = vst [vmem:[%s2921_s26 + $0x208] sm:$0xff] %v549_v1  ;;  %v553_v3 = vld [vmem:[%s2916_s25 + $0x418] sm:$0xff]  ;;  %v555_v4 = vld [vmem:[%s2916_s25 + $0x420] sm:$0xff] }
  0x33   : > { %552 = vst [vmem:[%s2921_s26 + $0x210] sm:$0xff] %v551_v2  ;;  %554 = vst [vmem:[%s2921_s26 + $0x218] sm:$0xff] %v553_v3  ;;  %v557_v5 = vld [vmem:[%s2916_s25 + $0x428] sm:$0xff]  ;;  %v559_v6 = vld [vmem:[%s2916_s25 + $0x430] sm:$0xff] }
  0x34   : > { %556 = vst [vmem:[%s2921_s26 + $0x220] sm:$0xff] %v555_v4  ;;  %v561_v7 = vld [vmem:[%s2916_s25 + $0x438] sm:$0xff]  ;;  %558 = vst [vmem:[%s2921_s26 + $0x228] sm:$0xff] %v557_v5  ;;  %v563_v8 = vld [vmem:[%s2916_s25 + $0x440] sm:$0xff] }
  0x35   : > { %560 = vst [vmem:[%s2921_s26 + $0x230] sm:$0xff] %v559_v6  ;;  %562 = vst [vmem:[%s2921_s26 + $0x238] sm:$0xff] %v561_v7  ;;  %v565_v9 = vld [vmem:[%s2916_s25 + $0x448] sm:$0xff]  ;;  %v567_v10 = vld [vmem:[%s2916_s25 + $0x450] sm:$0xff] }
  0x36   : > { %564 = vst [vmem:[%s2921_s26 + $0x240] sm:$0xff] %v563_v8  ;;  %566 = vst [vmem:[%s2921_s26 + $0x248] sm:$0xff] %v565_v9  ;;  %v569_v11 = vld [vmem:[%s2916_s25 + $0x458] sm:$0xff]  ;;  %v571_v12 = vld [vmem:[%s2916_s25 + $0x460] sm:$0xff] }
  0x37   : > { %568 = vst [vmem:[%s2921_s26 + $0x250] sm:$0xff] %v567_v10  ;;  %v573_v13 = vld [vmem:[%s2916_s25 + $0x468] sm:$0xff]  ;;  %570 = vst [vmem:[%s2921_s26 + $0x258] sm:$0xff] %v569_v11  ;;  %v575_v14 = vld [vmem:[%s2916_s25 + $0x470] sm:$0xff] }
  0x38   : > { %572 = vst [vmem:[%s2921_s26 + $0x260] sm:$0xff] %v571_v12  ;;  %574 = vst [vmem:[%s2921_s26 + $0x268] sm:$0xff] %v573_v13  ;;  %v577_v15 = vld [vmem:[%s2916_s25 + $0x478] sm:$0xff]  ;;  %v579_v16 = vld [vmem:[%s2916_s25 + $0x480] sm:$0xff] }
  0x39   : > { %576 = vst [vmem:[%s2921_s26 + $0x270] sm:$0xff] %v575_v14  ;;  %578 = vst [vmem:[%s2921_s26 + $0x278] sm:$0xff] %v577_v15  ;;  %v581_v17 = vld [vmem:[%s2916_s25 + $0x488] sm:$0xff]  ;;  %v583_v18 = vld [vmem:[%s2916_s25 + $0x490] sm:$0xff] }
  0x3a   : > { %580 = vst [vmem:[%s2921_s26 + $0x280] sm:$0xff] %v579_v16  ;;  %v585_v19 = vld [vmem:[%s2916_s25 + $0x498] sm:$0xff]  ;;  %582 = vst [vmem:[%s2921_s26 + $0x288] sm:$0xff] %v581_v17  ;;  %v587_v20 = vld [vmem:[%s2916_s25 + $0x4a0] sm:$0xff] }
  0x3b   : > { %584 = vst [vmem:[%s2921_s26 + $0x290] sm:$0xff] %v583_v18  ;;  %586 = vst [vmem:[%s2921_s26 + $0x298] sm:$0xff] %v585_v19  ;;  %v589_v21 = vld [vmem:[%s2916_s25 + $0x4a8] sm:$0xff]  ;;  %v591_v22 = vld [vmem:[%s2916_s25 + $0x4b0] sm:$0xff] }
  0x3c   : > { %588 = vst [vmem:[%s2921_s26 + $0x2a0] sm:$0xff] %v587_v20  ;;  %590 = vst [vmem:[%s2921_s26 + $0x2a8] sm:$0xff] %v589_v21  ;;  %v593_v23 = vld [vmem:[%s2916_s25 + $0x4b8] sm:$0xff]  ;;  %v595_v24 = vld [vmem:[%s2916_s25 + $0x4c0] sm:$0xff] }
  0x3d   : > { %592 = vst [vmem:[%s2921_s26 + $0x2b0] sm:$0xff] %v591_v22  ;;  %v597_v25 = vld [vmem:[%s2916_s25 + $0x4c8] sm:$0xff]  ;;  %594 = vst [vmem:[%s2921_s26 + $0x2b8] sm:$0xff] %v593_v23  ;;  %v599_v26 = vld [vmem:[%s2916_s25 + $0x4d0] sm:$0xff] }
  0x3e   : > { %596 = vst [vmem:[%s2921_s26 + $0x2c0] sm:$0xff] %v595_v24  ;;  %598 = vst [vmem:[%s2921_s26 + $0x2c8] sm:$0xff] %v597_v25  ;;  %v601_v27 = vld [vmem:[%s2916_s25 + $0x4d8] sm:$0xff]  ;;  %v603_v28 = vld [vmem:[%s2916_s25 + $0x4e0] sm:$0xff] }
  0x3f   : > { %600 = vst [vmem:[%s2921_s26 + $0x2d0] sm:$0xff] %v599_v26  ;;  %602 = vst [vmem:[%s2921_s26 + $0x2d8] sm:$0xff] %v601_v27  ;;  %v605_v29 = vld [vmem:[%s2916_s25 + $0x4e8] sm:$0xff]  ;;  %v607_v30 = vld [vmem:[%s2916_s25 + $0x4f0] sm:$0xff] }
  0x40   : > { %604 = vst [vmem:[%s2921_s26 + $0x2e0] sm:$0xff] %v603_v28  ;;  %v609_v31 = vld [vmem:[%s2916_s25 + $0x4f8] sm:$0xff]  ;;  %606 = vst [vmem:[%s2921_s26 + $0x2e8] sm:$0xff] %v605_v29  ;;  %v611_v32 = vld [vmem:[%s2916_s25 + $0x600] sm:$0xff] }
  0x41   : > { %608 = vst [vmem:[%s2921_s26 + $0x2f0] sm:$0xff] %v607_v30  ;;  %610 = vst [vmem:[%s2921_s26 + $0x2f8] sm:$0xff] %v609_v31  ;;  %v613_v33 = vld [vmem:[%s2916_s25 + $0x608] sm:$0xff]  ;;  %v615_v34 = vld [vmem:[%s2916_s25 + $0x610] sm:$0xff] }
  0x42   : > { %612 = vst [vmem:[%s2921_s26 + $0x300] sm:$0xff] %v611_v32  ;;  %614 = vst [vmem:[%s2921_s26 + $0x308] sm:$0xff] %v613_v33  ;;  %v617_v35 = vld [vmem:[%s2916_s25 + $0x618] sm:$0xff]  ;;  %v619_v36 = vld [vmem:[%s2916_s25 + $0x620] sm:$0xff] }
  0x43   : > { %616 = vst [vmem:[%s2921_s26 + $0x310] sm:$0xff] %v615_v34  ;;  %v621_v37 = vld [vmem:[%s2916_s25 + $0x628] sm:$0xff]  ;;  %618 = vst [vmem:[%s2921_s26 + $0x318] sm:$0xff] %v617_v35  ;;  %v623_v38 = vld [vmem:[%s2916_s25 + $0x630] sm:$0xff] }
  0x44   : > { %620 = vst [vmem:[%s2921_s26 + $0x320] sm:$0xff] %v619_v36  ;;  %622 = vst [vmem:[%s2921_s26 + $0x328] sm:$0xff] %v621_v37  ;;  %v625_v39 = vld [vmem:[%s2916_s25 + $0x638] sm:$0xff]  ;;  %v627_v40 = vld [vmem:[%s2916_s25 + $0x640] sm:$0xff] }
  0x45   : > { %624 = vst [vmem:[%s2921_s26 + $0x330] sm:$0xff] %v623_v38  ;;  %626 = vst [vmem:[%s2921_s26 + $0x338] sm:$0xff] %v625_v39  ;;  %v629_v41 = vld [vmem:[%s2916_s25 + $0x648] sm:$0xff]  ;;  %v631_v42 = vld [vmem:[%s2916_s25 + $0x650] sm:$0xff] }
  0x46   : > { %628 = vst [vmem:[%s2921_s26 + $0x340] sm:$0xff] %v627_v40  ;;  %v633_v43 = vld [vmem:[%s2916_s25 + $0x658] sm:$0xff]  ;;  %630 = vst [vmem:[%s2921_s26 + $0x348] sm:$0xff] %v629_v41  ;;  %v635_v44 = vld [vmem:[%s2916_s25 + $0x660] sm:$0xff] }
  0x47   : > { %632 = vst [vmem:[%s2921_s26 + $0x350] sm:$0xff] %v631_v42  ;;  %634 = vst [vmem:[%s2921_s26 + $0x358] sm:$0xff] %v633_v43  ;;  %v637_v45 = vld [vmem:[%s2916_s25 + $0x668] sm:$0xff]  ;;  %v639_v46 = vld [vmem:[%s2916_s25 + $0x670] sm:$0xff] }
  0x48   : > { %636 = vst [vmem:[%s2921_s26 + $0x360] sm:$0xff] %v635_v44  ;;  %638 = vst [vmem:[%s2921_s26 + $0x368] sm:$0xff] %v637_v45  ;;  %v641_v47 = vld [vmem:[%s2916_s25 + $0x678] sm:$0xff]  ;;  %v643_v48 = vld [vmem:[%s2916_s25 + $0x680] sm:$0xff] }
  0x49   : > { %640 = vst [vmem:[%s2921_s26 + $0x370] sm:$0xff] %v639_v46  ;;  %v645_v49 = vld [vmem:[%s2916_s25 + $0x688] sm:$0xff]  ;;  %642 = vst [vmem:[%s2921_s26 + $0x378] sm:$0xff] %v641_v47  ;;  %v647_v50 = vld [vmem:[%s2916_s25 + $0x690] sm:$0xff] }
  0x4a   : > { %644 = vst [vmem:[%s2921_s26 + $0x380] sm:$0xff] %v643_v48  ;;  %646 = vst [vmem:[%s2921_s26 + $0x388] sm:$0xff] %v645_v49  ;;  %v649_v51 = vld [vmem:[%s2916_s25 + $0x698] sm:$0xff]  ;;  %v651_v52 = vld [vmem:[%s2916_s25 + $0x6a0] sm:$0xff] }
  0x4b   : > { %648 = vst [vmem:[%s2921_s26 + $0x390] sm:$0xff] %v647_v50  ;;  %650 = vst [vmem:[%s2921_s26 + $0x398] sm:$0xff] %v649_v51  ;;  %v653_v53 = vld [vmem:[%s2916_s25 + $0x6a8] sm:$0xff]  ;;  %v655_v54 = vld [vmem:[%s2916_s25 + $0x6b0] sm:$0xff] }
  0x4c   : > { %652 = vst [vmem:[%s2921_s26 + $0x3a0] sm:$0xff] %v651_v52  ;;  %v657_v55 = vld [vmem:[%s2916_s25 + $0x6b8] sm:$0xff]  ;;  %654 = vst [vmem:[%s2921_s26 + $0x3a8] sm:$0xff] %v653_v53  ;;  %v659_v56 = vld [vmem:[%s2916_s25 + $0x6c0] sm:$0xff] }
  0x4d   : > { %656 = vst [vmem:[%s2921_s26 + $0x3b0] sm:$0xff] %v655_v54  ;;  %658 = vst [vmem:[%s2921_s26 + $0x3b8] sm:$0xff] %v657_v55  ;;  %v661_v57 = vld [vmem:[%s2916_s25 + $0x6c8] sm:$0xff]  ;;  %v663_v58 = vld [vmem:[%s2916_s25 + $0x6d0] sm:$0xff] }
  0x4e   : > { %660 = vst [vmem:[%s2921_s26 + $0x3c0] sm:$0xff] %v659_v56  ;;  %662 = vst [vmem:[%s2921_s26 + $0x3c8] sm:$0xff] %v661_v57  ;;  %v665_v59 = vld [vmem:[%s2916_s25 + $0x6d8] sm:$0xff]  ;;  %v667_v60 = vld [vmem:[%s2916_s25 + $0x6e0] sm:$0xff] }
  0x4f   : > { %664 = vst [vmem:[%s2921_s26 + $0x3d0] sm:$0xff] %v663_v58  ;;  %v669_v61 = vld [vmem:[%s2916_s25 + $0x6e8] sm:$0xff]  ;;  %666 = vst [vmem:[%s2921_s26 + $0x3d8] sm:$0xff] %v665_v59  ;;  %v671_v62 = vld [vmem:[%s2916_s25 + $0x6f0] sm:$0xff] }
  0x50   : > { %668 = vst [vmem:[%s2921_s26 + $0x3e0] sm:$0xff] %v667_v60  ;;  %670 = vst [vmem:[%s2921_s26 + $0x3e8] sm:$0xff] %v669_v61  ;;  %v673_v63 = vld [vmem:[%s2916_s25 + $0x6f8] sm:$0xff] }
  0x51   : > { %672 = vst [vmem:[%s2921_s26 + $0x3f0] sm:$0xff] %v671_v62  ;;  %674 = vst [vmem:[%s2921_s26 + $0x3f8] sm:$0xff] %v673_v63 }
  0x52 PF: > { %p2334_p5 = scmp.ge.s32.totalorder %s2860_s14, 1  ;;  %p679_p6 = scmp.lt.s32.totalorder %s2860_s14, 3 }
  0x54   : > { %p680_p7 = pnand %p2334_p5, %p679_p6 }
  0x56   : > { %683 = sbr.rel (%p680_p7) target bundleno = 453 (0x1c5), region = 66 }
  0x5d   : > { %v844_v0 = vld [vmem:[%s4032_s1] sm:$0xff]  ;;  %v845_v1 = vld [vmem:[%s4032_s1 + $0x8] sm:$0xff]  ;;  %v846_v2 = vld [vmem:[%s4032_s1 + $0x10] sm:$0xff]  ;;  %s686_s6 = sand.u32 1, %s2852_s12   ;;  %vm848_vm0 = vcmask 261120   ;;  %s3559_s11 = sshll.u32 %s2327_s15, 5 }
  0x5e   : > { %v2802_v3 = vpack.c.bf16 %v845_v1, %v844_v0  ;;  %v847_v4 = vld [vmem:[%s4032_s1 + $0x18] sm:$0xff]  ;;  %s2335_s9 = sshll.u32 %s686_s6, 10  ;;  %p711_p8 = scmp.lt.s32.totalorder %s3559_s11, 63 }
  0x5f   : > { %v2806_v5 = vpack.c.bf16 %v847_v4, %v846_v2  ;;  %s3191_s10 = scalar_lea.vmem [#allocation2], %s2335_s9 }
  0x60   : > { %2803 = vmatprep.subr.bf16.mxu0 %v2802_v3  ;;  %2810 = vmatprep.subr.bf16.mxu1 %v2802_v3  ;;  %v716_v6 = vld [vmem:[%s3191_s10] sm:$0xff]  ;;  %v717_v8 = vld [vmem:[%s3191_s10 + $0x8] sm:$0xff]  ;;  %v718_v10 = vld [vmem:[%s3191_s10 + $0x10] sm:$0xff]  ;;  %s4069_s11 = smov (!%p711_p8, %s3559_s11), 63 }
  0x61   : > { %v780_v7 = vld [vmem:[%s3191_s10 + $0x200] sm:$0xff]  ;;  %2805 = vmatpush3.bf16.msra.mxu0 %v2802_v3  ;;  %2812 = vmatpush3.bf16.msra.mxu1 %v2802_v3  ;;  %v781_v9 = vld [vmem:[%s3191_s10 + $0x208] sm:$0xff]  ;;  %v782_v11 = vld [vmem:[%s3191_s10 + $0x210] sm:$0xff]  ;;  %s2337_s15 = sshll.u32 %s4069_s11, 3 }
  0x62   : > { %2807 = vmatprep.subr.bf16.mxu0 %v2806_v5  ;;  %2811 = vmatprep.subr.bf16.mxu1 %v2806_v5  ;;  %v719_v12 = vld [vmem:[%s3191_s10 + $0x18] sm:$0xff]  ;;  %v720_v14 = vld [vmem:[%s3191_s10 + $0x20] sm:$0xff]  ;;  %v721_v16 = vld [vmem:[%s3191_s10 + $0x28] sm:$0xff]  ;;  %s3727_s20 = scalar_lea.vmem %s4034_s3, %s2337_s15 }
  0x63   : > { %2610 = vmatprep.mubr.msk.f32.mxu0 %vm848_vm0, %v716_v6  ;;  %2706 = vmatprep.mubr.msk.f32.mxu1 %vm848_vm0, %v780_v7  ;;  %v783_v13 = vld [vmem:[%s3191_s10 + $0x218] sm:$0xff]  ;;  %v784_v15 = vld [vmem:[%s3191_s10 + $0x220] sm:$0xff]  ;;  %v785_v17 = vld [vmem:[%s3191_s10 + $0x228] sm:$0xff] }
  0x64   : > { %v722_v18 = vld [vmem:[%s3191_s10 + $0x30] sm:$0xff]  ;;  %v723_v20 = vld [vmem:[%s3191_s10 + $0x38] sm:$0xff]  ;;  %v724_v22 = vld [vmem:[%s3191_s10 + $0x40] sm:$0xff] }
  0x65   : > { %2809 = vmatpush3.bf16.msra.mxu0 %v2806_v5  ;;  %2813 = vmatpush3.bf16.msra.mxu1 %v2806_v5  ;;  %v786_v19 = vld [vmem:[%s3191_s10 + $0x230] sm:$0xff]  ;;  %v787_v21 = vld [vmem:[%s3191_s10 + $0x238] sm:$0xff]  ;;  %v788_v23 = vld [vmem:[%s3191_s10 + $0x240] sm:$0xff] }
  0x66   : > { %v725_v24 = vld [vmem:[%s3191_s10 + $0x48] sm:$0xff]  ;;  %v726_v26 = vld [vmem:[%s3191_s10 + $0x50] sm:$0xff]  ;;  %v727_v28 = vld [vmem:[%s3191_s10 + $0x58] sm:$0xff] }
  0x67   : > { %v789_v25 = vld [vmem:[%s3191_s10 + $0x248] sm:$0xff]  ;;  %v790_v27 = vld [vmem:[%s3191_s10 + $0x250] sm:$0xff]  ;;  %v791_v29 = vld [vmem:[%s3191_s10 + $0x258] sm:$0xff] }
  0x68   : > { %2611 = vmatmul.mubr.msk.f32.vlgmr.msra.gmra.mrb[0].mxu0 %vm848_vm0, %v717_v8  ;;  %2707 = vmatmul.mubr.msk.f32.vlgmr.msra.gmra.mrb[0].mxu1 %vm848_vm0, %v781_v9  ;;  %v728_v30 = vld [vmem:[%s3191_s10 + $0x60] sm:$0xff]  ;;  %v729_v32 = vld [vmem:[%s3191_s10 + $0x68] sm:$0xff]  ;;  %v730_v34 = vld [vmem:[%s3191_s10 + $0x70] sm:$0xff] }
  0x69   : > { %2613 = vmatprep.mubr.msk.f32.mxu0 %vm848_vm0, %v718_v10  ;;  %2709 = vmatprep.mubr.msk.f32.mxu1 %vm848_vm0, %v782_v11  ;;  %v792_v31 = vld [vmem:[%s3191_s10 + $0x260] sm:$0xff]  ;;  %v793_v33 = vld [vmem:[%s3191_s10 + $0x268] sm:$0xff]  ;;  %v794_v35 = vld [vmem:[%s3191_s10 + $0x270] sm:$0xff] }
  0x6a   : > { %v731_v36 = vld [vmem:[%s3191_s10 + $0x78] sm:$0xff]  ;;  %v732_v38 = vld [vmem:[%s3191_s10 + $0x80] sm:$0xff]  ;;  %v733_v40 = vld [vmem:[%s3191_s10 + $0x88] sm:$0xff] }
  0x6b   : > { %v795_v37 = vld [vmem:[%s3191_s10 + $0x278] sm:$0xff]  ;;  %v796_v39 = vld [vmem:[%s3191_s10 + $0x280] sm:$0xff]  ;;  %v797_v41 = vld [vmem:[%s3191_s10 + $0x288] sm:$0xff] }
  0x6c   : > { %2614 = vmatmul.mubr.msk.f32.gmra.mrb[2].mxu0 %vm848_vm0, %v719_v12  ;;  %2710 = vmatmul.mubr.msk.f32.gmra.mrb[2].mxu1 %vm848_vm0, %v783_v13  ;;  %v734_v42 = vld [vmem:[%s3191_s10 + $0x90] sm:$0xff]  ;;  %v735_v44 = vld [vmem:[%s3191_s10 + $0x98] sm:$0xff]  ;;  %v736_v46 = vld [vmem:[%s3191_s10 + $0xa0] sm:$0xff] }
  0x6d   : > { %2616 = vmatprep.mubr.msk.f32.mxu0 %vm848_vm0, %v720_v14  ;;  %2712 = vmatprep.mubr.msk.f32.mxu1 %vm848_vm0, %v784_v15  ;;  %v798_v43 = vld [vmem:[%s3191_s10 + $0x290] sm:$0xff]  ;;  %v799_v45 = vld [vmem:[%s3191_s10 + $0x298] sm:$0xff]  ;;  %v800_v47 = vld [vmem:[%s3191_s10 + $0x2a0] sm:$0xff] }
  0x6e   : > { %v737_v48 = vld [vmem:[%s3191_s10 + $0xa8] sm:$0xff]  ;;  %v738_v50 = vld [vmem:[%s3191_s10 + $0xb0] sm:$0xff]  ;;  %v739_v52 = vld [vmem:[%s3191_s10 + $0xb8] sm:$0xff] }
  0x6f   : > { %v801_v49 = vld [vmem:[%s3191_s10 + $0x2a8] sm:$0xff]  ;;  %v802_v51 = vld [vmem:[%s3191_s10 + $0x2b0] sm:$0xff]  ;;  %v803_v53 = vld [vmem:[%s3191_s10 + $0x2b8] sm:$0xff] }
  0x70   : > { %2617 = vmatmul.mubr.msk.f32.gmra.mrb[4].mxu0 %vm848_vm0, %v721_v16  ;;  %2713 = vmatmul.mubr.msk.f32.gmra.mrb[4].mxu1 %vm848_vm0, %v785_v17  ;;  %v740_v54 = vld [vmem:[%s3191_s10 + $0xc0] sm:$0xff]  ;;  %v741_v56 = vld [vmem:[%s3191_s10 + $0xc8] sm:$0xff]  ;;  %v742_v58 = vld [vmem:[%s3191_s10 + $0xd0] sm:$0xff] }
  0x71   : > { %2619 = vmatprep.mubr.msk.f32.mxu0 %vm848_vm0, %v722_v18  ;;  %2715 = vmatprep.mubr.msk.f32.mxu1 %vm848_vm0, %v786_v19  ;;  %v804_v55 = vld [vmem:[%s3191_s10 + $0x2c0] sm:$0xff]  ;;  %v805_v57 = vld [vmem:[%s3191_s10 + $0x2c8] sm:$0xff]  ;;  %v806_v59 = vld [vmem:[%s3191_s10 + $0x2d0] sm:$0xff] }
  0x72   : > { %v743_v60 = vld [vmem:[%s3191_s10 + $0xd8] sm:$0xff]  ;;  %v744_v62 = vld [vmem:[%s3191_s10 + $0xe0] sm:$0xff]  ;;  %v745_v0 = vld [vmem:[%s3191_s10 + $0xe8] sm:$0xff] }
  0x73   : > { %v807_v61 = vld [vmem:[%s3191_s10 + $0x2d8] sm:$0xff]  ;;  %v808_v63 = vld [vmem:[%s3191_s10 + $0x2e0] sm:$0xff]  ;;  %v809_v1 = vld [vmem:[%s3191_s10 + $0x2e8] sm:$0xff] }
  0x74   : > { %2620 = vmatmul.mubr.msk.f32.gmra.mrb[6].mxu0 %vm848_vm0, %v723_v20  ;;  %2716 = vmatmul.mubr.msk.f32.gmra.mrb[6].mxu1 %vm848_vm0, %v787_v21  ;;  %v746_v2 = vld [vmem:[%s3191_s10 + $0xf0] sm:$0xff]  ;;  %v747_v4 = vld [vmem:[%s3191_s10 + $0xf8] sm:$0xff]  ;;  %v748_v6 = vld [vmem:[%s3191_s10 + $0x100] sm:$0xff] }
  0x75   : > { %2622 = vmatprep.mubr.msk.f32.mxu0 %vm848_vm0, %v724_v22  ;;  %2718 = vmatprep.mubr.msk.f32.mxu1 %vm848_vm0, %v788_v23  ;;  %v810_v3 = vld [vmem:[%s3191_s10 + $0x2f0] sm:$0xff]  ;;  %v811_v5 = vld [vmem:[%s3191_s10 + $0x2f8] sm:$0xff]  ;;  %v812_v7 = vld [vmem:[%s3191_s10 + $0x300] sm:$0xff] }
  0x76   : > { %v749_v8 = vld [vmem:[%s3191_s10 + $0x108] sm:$0xff]  ;;  %v750_v10 = vld [vmem:[%s3191_s10 + $0x110] sm:$0xff]  ;;  %v751_v12 = vld [vmem:[%s3191_s10 + $0x118] sm:$0xff] }
  0x77   : > { %v813_v9 = vld [vmem:[%s3191_s10 + $0x308] sm:$0xff]  ;;  %v814_v11 = vld [vmem:[%s3191_s10 + $0x310] sm:$0xff]  ;;  %v815_v13 = vld [vmem:[%s3191_s10 + $0x318] sm:$0xff] }
  0x78   : > { %2623 = vmatmul.mubr.msk.f32.gmra.mrb[8].mxu0 %vm848_vm0, %v725_v24  ;;  %2719 = vmatmul.mubr.msk.f32.gmra.mrb[8].mxu1 %vm848_vm0, %v789_v25  ;;  %v752_v14 = vld [vmem:[%s3191_s10 + $0x120] sm:$0xff]  ;;  %v753_v16 = vld [vmem:[%s3191_s10 + $0x128] sm:$0xff]  ;;  %v754_v18 = vld [vmem:[%s3191_s10 + $0x130] sm:$0xff] }
  0x79   : > { %2625 = vmatprep.mubr.msk.f32.mxu0 %vm848_vm0, %v726_v26  ;;  %2721 = vmatprep.mubr.msk.f32.mxu1 %vm848_vm0, %v790_v27  ;;  %v816_v15 = vld [vmem:[%s3191_s10 + $0x320] sm:$0xff]  ;;  %v817_v17 = vld [vmem:[%s3191_s10 + $0x328] sm:$0xff]  ;;  %v818_v19 = vld [vmem:[%s3191_s10 + $0x330] sm:$0xff] }
  0x7a   : > { %v755_v20 = vld [vmem:[%s3191_s10 + $0x138] sm:$0xff]  ;;  %v756_v22 = vld [vmem:[%s3191_s10 + $0x140] sm:$0xff]  ;;  %v757_v24 = vld [vmem:[%s3191_s10 + $0x148] sm:$0xff] }
  0x7b   : > { %v819_v21 = vld [vmem:[%s3191_s10 + $0x338] sm:$0xff]  ;;  %v820_v23 = vld [vmem:[%s3191_s10 + $0x340] sm:$0xff]  ;;  %v821_v25 = vld [vmem:[%s3191_s10 + $0x348] sm:$0xff] }
  0x7c   : > { %2626 = vmatmul.mubr.msk.f32.gmra.mrb[10].mxu0 %vm848_vm0, %v727_v28  ;;  %2722 = vmatmul.mubr.msk.f32.gmra.mrb[10].mxu1 %vm848_vm0, %v791_v29  ;;  %v758_v26 = vld [vmem:[%s3191_s10 + $0x150] sm:$0xff]  ;;  %v759_v28 = vld [vmem:[%s3191_s10 + $0x158] sm:$0xff] }
  0x7d   : > { %2628 = vmatprep.mubr.msk.f32.mxu0 %vm848_vm0, %v728_v30  ;;  %2724 = vmatprep.mubr.msk.f32.mxu1 %vm848_vm0, %v792_v31  ;;  %v822_v27 = vld [vmem:[%s3191_s10 + $0x350] sm:$0xff]  ;;  %v823_v29 = vld [vmem:[%s3191_s10 + $0x358] sm:$0xff]  ;;  %v760_v30 = vld [vmem:[%s3191_s10 + $0x160] sm:$0xff] }
  0x7e   : > { %v824_v31 = vld [vmem:[%s3191_s10 + $0x360] sm:$0xff] }
  0x80   : > { %2629 = vmatmul.mubr.msk.f32.gmra.mrb[12].mxu0 %vm848_vm0, %v729_v32  ;;  %2725 = vmatmul.mubr.msk.f32.gmra.mrb[12].mxu1 %vm848_vm0, %v793_v33  ;;  %v761_v32 = vld [vmem:[%s3191_s10 + $0x168] sm:$0xff] }
  0x81   : > { %2631 = vmatprep.mubr.msk.f32.mxu0 %vm848_vm0, %v730_v34  ;;  %2727 = vmatprep.mubr.msk.f32.mxu1 %vm848_vm0, %v794_v35  ;;  %v825_v33 = vld [vmem:[%s3191_s10 + $0x368] sm:$0xff]  ;;  %v762_v34 = vld [vmem:[%s3191_s10 + $0x170] sm:$0xff] }
  0x82   : > { %v826_v35 = vld [vmem:[%s3191_s10 + $0x370] sm:$0xff] }
  0x84   : > { %2632 = vmatmul.mubr.msk.f32.gmra.mrb[14].mxu0 %vm848_vm0, %v731_v36  ;;  %2728 = vmatmul.mubr.msk.f32.gmra.mrb[14].mxu1 %vm848_vm0, %v795_v37  ;;  %v763_v36 = vld [vmem:[%s3191_s10 + $0x178] sm:$0xff] }
  0x85   : > { %2634 = vmatprep.mubr.msk.f32.mxu0 %vm848_vm0, %v732_v38  ;;  %2730 = vmatprep.mubr.msk.f32.mxu1 %vm848_vm0, %v796_v39  ;;  %v827_v37 = vld [vmem:[%s3191_s10 + $0x378] sm:$0xff]  ;;  %v764_v38 = vld [vmem:[%s3191_s10 + $0x180] sm:$0xff] }
  0x86   : > { %v828_v39 = vld [vmem:[%s3191_s10 + $0x380] sm:$0xff] }
  0x88   : > { %2635 = vmatmul.mubr.msk.f32.gmra.mrb[16].mxu0 %vm848_vm0, %v733_v40  ;;  %2731 = vmatmul.mubr.msk.f32.gmra.mrb[16].mxu1 %vm848_vm0, %v797_v41  ;;  %v765_v40 = vld [vmem:[%s3191_s10 + $0x188] sm:$0xff] }
  0x89   : > { %2637 = vmatprep.mubr.msk.f32.mxu0 %vm848_vm0, %v734_v42  ;;  %2733 = vmatprep.mubr.msk.f32.mxu1 %vm848_vm0, %v798_v43  ;;  %v829_v41 = vld [vmem:[%s3191_s10 + $0x388] sm:$0xff]  ;;  %v766_v42 = vld [vmem:[%s3191_s10 + $0x190] sm:$0xff] }
  0x8a   : > { %v830_v43 = vld [vmem:[%s3191_s10 + $0x390] sm:$0xff] }
  0x8c   : > { %2638 = vmatmul.mubr.msk.f32.gmra.mrb[18].mxu0 %vm848_vm0, %v735_v44  ;;  %2734 = vmatmul.mubr.msk.f32.gmra.mrb[18].mxu1 %vm848_vm0, %v799_v45  ;;  %v767_v44 = vld [vmem:[%s3191_s10 + $0x198] sm:$0xff] }
  0x8d   : > { %2640 = vmatprep.mubr.msk.f32.mxu0 %vm848_vm0, %v736_v46  ;;  %2736 = vmatprep.mubr.msk.f32.mxu1 %vm848_vm0, %v800_v47  ;;  %v831_v45 = vld [vmem:[%s3191_s10 + $0x398] sm:$0xff]  ;;  %v768_v46 = vld [vmem:[%s3191_s10 + $0x1a0] sm:$0xff] }
  0x8e   : > { %v832_v47 = vld [vmem:[%s3191_s10 + $0x3a0] sm:$0xff] }
  0x90   : > { %2641 = vmatmul.mubr.msk.f32.gmra.mrb[20].mxu0 %vm848_vm0, %v737_v48  ;;  %2737 = vmatmul.mubr.msk.f32.gmra.mrb[20].mxu1 %vm848_vm0, %v801_v49  ;;  %v769_v48 = vld [vmem:[%s3191_s10 + $0x1a8] sm:$0xff] }
  0x91   : > { %2643 = vmatprep.mubr.msk.f32.mxu0 %vm848_vm0, %v738_v50  ;;  %2739 = vmatprep.mubr.msk.f32.mxu1 %vm848_vm0, %v802_v51  ;;  %v833_v49 = vld [vmem:[%s3191_s10 + $0x3a8] sm:$0xff]  ;;  %v770_v50 = vld [vmem:[%s3191_s10 + $0x1b0] sm:$0xff] }
  0x92   : > { %v834_v51 = vld [vmem:[%s3191_s10 + $0x3b0] sm:$0xff] }
  0x94   : > { %2644 = vmatmul.mubr.msk.f32.gmra.mrb[22].mxu0 %vm848_vm0, %v739_v52  ;;  %2740 = vmatmul.mubr.msk.f32.gmra.mrb[22].mxu1 %vm848_vm0, %v803_v53  ;;  %v771_v52 = vld [vmem:[%s3191_s10 + $0x1b8] sm:$0xff] }
  0x95   : > { %2646 = vmatprep.mubr.msk.f32.mxu0 %vm848_vm0, %v740_v54  ;;  %2742 = vmatprep.mubr.msk.f32.mxu1 %vm848_vm0, %v804_v55  ;;  %v835_v53 = vld [vmem:[%s3191_s10 + $0x3b8] sm:$0xff]  ;;  %v772_v54 = vld [vmem:[%s3191_s10 + $0x1c0] sm:$0xff] }
  0x96   : > { %v836_v55 = vld [vmem:[%s3191_s10 + $0x3c0] sm:$0xff] }
  0x98   : > { %2647 = vmatmul.mubr.msk.f32.gmra.mrb[24].mxu0 %vm848_vm0, %v741_v56  ;;  %2743 = vmatmul.mubr.msk.f32.gmra.mrb[24].mxu1 %vm848_vm0, %v805_v57  ;;  %v773_v56 = vld [vmem:[%s3191_s10 + $0x1c8] sm:$0xff] }
  0x99   : > { %2649 = vmatprep.mubr.msk.f32.mxu0 %vm848_vm0, %v742_v58  ;;  %2745 = vmatprep.mubr.msk.f32.mxu1 %vm848_vm0, %v806_v59  ;;  %v837_v57 = vld [vmem:[%s3191_s10 + $0x3c8] sm:$0xff]  ;;  %v774_v58 = vld [vmem:[%s3191_s10 + $0x1d0] sm:$0xff] }
  0x9a   : > { %v838_v59 = vld [vmem:[%s3191_s10 + $0x3d0] sm:$0xff] }
  0x9c   : > { %2650 = vmatmul.mubr.msk.f32.gmra.mrb[26].mxu0 %vm848_vm0, %v743_v60  ;;  %2746 = vmatmul.mubr.msk.f32.gmra.mrb[26].mxu1 %vm848_vm0, %v807_v61  ;;  %v775_v60 = vld [vmem:[%s3191_s10 + $0x1d8] sm:$0xff] }
  0x9d   : > { %2652 = vmatprep.mubr.msk.f32.mxu0 %vm848_vm0, %v744_v62  ;;  %2748 = vmatprep.mubr.msk.f32.mxu1 %vm848_vm0, %v808_v63  ;;  %v839_v61 = vld [vmem:[%s3191_s10 + $0x3d8] sm:$0xff]  ;;  %v776_v62 = vld [vmem:[%s3191_s10 + $0x1e0] sm:$0xff] }
  0x9e   : > { %v840_v63 = vld [vmem:[%s3191_s10 + $0x3e0] sm:$0xff] }
  0xa0   : > { %2653 = vmatmul.mubr.msk.f32.gmra.mrb[28].mxu0 %vm848_vm0, %v745_v0  ;;  %2749 = vmatmul.mubr.msk.f32.gmra.mrb[28].mxu1 %vm848_vm0, %v809_v1  ;;  %v777_v0 = vld [vmem:[%s3191_s10 + $0x1e8] sm:$0xff] }
  0xa1   : > { %2655 = vmatprep.mubr.msk.f32.mxu0 %vm848_vm0, %v746_v2  ;;  %2751 = vmatprep.mubr.msk.f32.mxu1 %vm848_vm0, %v810_v3  ;;  %v841_v1 = vld [vmem:[%s3191_s10 + $0x3e8] sm:$0xff]  ;;  %v778_v2 = vld [vmem:[%s3191_s10 + $0x1f0] sm:$0xff] }
  0xa2   : > { %v842_v3 = vld [vmem:[%s3191_s10 + $0x3f0] sm:$0xff] }
  0xa4   : > { %2656 = vmatmul.mubr.msk.f32.gmra.mrb[30].mxu0 %vm848_vm0, %v747_v4  ;;  %2752 = vmatmul.mubr.msk.f32.gmra.mrb[30].mxu1 %vm848_vm0, %v811_v5  ;;  %v779_v4 = vld [vmem:[%s3191_s10 + $0x1f8] sm:$0xff] }
  0xa5   : > { %2658 = vmatprep.mubr.msk.f32.mxu0 %vm848_vm0, %v748_v6  ;;  %2754 = vmatprep.mubr.msk.f32.mxu1 %vm848_vm0, %v812_v7  ;;  %v843_v5 = vld [vmem:[%s3191_s10 + $0x3f8] sm:$0xff] }
  0xa8   : > { %2659 = vmatmul.mubr.msk.f32.gmra.mrb[32].mxu0 %vm848_vm0, %v749_v8  ;;  %2755 = vmatmul.mubr.msk.f32.gmra.mrb[32].mxu1 %vm848_vm0, %v813_v9 }
  0xa9   : > { %2661 = vmatprep.mubr.msk.f32.mxu0 %vm848_vm0, %v750_v10  ;;  %2757 = vmatprep.mubr.msk.f32.mxu1 %vm848_vm0, %v814_v11 }
  0xac   : > { %2662 = vmatmul.mubr.msk.f32.gmra.mrb[34].mxu0 %vm848_vm0, %v751_v12  ;;  %2758 = vmatmul.mubr.msk.f32.gmra.mrb[34].mxu1 %vm848_vm0, %v815_v13 }
  0xad   : > { %2664 = vmatprep.mubr.msk.f32.mxu0 %vm848_vm0, %v752_v14  ;;  %2760 = vmatprep.mubr.msk.f32.mxu1 %vm848_vm0, %v816_v15 }
  0xb0   : > { %2665 = vmatmul.mubr.msk.f32.gmra.mrb[36].mxu0 %vm848_vm0, %v753_v16  ;;  %2761 = vmatmul.mubr.msk.f32.gmra.mrb[36].mxu1 %vm848_vm0, %v817_v17 }
  0xb1   : > { %2667 = vmatprep.mubr.msk.f32.mxu0 %vm848_vm0, %v754_v18  ;;  %2763 = vmatprep.mubr.msk.f32.mxu1 %vm848_vm0, %v818_v19 }
  0xb4   : > { %2668 = vmatmul.mubr.msk.f32.gmra.mrb[38].mxu0 %vm848_vm0, %v755_v20  ;;  %2764 = vmatmul.mubr.msk.f32.gmra.mrb[38].mxu1 %vm848_vm0, %v819_v21 }
  0xb5   : > { %2670 = vmatprep.mubr.msk.f32.mxu0 %vm848_vm0, %v756_v22  ;;  %2766 = vmatprep.mubr.msk.f32.mxu1 %vm848_vm0, %v820_v23 }
  0xb8   : > { %2671 = vmatmul.mubr.msk.f32.gmra.mrb[40].mxu0 %vm848_vm0, %v757_v24  ;;  %2767 = vmatmul.mubr.msk.f32.gmra.mrb[40].mxu1 %vm848_vm0, %v821_v25 }
  0xb9   : > { %2673 = vmatprep.mubr.msk.f32.mxu0 %vm848_vm0, %v758_v26  ;;  %2769 = vmatprep.mubr.msk.f32.mxu1 %vm848_vm0, %v822_v27 }
  0xbc   : > { %2674 = vmatmul.mubr.msk.f32.gmra.mrb[42].mxu0 %vm848_vm0, %v759_v28  ;;  %2770 = vmatmul.mubr.msk.f32.gmra.mrb[42].mxu1 %vm848_vm0, %v823_v29 }
  0xbd   : > { %2676 = vmatprep.mubr.msk.f32.mxu0 %vm848_vm0, %v760_v30  ;;  %2772 = vmatprep.mubr.msk.f32.mxu1 %vm848_vm0, %v824_v31 }
  0xc0   : > { %2677 = vmatmul.mubr.msk.f32.gmra.mrb[44].mxu0 %vm848_vm0, %v761_v32  ;;  %2773 = vmatmul.mubr.msk.f32.gmra.mrb[44].mxu1 %vm848_vm0, %v825_v33 }
  0xc1   : > { %2679 = vmatprep.mubr.msk.f32.mxu0 %vm848_vm0, %v762_v34  ;;  %2775 = vmatprep.mubr.msk.f32.mxu1 %vm848_vm0, %v826_v35 }
  0xc4   : > { %2680 = vmatmul.mubr.msk.f32.gmra.mrb[46].mxu0 %vm848_vm0, %v763_v36  ;;  %2776 = vmatmul.mubr.msk.f32.gmra.mrb[46].mxu1 %vm848_vm0, %v827_v37 }
  0xc5   : > { %2682 = vmatprep.mubr.msk.f32.mxu0 %vm848_vm0, %v764_v38  ;;  %2778 = vmatprep.mubr.msk.f32.mxu1 %vm848_vm0, %v828_v39 }
  0xc8   : > { %2683 = vmatmul.mubr.msk.f32.gmra.mrb[48].mxu0 %vm848_vm0, %v765_v40  ;;  %2779 = vmatmul.mubr.msk.f32.gmra.mrb[48].mxu1 %vm848_vm0, %v829_v41 }
  0xc9   : > { %2685 = vmatprep.mubr.msk.f32.mxu0 %vm848_vm0, %v766_v42  ;;  %2781 = vmatprep.mubr.msk.f32.mxu1 %vm848_vm0, %v830_v43 }
  0xcc   : > { %2686 = vmatmul.mubr.msk.f32.gmra.mrb[50].mxu0 %vm848_vm0, %v767_v44  ;;  %2782 = vmatmul.mubr.msk.f32.gmra.mrb[50].mxu1 %vm848_vm0, %v831_v45 }
  0xcd   : > { %2688 = vmatprep.mubr.msk.f32.mxu0 %vm848_vm0, %v768_v46  ;;  %2784 = vmatprep.mubr.msk.f32.mxu1 %vm848_vm0, %v832_v47 }
  0xd0   : > { %2689 = vmatmul.mubr.msk.f32.gmra.mrb[52].mxu0 %vm848_vm0, %v769_v48  ;;  %2785 = vmatmul.mubr.msk.f32.gmra.mrb[52].mxu1 %vm848_vm0, %v833_v49 }
  0xd1   : > { %2691 = vmatprep.mubr.msk.f32.mxu0 %vm848_vm0, %v770_v50  ;;  %2787 = vmatprep.mubr.msk.f32.mxu1 %vm848_vm0, %v834_v51 }
  0xd4   : > { %2692 = vmatmul.mubr.msk.f32.gmra.mrb[54].mxu0 %vm848_vm0, %v771_v52  ;;  %2788 = vmatmul.mubr.msk.f32.gmra.mrb[54].mxu1 %vm848_vm0, %v835_v53 }
  0xd5   : > { %2694 = vmatprep.mubr.msk.f32.mxu0 %vm848_vm0, %v772_v54  ;;  %2790 = vmatprep.mubr.msk.f32.mxu1 %vm848_vm0, %v836_v55 }
  0xd8   : > { %2695 = vmatmul.mubr.msk.f32.gmra.mrb[56].mxu0 %vm848_vm0, %v773_v56  ;;  %2791 = vmatmul.mubr.msk.f32.gmra.mrb[56].mxu1 %vm848_vm0, %v837_v57 }
  0xd9   : > { %2697 = vmatprep.mubr.msk.f32.mxu0 %vm848_vm0, %v774_v58  ;;  %2793 = vmatprep.mubr.msk.f32.mxu1 %vm848_vm0, %v838_v59 }
  0xdc   : > { %2698 = vmatmul.mubr.msk.f32.gmra.mrb[58].mxu0 %vm848_vm0, %v775_v60  ;;  %2794 = vmatmul.mubr.msk.f32.gmra.mrb[58].mxu1 %vm848_vm0, %v839_v61 }
  0xdd   : > { %2700 = vmatprep.mubr.msk.f32.mxu0 %vm848_vm0, %v776_v62  ;;  %2796 = vmatprep.mubr.msk.f32.mxu1 %vm848_vm0, %v840_v63 }
  0xe0   : > { %2701 = vmatmul.mubr.msk.f32.gmra.mrb[60].mxu0 %vm848_vm0, %v777_v0  ;;  %2797 = vmatmul.mubr.msk.f32.gmra.mrb[60].mxu1 %vm848_vm0, %v841_v1 }
  0xe1   : > { %2703 = vmatprep.mubr.msk.f32.mxu0 %vm848_vm0, %v778_v2  ;;  %2799 = vmatprep.mubr.msk.f32.mxu1 %vm848_vm0, %v842_v3 }
  0xe4   : > { %2704 = vmatmul.mubr.msk.f32.gmra.mrb[62].mxu0 %vm848_vm0, %v779_v4  ;;  %2800 = vmatmul.mubr.msk.f32.gmra.mrb[62].mxu1 %vm848_vm0, %v843_v5 }
 0x13b   : > { %v2612_v6 = vpop.f32.mrb[0].mxu0  ;;  %v2708_v7 = vpop.f32.mrb[0].mxu1 }
 0x13c   : > { %v1299_v8 = vpop.f32.mrb[1].mxu0  ;;  %v1619_v9 = vpop.f32.mrb[1].mxu1  ;;  %v1945_v2 = vsel %vm848_vm0, %v2612_v6, -inf  ;;  %v1948_v3 = vsel %vm848_vm0, %v2708_v7, -inf }
 0x13d   : > { %v1938_v4 = vsel %vm848_vm0, %v1299_v8, -inf }
 0x13f   : > { %v2615_v10 = vpop.f32.mrb[2].mxu0  ;;  %v2711_v11 = vpop.f32.mrb[2].mxu1 }
 0x140   : > { %v3449_v12 = vpop.f32.mrb[3].mxu0  ;;  %v3451_v13 = vpop.f32.mrb[3].mxu1  ;;  %v3563_v5 = vsel %vm848_vm0, %v2615_v10, -inf }
 0x141   : > { %v3575_v6 = vsel %vm848_vm0, %v3449_v12, -inf  ;;  %v3582_v8 = vsel %vm848_vm0, %v3451_v13, -inf }
 0x143   : > { %v2618_v14 = vpop.f32.mrb[4].mxu0  ;;  %v3453_v15 = vpop.f32.mrb[4].mxu1 }
 0x144   : > { %v3455_v16 = vpop.f32.mrb[5].mxu0  ;;  %v3457_v17 = vpop.f32.mrb[5].mxu1  ;;  %v3578_v7 = vsel %vm848_vm0, %v2618_v14, -inf }
 0x145   : > { %v3602_v13 = vsel %vm848_vm0, %v3457_v17, -inf }
 0x147   : > { %v3459_v18 = vpop.f32.mrb[6].mxu0  ;;  %v3461_v19 = vpop.f32.mrb[6].mxu1 }
 0x148   : > { %v3463_v20 = vpop.f32.mrb[7].mxu0  ;;  %v3465_v21 = vpop.f32.mrb[7].mxu1  ;;  %v3598_v12 = vsel %vm848_vm0, %v3459_v18, -inf  ;;  %v3606_v14 = vsel %vm848_vm0, %v3461_v19, -inf }
 0x149   : > { %v3619_v18 = vsel %vm848_vm0, %v3465_v21, -inf }
 0x14b   : > { %v3467_v22 = vpop.f32.mrb[8].mxu0  ;;  %v3469_v23 = vpop.f32.mrb[8].mxu1 }
 0x14c   : > { %v3471_v24 = vpop.f32.mrb[9].mxu0  ;;  %v3473_v25 = vpop.f32.mrb[9].mxu1  ;;  %v3623_v17 = vsel %vm848_vm0, %v3469_v23, -inf }
 0x14d   : > { %v3627_v19 = vsel %vm848_vm0, %v3471_v24, -inf }
 0x14f   : > { %v3475_v26 = vpop.f32.mrb[10].mxu0  ;;  %v3477_v27 = vpop.f32.mrb[10].mxu1 }
 0x150   : > { %v3479_v28 = vpop.f32.mrb[11].mxu0  ;;  %v3481_v29 = vpop.f32.mrb[11].mxu1  ;;  %v3639_v21 = vsel %vm848_vm0, %v3477_v27, -inf }
 0x151   : > { %v3643_v24 = vsel %vm848_vm0, %v3479_v28, -inf }
 0x153   : > { %v3483_v30 = vpop.f32.mrb[12].mxu0  ;;  %v3485_v31 = vpop.f32.mrb[12].mxu1 }
 0x154   : > { %v3487_v32 = vpop.f32.mrb[13].mxu0  ;;  %v3489_v33 = vpop.f32.mrb[13].mxu1  ;;  %v3660_v28 = vsel %vm848_vm0, %v3485_v31, -inf  ;;  %v3680_v31 = vld [vmem:[%s4033_s2] ss:$0 sm:$0xff] }
 0x155   : > { %v3656_v27 = vsel %vm848_vm0, %v3487_v32, -inf }
 0x157   : > { %v3491_v34 = vpop.f32.mrb[14].mxu0  ;;  %v3493_v35 = vpop.f32.mrb[14].mxu1 }
 0x158   : > { %v3495_v36 = vpop.f32.mrb[15].mxu0  ;;  %v3497_v37 = vpop.f32.mrb[15].mxu1 }
 0x15b   : > { %v3499_v38 = vpop.f32.mrb[16].mxu0  ;;  %v3501_v39 = vpop.f32.mrb[16].mxu1 }
 0x15c   : > { %v3503_v40 = vpop.f32.mrb[17].mxu0  ;;  %v3505_v41 = vpop.f32.mrb[17].mxu1 }
 0x15f   : > { %v3507_v42 = vpop.f32.mrb[18].mxu0  ;;  %v3509_v43 = vpop.f32.mrb[18].mxu1 }
 0x160   : > { %v3511_v44 = vpop.f32.mrb[19].mxu0  ;;  %v3513_v45 = vpop.f32.mrb[19].mxu1 }
 0x163   : > { %v3515_v46 = vpop.f32.mrb[20].mxu0  ;;  %v3517_v47 = vpop.f32.mrb[20].mxu1 }
 0x164   : > { %v3519_v48 = vpop.f32.mrb[21].mxu0  ;;  %v3521_v49 = vpop.f32.mrb[21].mxu1 }
 0x167   : > { %v3523_v50 = vpop.f32.mrb[22].mxu0  ;;  %v3525_v51 = vpop.f32.mrb[22].mxu1 }
 0x168   : > { %v3527_v52 = vpop.f32.mrb[23].mxu0  ;;  %v3529_v53 = vpop.f32.mrb[23].mxu1 }
 0x16b   : > { %v3531_v54 = vpop.f32.mrb[24].mxu0  ;;  %v3533_v55 = vpop.f32.mrb[24].mxu1 }
 0x16c   : > { %v3535_v56 = vpop.f32.mrb[25].mxu0  ;;  %v3537_v57 = vpop.f32.mrb[25].mxu1 }
 0x16d   : > { %4035 = vst [vmem:[#allocation3_spill] sm:$0xff] %v3535_v56  ;;  %4036 = vst [vmem:[#allocation4_spill] sm:$0xff] %v3537_v57 }
 0x16f   : > { %v3539_v58 = vpop.f32.mrb[26].mxu0  ;;  %v3541_v59 = vpop.f32.mrb[26].mxu1 }
 0x170   : > { %4037 = vst [vmem:[#allocation5_spill] sm:$0xff] %v3539_v58  ;;  %4038 = vst [vmem:[#allocation6_spill] sm:$0xff] %v3541_v59  ;;  %v3543_v60 = vpop.f32.mrb[27].mxu0  ;;  %v3545_v61 = vpop.f32.mrb[27].mxu1 }
 0x171   : > { %4039 = vst [vmem:[#allocation7_spill] sm:$0xff] %v3543_v60  ;;  %4040 = vst [vmem:[#allocation8_spill] sm:$0xff] %v3545_v61 }
 0x173   : > { %v3547_v62 = vpop.f32.mrb[28].mxu0  ;;  %v3549_v63 = vpop.f32.mrb[28].mxu1 }
 0x174   : > { %4041 = vst [vmem:[#allocation9_spill] sm:$0xff] %v3547_v62  ;;  %4042 = vst [vmem:[#allocation10_spill] sm:$0xff] %v3549_v63  ;;  %v3551_v0 = vpop.f32.mrb[29].mxu0  ;;  %v3553_v1 = vpop.f32.mrb[29].mxu1  ;;  %v1941_v62 = vsel %vm848_vm0, %v1619_v9, -inf  ;;  %v3567_v63 = vsel %vm848_vm0, %v2711_v11, -inf }
 0x175   : > { %4043 = vst [vmem:[#allocation11_spill] sm:$0xff] %v3551_v0  ;;  %4044 = vst [vmem:[#allocation12_spill] sm:$0xff] %v3553_v1  ;;  %v3586_v9 = vsel %vm848_vm0, %v3453_v15, -inf  ;;  %v3611_v15 = vsel %vm848_vm0, %v3463_v20, -inf  ;;  %v3631_v20 = vsel %vm848_vm0, %v3475_v26, -inf  ;;  %v3651_v26 = vsel %vm848_vm0, %v3481_v29, -inf }
 0x176   : > { %v3670_v29 = vsel %vm848_vm0, %v3491_v34, -inf  ;;  %v3688_v34 = vsel %vm848_vm0, %v3493_v35, -inf  ;;  %v3702_v35 = vsel %vm848_vm0, %v3501_v39, -inf }
 0x177   : > { %v3569_v0 = vpop.f32.mrb[30].mxu0  ;;  %v3571_v1 = vpop.f32.mrb[30].mxu1 }
 0x178   : > { %4045 = vst [vmem:[#allocation13_spill] sm:$0xff] %v3569_v0  ;;  %4046 = vst [vmem:[#allocation14_spill] sm:$0xff] %v3571_v1  ;;  %v3588_v10 = vpop.f32.mrb[31].mxu0  ;;  %v3590_v11 = vpop.f32.mrb[31].mxu1  ;;  %v3594_v1 = vsel %vm848_vm0, %v3455_v16, -inf  ;;  %v3615_v16 = vsel %vm848_vm0, %v3467_v22, -inf }
 0x179   : > { %4047 = vst [vmem:[#allocation15_spill] sm:$0xff] %v3588_v10  ;;  %4048 = vst [vmem:[#allocation16_spill] sm:$0xff] %v3590_v11  ;;  %v3635_v22 = vsel %vm848_vm0, %v3473_v25, -inf  ;;  %v3647_v10 = vsel %vm848_vm0, %v3483_v30, -inf }
 0x17b   : > { %v2660_v23 = vpop.f32.mrb[32].mxu0  ;;  %v2756_v11 = vpop.f32.mrb[32].mxu1 }
 0x17c   : > { %v1946_v25 = vsel %vm848_vm0, %v2660_v23, -inf  ;;  %v1459_v0 = vpop.f32.mrb[33].mxu0  ;;  %v1779_v61 = vpop.f32.mrb[33].mxu1  ;;  %v3674_v23 = vsel %vm848_vm0, %v3489_v33, -inf  ;;  %v1950_v59 = vsel %vm848_vm0, %v2756_v11, -inf  ;;  %v3693_v11 = vsel %vm848_vm0, %v3499_v38, -inf }
 0x17d   : > { %v1947_v60 = vmax.f32 %v1945_v2, %v1946_v25  ;;  %v1939_v30 = vsel %vm848_vm0, %v1459_v0, -inf  ;;  %v3684_v0 = vsel %vm848_vm0, %v3495_v36, -inf }
 0x17e   : > { %v1940_v32 = vmax.f32 %v1938_v4, %v1939_v30  ;;  %v1943_v4 = vsel %vm848_vm0, %v1779_v61, -inf  ;;  %v3697_v30 = vsel %vm848_vm0, %v3497_v37, -inf }
 0x17f   : > { %v1949_v2 = vmax.f32 %v1947_v60, %v1948_v3  ;;  %v2663_v33 = vpop.f32.mrb[34].mxu0  ;;  %v2759_v25 = vpop.f32.mrb[34].mxu1  ;;  %v3709_v3 = vsel %vm848_vm0, %v3503_v40, -inf  ;;  %v3722_v40 = vsel %vm848_vm0, %v3507_v42, -inf }
 0x180   : > { %v1960_v36 = vsel %vm848_vm0, %v2663_v33, -inf  ;;  %v1942_v58 = vmax.f32 %v1940_v32, %v1941_v62  ;;  %v1469_v57 = vpop.f32.mrb[35].mxu0  ;;  %v1789_v56 = vpop.f32.mrb[35].mxu1  ;;  %v1964_v62 = vsel %vm848_vm0, %v2759_v25, -inf  ;;  %v3715_v32 = vsel %vm848_vm0, %v3505_v41, -inf  ;;  %4049 = vst [vmem:[#allocation17_spill] sm:$0xff] %v3722_v40 }
 0x181   : > { %v1951_v60 = vmax.f32 %v1949_v2, %v1950_v59  ;;  %v1961_v61 = vmax.f32 %v3563_v5, %v1960_v36  ;;  %v1953_v38 = vsel %vm848_vm0, %v1469_v57, -inf  ;;  %v1957_v57 = vsel %vm848_vm0, %v1789_v56, -inf }
 0x182   : > { %v1944_v37 = vmax.f32 %v1942_v58, %v1943_v4  ;;  %v1954_v33 = vmax.f32 %v3575_v6, %v1953_v38 }
 0x183   : > { %v2170_v39 = vadd.f32 %v3680_v31, %v1951_v60  ;;  %v1963_v59 = vmax.f32 %v1961_v61, %v3567_v63  ;;  %v2666_v5 = vpop.f32.mrb[36].mxu0  ;;  %v2762_v2 = vpop.f32.mrb[36].mxu1 }
 0x184   : > { %v2169_v41 = vadd.f32 %v3680_v31, %v1944_v37  ;;  %v1974_v58 = vsel %vm848_vm0, %v2666_v5, -inf  ;;  %v1956_v63 = vmax.f32 %v1954_v33, %v3582_v8  ;;  %v1479_v6 = vpop.f32.mrb[37].mxu0  ;;  %v1799_v4 = vpop.f32.mrb[37].mxu1  ;;  %v1978_v40 = vsel %vm848_vm0, %v2762_v2, -inf }
 0x185   : > { %v2202_v56 = vmax.f32 %v2170_v39, 0.0  ;;  %v1965_v25 = vmax.f32 %v1963_v59, %v1964_v62  ;;  %v1975_v42 = vmax.f32 %v3578_v7, %v1974_v58  ;;  %v1967_v36 = vsel %vm848_vm0, %v1479_v6, -inf }
 0x186   : > { %v2201_v60 = vmax.f32 %v2169_v41, 0.0  ;;  %v1958_v61 = vmax.f32 %v1956_v63, %v1957_v57  ;;  %v1968_v38 = vmax.f32 %v3594_v1, %v1967_v36  ;;  %v3738_v37 = vsel %vm848_vm0, %v3509_v43, -inf }
 0x187   : > { %2234 = vst.msk [vmem:[%s3727_s20 + $0x8] sm:$0xff] %vm848_vm0, %v2202_v56  ;;  %v2172_v8 = vadd.f32 %v3680_v31, %v1965_v25  ;;  %v1977_v33 = vmax.f32 %v1975_v42, %v3586_v9  ;;  %v2669_v62 = vpop.f32.mrb[38].mxu0  ;;  %v1971_v7 = vsel %vm848_vm0, %v1799_v4, -inf  ;;  %v2765_v39 = vpop.f32.mrb[38].mxu1  ;;  %v3747_v59 = vsel %vm848_vm0, %v3511_v44, -inf }
 0x188   : > { %2233 = vst.msk [vmem:[%s3727_s20] sm:$0xff] %vm848_vm0, %v2201_v60  ;;  %v2171_v43 = vadd.f32 %v3680_v31, %v1958_v61  ;;  %v1988_v1 = vsel %vm848_vm0, %v2669_v62, -inf  ;;  %v1970_v5 = vmax.f32 %v1968_v38, %v3602_v13  ;;  %v1489_v57 = vpop.f32.mrb[39].mxu0  ;;  %v1809_v2 = vpop.f32.mrb[39].mxu1  ;;  %v1992_v56 = vsel %vm848_vm0, %v2765_v39, -inf }
 0x189   : > { %v2204_v9 = vmax.f32 %v2172_v8, 0.0  ;;  %v1979_v41 = vmax.f32 %v1977_v33, %v1978_v40  ;;  %v1989_v58 = vmax.f32 %v3598_v12, %v1988_v1  ;;  %v1981_v63 = vsel %vm848_vm0, %v1489_v57, -inf }
 0x18a   : > { %v2203_v44 = vmax.f32 %v2171_v43, 0.0  ;;  %v1972_v6 = vmax.f32 %v1970_v5, %v1971_v7  ;;  %v1982_v4 = vmax.f32 %v3611_v15, %v1981_v63  ;;  %v3760_v25 = vsel %vm848_vm0, %v3513_v45, -inf }
 0x18b   : > { %2236 = vst.msk [vmem:[%s3727_s20 + $0x18] sm:$0xff] %vm848_vm0, %v2204_v9  ;;  %v2174_v13 = vadd.f32 %v3680_v31, %v1979_v41  ;;  %v1991_v40 = vmax.f32 %v1989_v58, %v3606_v14  ;;  %v2672_v42 = vpop.f32.mrb[40].mxu0  ;;  %v1985_v12 = vsel %vm848_vm0, %v1809_v2, -inf  ;;  %v2768_v36 = vpop.f32.mrb[40].mxu1  ;;  %v3769_v60 = vsel %vm848_vm0, %v3515_v46, -inf }
 0x18c   : > { %2235 = vst.msk [vmem:[%s3727_s20 + $0x10] sm:$0xff] %vm848_vm0, %v2203_v44  ;;  %v2173_v45 = vadd.f32 %v3680_v31, %v1972_v6  ;;  %v2002_v15 = vsel %vm848_vm0, %v2672_v42, -inf  ;;  %v1984_v61 = vmax.f32 %v1982_v4, %v3619_v18  ;;  %v1499_v38 = vpop.f32.mrb[41].mxu0  ;;  %v1819_v8 = vpop.f32.mrb[41].mxu1  ;;  %v2006_v1 = vsel %vm848_vm0, %v2768_v36, -inf }
 0x18d   : > { %v2206_v14 = vmax.f32 %v2174_v13, 0.0  ;;  %v1993_v33 = vmax.f32 %v1991_v40, %v1992_v56  ;;  %v2003_v62 = vmax.f32 %v3615_v16, %v2002_v15  ;;  %v1995_v7 = vsel %vm848_vm0, %v1499_v38, -inf }
 0x18e   : > { %v2205_v46 = vmax.f32 %v2173_v45, 0.0  ;;  %v1986_v39 = vmax.f32 %v1984_v61, %v1985_v12  ;;  %v1996_v43 = vmax.f32 %v3627_v19, %v1995_v7  ;;  %v3782_v5 = vsel %vm848_vm0, %v3517_v47, -inf }
 0x18f   : > { %2238 = vst.msk [vmem:[%s3727_s20 + $0x28] sm:$0xff] %vm848_vm0, %v2206_v14  ;;  %v2176_v18 = vadd.f32 %v3680_v31, %v1993_v33  ;;  %v2005_v57 = vmax.f32 %v2003_v62, %v3623_v17  ;;  %v2675_v2 = vpop.f32.mrb[42].mxu0  ;;  %v1999_v16 = vsel %vm848_vm0, %v1819_v8, -inf  ;;  %v2771_v9 = vpop.f32.mrb[42].mxu1  ;;  %v3791_v41 = vsel %vm848_vm0, %v3519_v48, -inf }
 0x190   : > { %2237 = vst.msk [vmem:[%s3727_s20 + $0x20] sm:$0xff] %vm848_vm0, %v2205_v46  ;;  %v2175_v47 = vadd.f32 %v3680_v31, %v1986_v39  ;;  %v2016_v19 = vsel %vm848_vm0, %v2675_v2, -inf  ;;  %v1998_v58 = vmax.f32 %v1996_v43, %v3635_v22  ;;  %v1509_v63 = vpop.f32.mrb[43].mxu0  ;;  %v1829_v44 = vpop.f32.mrb[43].mxu1  ;;  %v2020_v42 = vsel %vm848_vm0, %v2771_v9, -inf }
 0x191   : > { %v2208_v17 = vmax.f32 %v2176_v18, 0.0  ;;  %v2007_v6 = vmax.f32 %v2005_v57, %v2006_v1  ;;  %v2017_v4 = vmax.f32 %v3631_v20, %v2016_v19  ;;  %v2009_v56 = vsel %vm848_vm0, %v1509_v63, -inf }
 0x192   : > { %v2207_v48 = vmax.f32 %v2175_v47, 0.0  ;;  %v2000_v13 = vmax.f32 %v1998_v58, %v1999_v16  ;;  %v2010_v40 = vmax.f32 %v3643_v24, %v2009_v56  ;;  %v3804_v12 = vsel %vm848_vm0, %v3521_v49, -inf }
 0x193   : > { %2240 = vst.msk [vmem:[%s3727_s20 + $0x38] sm:$0xff] %vm848_vm0, %v2208_v17  ;;  %v2178_v22 = vadd.f32 %v3680_v31, %v2007_v6  ;;  %v2019_v36 = vmax.f32 %v2017_v4, %v3639_v21  ;;  %v2678_v45 = vpop.f32.mrb[44].mxu0  ;;  %v2013_v20 = vsel %vm848_vm0, %v1829_v44, -inf  ;;  %v2774_v15 = vpop.f32.mrb[44].mxu1  ;;  %v3813_v61 = vsel %vm848_vm0, %v3523_v50, -inf }
 0x194   : > { %2239 = vst.msk [vmem:[%s3727_s20 + $0x30] sm:$0xff] %vm848_vm0, %v2207_v48  ;;  %v2177_v49 = vadd.f32 %v3680_v31, %v2000_v13  ;;  %v2030_v24 = vsel %vm848_vm0, %v2678_v45, -inf  ;;  %v2012_v38 = vmax.f32 %v2010_v40, %v3651_v26  ;;  %v1519_v8 = vpop.f32.mrb[45].mxu0  ;;  %v1839_v14 = vpop.f32.mrb[45].mxu1  ;;  %v2034_v43 = vsel %vm848_vm0, %v2774_v15, -inf }
 0x195   : > { %v2210_v21 = vmax.f32 %v2178_v22, 0.0  ;;  %v2021_v33 = vmax.f32 %v2019_v36, %v2020_v42  ;;  %v2031_v62 = vmax.f32 %v3647_v10, %v2030_v24  ;;  %v2023_v7 = vsel %vm848_vm0, %v1519_v8, -inf }
 0x196   : > { %v2209_v50 = vmax.f32 %v2177_v49, 0.0  ;;  %v2014_v46 = vmax.f32 %v2012_v38, %v2013_v20  ;;  %v2024_v39 = vmax.f32 %v3656_v27, %v2023_v7  ;;  %v3826_v1 = vsel %vm848_vm0, %v3525_v51, -inf  ;;  %v4050_v7 = vld [vmem:[#allocation3_spill] sm:$0xff] }
 0x197   : > { %2242 = vst.msk [vmem:[%s3727_s20 + $0x48] sm:$0xff] %vm848_vm0, %v2210_v21  ;;  %v2180_v26 = vadd.f32 %v3680_v31, %v2021_v33  ;;  %v2033_v18 = vmax.f32 %v2031_v62, %v3660_v28  ;;  %v2681_v57 = vpop.f32.mrb[46].mxu0  ;;  %v2027_v10 = vsel %vm848_vm0, %v1839_v14, -inf  ;;  %v2777_v2 = vpop.f32.mrb[46].mxu1  ;;  %v3835_v16 = vsel %vm848_vm0, %v3527_v52, -inf }
 0x198   : > { %2241 = vst.msk [vmem:[%s3727_s20 + $0x40] sm:$0xff] %vm848_vm0, %v2209_v50  ;;  %v2179_v51 = vadd.f32 %v3680_v31, %v2014_v46  ;;  %v2044_v27 = vsel %vm848_vm0, %v2681_v57, -inf  ;;  %v2026_v9 = vmax.f32 %v2024_v39, %v3674_v23  ;;  %v1529_v47 = vpop.f32.mrb[47].mxu0  ;;  %v1849_v19 = vpop.f32.mrb[47].mxu1  ;;  %v2048_v4 = vsel %vm848_vm0, %v2777_v2, -inf }
 0x199   : > { %v2212_v28 = vmax.f32 %v2180_v26, 0.0  ;;  %v2035_v58 = vmax.f32 %v2033_v18, %v2034_v43  ;;  %v2045_v63 = vmax.f32 %v3670_v29, %v2044_v27  ;;  %v2037_v44 = vsel %vm848_vm0, %v1529_v47, -inf  ;;  %v4051_v18 = vld [vmem:[#allocation17_spill] sm:$0xff]  ;;  %v4052_v47 = vld [vmem:[#allocation4_spill] sm:$0xff] }
 0x19a   : > { %v2211_v52 = vmax.f32 %v2179_v51, 0.0  ;;  %v2028_v17 = vmax.f32 %v2026_v9, %v2027_v10  ;;  %v2038_v6 = vmax.f32 %v3684_v0, %v2037_v44  ;;  %v3848_v56 = vsel %vm848_vm0, %v3529_v53, -inf }
 0x19b   : > { %2244 = vst.msk [vmem:[%s3727_s20 + $0x58] sm:$0xff] %vm848_vm0, %v2212_v28  ;;  %v2182_v23 = vadd.f32 %v3680_v31, %v2035_v58  ;;  %v2047_v48 = vmax.f32 %v2045_v63, %v3688_v34  ;;  %v2684_v13 = vpop.f32.mrb[48].mxu0  ;;  %v2041_v29 = vsel %vm848_vm0, %v1849_v19, -inf  ;;  %v2780_v40 = vpop.f32.mrb[48].mxu1  ;;  %v3857_v42 = vsel %vm848_vm0, %v3531_v54, -inf }
 0x19c   : > { %2243 = vst.msk [vmem:[%s3727_s20 + $0x50] sm:$0xff] %vm848_vm0, %v2211_v52  ;;  %v2181_v53 = vadd.f32 %v3680_v31, %v2028_v17  ;;  %v2058_v0 = vsel %vm848_vm0, %v2684_v13, -inf  ;;  %v2040_v22 = vmax.f32 %v2038_v6, %v3697_v30  ;;  %v1539_v36 = vpop.f32.mrb[49].mxu0  ;;  %v1859_v45 = vpop.f32.mrb[49].mxu1  ;;  %v2062_v8 = vsel %vm848_vm0, %v2780_v40, -inf  ;;  %v4053_v52 = vld [vmem:[#allocation5_spill] sm:$0xff] }
 0x19d   : > { %v2214_v34 = vmax.f32 %v2182_v23, 0.0  ;;  %v2049_v20 = vmax.f32 %v2047_v48, %v2048_v4  ;;  %v2059_v15 = vmax.f32 %v3693_v11, %v2058_v0  ;;  %v2051_v49 = vsel %vm848_vm0, %v1539_v36, -inf }
 0x19e   : > { %v2213_v54 = vmax.f32 %v2181_v53, 0.0  ;;  %v2042_v24 = vmax.f32 %v2040_v22, %v2041_v29  ;;  %v2052_v38 = vmax.f32 %v3709_v3, %v2051_v49  ;;  %v3870_v14 = vsel %vm848_vm0, %v3533_v55, -inf }
 0x19f   : > { %2246 = vst.msk [vmem:[%s3727_s20 + $0x68] sm:$0xff] %vm848_vm0, %v2214_v34  ;;  %v2184_v30 = vadd.f32 %v3680_v31, %v2049_v20  ;;  %v2061_v21 = vmax.f32 %v2059_v15, %v3702_v35  ;;  %v2687_v33 = vpop.f32.mrb[50].mxu0  ;;  %v2055_v11 = vsel %vm848_vm0, %v1859_v45, -inf  ;;  %v2783_v62 = vpop.f32.mrb[50].mxu1  ;;  %v3879_v50 = vsel %vm848_vm0, %v4050_v7, -inf  ;;  %v4054_v45 = vld [vmem:[#allocation6_spill] sm:$0xff] }
 0x1a0   : > { %2245 = vst.msk [vmem:[%s3727_s20 + $0x60] sm:$0xff] %vm848_vm0, %v2213_v54  ;;  %v2183_v55 = vadd.f32 %v3680_v31, %v2042_v24  ;;  %v2072_v3 = vsel %vm848_vm0, %v2687_v33, -inf  ;;  %v2054_v46 = vmax.f32 %v2052_v38, %v3715_v32  ;;  %v1549_v39 = vpop.f32.mrb[51].mxu0  ;;  %v1869_v43 = vpop.f32.mrb[51].mxu1  ;;  %v2076_v9 = vsel %vm848_vm0, %v2783_v62, -inf  ;;  %v4055_v54 = vld [vmem:[#allocation7_spill] sm:$0xff] }
 0x1a1   : > { %v2216_v35 = vmax.f32 %v2184_v30, 0.0  ;;  %v2063_v26 = vmax.f32 %v2061_v21, %v2062_v8  ;;  %v2073_v57 = vmax.f32 %v4051_v18, %v2072_v3  ;;  %v2065_v10 = vsel %vm848_vm0, %v1549_v39, -inf  ;;  %v4056_v39 = vld [vmem:[#allocation8_spill] sm:$0xff] }
 0x1a2   : > { %v2215_v2 = vmax.f32 %v2183_v55, 0.0  ;;  %v2056_v51 = vmax.f32 %v2054_v46, %v2055_v11  ;;  %v2066_v27 = vmax.f32 %v3747_v59, %v2065_v10  ;;  %v3892_v19 = vsel %vm848_vm0, %v4052_v47, -inf }
 0x1a3   : > { %2248 = vst.msk [vmem:[%s3727_s20 + $0x78] sm:$0xff] %vm848_vm0, %v2216_v35  ;;  %v2186_v32 = vadd.f32 %v3680_v31, %v2063_v26  ;;  %v2075_v28 = vmax.f32 %v2073_v57, %v3738_v37  ;;  %v2690_v58 = vpop.f32.mrb[52].mxu0  ;;  %v2069_v63 = vsel %vm848_vm0, %v1869_v43, -inf  ;;  %v2786_v44 = vpop.f32.mrb[52].mxu1  ;;  %v3901_v17 = vsel %vm848_vm0, %v4053_v52, -inf  ;;  %v4057_v57 = vld [vmem:[#allocation9_spill] sm:$0xff] }
 0x1a4   : > { %2247 = vst.msk [vmem:[%s3727_s20 + $0x70] sm:$0xff] %vm848_vm0, %v2215_v2  ;;  %v2185_v59 = vadd.f32 %v3680_v31, %v2056_v51  ;;  %v2086_v6 = vsel %vm848_vm0, %v2690_v58, -inf  ;;  %v2068_v4 = vmax.f32 %v2066_v27, %v3760_v25  ;;  %v1559_v23 = vpop.f32.mrb[53].mxu0  ;;  %v1879_v48 = vpop.f32.mrb[53].mxu1  ;;  %v2090_v36 = vsel %vm848_vm0, %v2786_v44, -inf }
 0x1a5   : > { %v2218_v37 = vmax.f32 %v2186_v32, 0.0  ;;  %v2077_v13 = vmax.f32 %v2075_v28, %v2076_v9  ;;  %v2087_v29 = vmax.f32 %v3769_v60, %v2086_v6  ;;  %v2079_v40 = vsel %vm848_vm0, %v1559_v23, -inf }
 0x1a6   : > { %v2217_v53 = vmax.f32 %v2185_v59, 0.0  ;;  %v2070_v0 = vmax.f32 %v2068_v4, %v2069_v63  ;;  %v2080_v22 = vmax.f32 %v3791_v41, %v2079_v40  ;;  %v3914_v34 = vsel %vm848_vm0, %v4054_v45, -inf  ;;  %v4058_v59 = vld [vmem:[#allocation10_spill] sm:$0xff] }
 0x1a7   : > { %2250 = vst.msk [vmem:[%s3727_s20 + $0x88] sm:$0xff] %vm848_vm0, %v2218_v37  ;;  %v2188_v25 = vadd.f32 %v3680_v31, %v2077_v13  ;;  %v2089_v20 = vmax.f32 %v2087_v29, %v3782_v5  ;;  %v2693_v15 = vpop.f32.mrb[54].mxu0  ;;  %v2083_v60 = vsel %vm848_vm0, %v1879_v48, -inf  ;;  %v2789_v49 = vpop.f32.mrb[54].mxu1  ;;  %v3923_v24 = vsel %vm848_vm0, %v4055_v54, -inf  ;;  %v4059_v37 = vld [vmem:[#allocation11_spill] sm:$0xff] }
 0x1a8   : > { %2249 = vst.msk [vmem:[%s3727_s20 + $0x80] sm:$0xff] %vm848_vm0, %v2217_v53  ;;  %v2187_v41 = vadd.f32 %v3680_v31, %v2070_v0  ;;  %v2100_v38 = vsel %vm848_vm0, %v2693_v15, -inf  ;;  %v2082_v8 = vmax.f32 %v2080_v22, %v3804_v12  ;;  %v1569_v30 = vpop.f32.mrb[55].mxu0  ;;  %v1889_v21 = vpop.f32.mrb[55].mxu1  ;;  %v2104_v46 = vsel %vm848_vm0, %v2789_v49, -inf  ;;  %v4060_v49 = vld [vmem:[#allocation12_spill] sm:$0xff] }
 0x1a9   : > { %v2220_v5 = vmax.f32 %v2188_v25, 0.0  ;;  %v2091_v33 = vmax.f32 %v2089_v20, %v2090_v36  ;;  %v2101_v11 = vmax.f32 %v3813_v61, %v2100_v38  ;;  %v2093_v62 = vsel %vm848_vm0, %v1569_v30, -inf  ;;  %v4061_v30 = vld [vmem:[#allocation13_spill] sm:$0xff] }
 0x1aa   : > { %v2219_v7 = vmax.f32 %v2187_v41, 0.0  ;;  %v2084_v55 = vmax.f32 %v2082_v8, %v2083_v60  ;;  %v2094_v3 = vmax.f32 %v3835_v16, %v2093_v62  ;;  %v2123_v43 = vsel %vm848_vm0, %v4056_v39, -inf }
 0x1ab   : > { %2252 = vst.msk [vmem:[%s3727_s20 + $0x98] sm:$0xff] %vm848_vm0, %v2220_v5  ;;  %v2190_v12 = vadd.f32 %v3680_v31, %v2091_v33  ;;  %v2103_v35 = vmax.f32 %v2101_v11, %v3826_v1  ;;  %v2696_v26 = vpop.f32.mrb[56].mxu0  ;;  %v2097_v61 = vsel %vm848_vm0, %v1889_v21, -inf  ;;  %v2792_v18 = vpop.f32.mrb[56].mxu1  ;;  %v3943_v10 = vsel %vm848_vm0, %v4057_v57, -inf }
 0x1ac   : > { %2251 = vst.msk [vmem:[%s3727_s20 + $0x90] sm:$0xff] %vm848_vm0, %v2219_v7  ;;  %v2189_v16 = vadd.f32 %v3680_v31, %v2084_v55  ;;  %v2114_v2 = vsel %vm848_vm0, %v2696_v26, -inf  ;;  %v2096_v51 = vmax.f32 %v2094_v3, %v3848_v56  ;;  %v1579_v27 = vpop.f32.mrb[57].mxu0  ;;  %v1899_v9 = vpop.f32.mrb[57].mxu1  ;;  %v2118_v52 = vsel %vm848_vm0, %v2792_v18, -inf  ;;  %v4062_v26 = vld [vmem:[#allocation14_spill] sm:$0xff] }
 0x1ad   : > { %v2222_v1 = vmax.f32 %v2190_v12, 0.0  ;;  %v2105_v47 = vmax.f32 %v2103_v35, %v2104_v46  ;;  %v2115_v32 = vmax.f32 %v3857_v42, %v2114_v2  ;;  %v2107_v28 = vsel %vm848_vm0, %v1579_v27, -inf }
 0x1ae   : > { %v2221_v58 = vmax.f32 %v2189_v16, 0.0  ;;  %v2098_v63 = vmax.f32 %v2096_v51, %v2097_v61  ;;  %v2108_v44 = vmax.f32 %v3879_v50, %v2107_v28  ;;  %v2144_v6 = vsel %vm848_vm0, %v4058_v59, -inf }
 0x1af   : > { %2254 = vst.msk [vmem:[%s3727_s20 + $0xa8] sm:$0xff] %vm848_vm0, %v2222_v1  ;;  %v2192_v56 = vadd.f32 %v3680_v31, %v2105_v47  ;;  %v2117_v4 = vmax.f32 %v2115_v32, %v3870_v14  ;;  %v2699_v23 = vpop.f32.mrb[58].mxu0  ;;  %v2111_v42 = vsel %vm848_vm0, %v1899_v9, -inf  ;;  %v2795_v48 = vpop.f32.mrb[58].mxu1  ;;  %v2134_v13 = vsel %vm848_vm0, %v4059_v37, -inf }
 0x1b0   : > { %2253 = vst.msk [vmem:[%s3727_s20 + $0xa0] sm:$0xff] %vm848_vm0, %v2221_v58  ;;  %v2191_v50 = vadd.f32 %v3680_v31, %v2098_v63  ;;  %v2128_v29 = vsel %vm848_vm0, %v2699_v23, -inf  ;;  %v2110_v40 = vmax.f32 %v2108_v44, %v3892_v19  ;;  %v1589_v53 = vpop.f32.mrb[59].mxu0  ;;  %v1909_v0 = vpop.f32.mrb[59].mxu1  ;;  %v2132_v60 = vsel %vm848_vm0, %v2795_v48, -inf }
 0x1b1   : > { %v2224_v22 = vmax.f32 %v2192_v56, 0.0  ;;  %v2119_v14 = vmax.f32 %v2117_v4, %v2118_v52  ;;  %v2129_v36 = vmax.f32 %v3901_v17, %v2128_v29  ;;  %v2121_v45 = vsel %vm848_vm0, %v1589_v53, -inf  ;;  %v4064_v4 = vld [vmem:[#allocation16_spill] sm:$0xff] }
 0x1b2   : > { %v2223_v25 = vmax.f32 %v2191_v50, 0.0  ;;  %v2112_v20 = vmax.f32 %v2110_v40, %v2111_v42  ;;  %v2122_v15 = vmax.f32 %v3923_v24, %v2121_v45  ;;  %v2137_v54 = vsel %vm848_vm0, %v4060_v49, -inf }
 0x1b3   : > { %2256 = vst.msk [vmem:[%s3727_s20 + $0xb8] sm:$0xff] %vm848_vm0, %v2224_v22  ;;  %v2194_v19 = vadd.f32 %v3680_v31, %v2119_v14  ;;  %v2131_v41 = vmax.f32 %v2129_v36, %v3914_v34  ;;  %v2702_v38 = vpop.f32.mrb[60].mxu0  ;;  %v2125_v17 = vsel %vm848_vm0, %v1909_v0, -inf  ;;  %v2798_v8 = vpop.f32.mrb[60].mxu1  ;;  %v2155_v21 = vsel %vm848_vm0, %v4061_v30, -inf }
 0x1b4   : > { %2255 = vst.msk [vmem:[%s3727_s20 + $0xb0] sm:$0xff] %vm848_vm0, %v2223_v25  ;;  %v2193_v24 = vadd.f32 %v3680_v31, %v2112_v20  ;;  %v2142_v5 = vsel %vm848_vm0, %v2702_v38, -inf  ;;  %v2124_v33 = vmax.f32 %v2122_v15, %v2123_v43  ;;  %v1599_v11 = vpop.f32.mrb[61].mxu0  ;;  %v1919_v62 = vpop.f32.mrb[61].mxu1  ;;  %v2146_v35 = vsel %vm848_vm0, %v2798_v8, -inf }
 0x1b5   : > { %v2226_v7 = vmax.f32 %v2194_v19, 0.0  ;;  %v2133_v34 = vmax.f32 %v2131_v41, %v2132_v60  ;;  %v2143_v55 = vmax.f32 %v3943_v10, %v2142_v5  ;;  %v2135_v3 = vsel %vm848_vm0, %v1599_v11, -inf  ;;  %v4063_v10 = vld [vmem:[#allocation15_spill] sm:$0xff] }
 0x1b6   : > { %v2225_v46 = vmax.f32 %v2193_v24, 0.0  ;;  %v2126_v39 = vmax.f32 %v2124_v33, %v2125_v17  ;;  %v2136_v12 = vmax.f32 %v2134_v13, %v2135_v3  ;;  %v2158_v61 = vsel %vm848_vm0, %v4062_v26, -inf }
 0x1b7   : > { %2258 = vst.msk [vmem:[%s3727_s20 + $0xc8] sm:$0xff] %vm848_vm0, %v2226_v7  ;;  %v2196_v43 = vadd.f32 %v3680_v31, %v2133_v34  ;;  %v2145_v18 = vmax.f32 %v2143_v55, %v2144_v6  ;;  %v2705_v57 = vpop.f32.mrb[62].mxu0  ;;  %v2139_v16 = vsel %vm848_vm0, %v1919_v62, -inf  ;;  %v2801_v2 = vpop.f32.mrb[62].mxu1  ;;  %v2148_v51 = vsel %vm848_vm0, %v4063_v10, -inf }
 0x1b8   : > { %2257 = vst.msk [vmem:[%s3727_s20 + $0xc0] sm:$0xff] %vm848_vm0, %v2225_v46  ;;  %v2195_v27 = vadd.f32 %v3680_v31, %v2126_v39  ;;  %v2156_v9 = vsel %vm848_vm0, %v2705_v57, -inf  ;;  %v2138_v1 = vmax.f32 %v2136_v12, %v2137_v54  ;;  %v1609_v47 = vpop.f32.mrb[63].mxu0  ;;  %v1929_v32 = vpop.f32.mrb[63].mxu1  ;;  %v2160_v56 = vsel %vm848_vm0, %v2801_v2, -inf }
 0x1b9   : > { %v2228_v28 = vmax.f32 %v2196_v43, 0.0  ;;  %v2147_v58 = vmax.f32 %v2145_v18, %v2146_v35  ;;  %v2157_v63 = vmax.f32 %v2155_v21, %v2156_v9  ;;  %v2149_v44 = vsel %vm848_vm0, %v1609_v47, -inf }
 0x1ba   : > { %v2227_v52 = vmax.f32 %v2195_v27, 0.0  ;;  %v2140_v59 = vmax.f32 %v2138_v1, %v2139_v16  ;;  %v2150_v6 = vmax.f32 %v2148_v51, %v2149_v44  ;;  %v2151_v23 = vsel %vm848_vm0, %v4064_v4, -inf }
 0x1bb   : > { %2260 = vst.msk [vmem:[%s3727_s20 + $0xd8] sm:$0xff] %vm848_vm0, %v2228_v28  ;;  %v2198_v42 = vadd.f32 %v3680_v31, %v2147_v58  ;;  %v2159_v48 = vmax.f32 %v2157_v63, %v2158_v61  ;;  %v2153_v37 = vsel %vm848_vm0, %v1929_v32, -inf }
 0x1bc   : > { %2259 = vst.msk [vmem:[%s3727_s20 + $0xd0] sm:$0xff] %vm848_vm0, %v2227_v52  ;;  %v2197_v13 = vadd.f32 %v3680_v31, %v2140_v59  ;;  %v2152_v50 = vmax.f32 %v2150_v6, %v2151_v23 }
 0x1bd   : > { %v2230_v29 = vmax.f32 %v2198_v42, 0.0  ;;  %v2161_v40 = vmax.f32 %v2159_v48, %v2160_v56 }
 0x1be   : > { %v2229_v53 = vmax.f32 %v2197_v13, 0.0  ;;  %v2154_v0 = vmax.f32 %v2152_v50, %v2153_v37 }
 0x1bf   : > { %2262 = vst.msk [vmem:[%s3727_s20 + $0xe8] sm:$0xff] %vm848_vm0, %v2230_v29  ;;  %v2200_v22 = vadd.f32 %v3680_v31, %v2161_v40 }
 0x1c0   : > { %2261 = vst.msk [vmem:[%s3727_s20 + $0xe0] sm:$0xff] %vm848_vm0, %v2229_v53  ;;  %v2199_v14 = vadd.f32 %v3680_v31, %v2154_v0 }
 0x1c1   : > { %v2232_v36 = vmax.f32 %v2200_v22, 0.0 }
 0x1c2   : > { %v2231_v45 = vmax.f32 %v2199_v14, 0.0 }
 0x1c3   : > { %2264 = vst.msk [vmem:[%s3727_s20 + $0xf8] sm:$0xff] %vm848_vm0, %v2232_v36 }
 0x1c4   : > { %2263 = vst.msk [vmem:[%s3727_s20 + $0xf0] sm:$0xff] %vm848_vm0, %v2231_v45 }
 0x1c5 PF: > { %p10_p9 = scmp.ge.s32.totalorder %s2899_s16, 4   ;;  %s4065_s12 = smov %s2856_s13 }
 0x1c6   : > { %s4066_s13 = smov %s2908_s19  ;;  %s4067_s14 = smov %s2899_s16 }
 0x1c7   :  { %12 = sbr.rel (!%p10_p9) target bundleno = 2 (0x2), region = 105 }

// kernel: traffic_light_cnn_forward.4
= control target key start
LH: loop header
LB: loop body
LE: loop exit
PB: predicated region body
PF: predicated region fallthrough
CT: control target
= control target key end

     0   :  { %s1511_s12 = smov 0   ;;  %s1513_s13 = smov 0   ;;  %s2143_s0 = inlined_call_operand.vmem [shape: f32[4,128,288], index: 0, kind: input, shape index: {}]   ;;  %s2144_s1 = inlined_call_operand.vmem [shape: f32[288,64], index: 1, kind: input, shape index: {}]   ;;  %s2145_s2 = inlined_call_operand.vmem [shape: f32[1,64], index: 2, kind: input, shape index: {}]   ;;  %s2146_s3 = inlined_call_operand.vmem [shape: f32[128,64], index: 3, kind: output, shape index: {}]  }
   0x1   :  { %s1515_s14 = smov 0  }
   0x2 LB: > { %s1213_s15 = sadd.s32 4294967295, %s1488_s14   ;;  %s1528_s16 = sadd.s32 1, %s1488_s14   ;;  %s1488_s14 = sphi %s1515_s14, %s2149_s14   ;;  %s1484_s13 = sphi %s1513_s13, %s2148_s13   ;;  %s1480_s12 = sphi %s1511_s12, %s2147_s12  }
   0x3   : > { %s17_s17 = ssub.s32 %s1488_s14, %s1528_s16  ;;  %s20_s18 = sadd.s32 1, %s1484_s13 }
   0x4   : > { %p18_p0 = scmp.eq.s32.totalorder %s17_s17, 0  ;;  %p27_p1 = scmp.ne.s32.totalorder %s1484_s13, %s1480_s12 }
   0x5   : > { %p28_p2 = scmp.eq.s32.totalorder %s1488_s14, 0  ;;  %p1216_p4 = scmp.ge.s32.totalorder %s1488_s14, 2 }
   0x6   : > { %s1537_s19 = scalar_select %p18_p0, %s1484_s13, %s20_s18  }
   0x7   : > { %p29_p3 = por %p28_p2, %p27_p1  ;;  %127 = sbr.rel (%p1216_p4) target bundleno = 67 (0x43), region = 24 }
   0xe   : > { %130 = sbr.rel (!%p29_p3) target bundleno = 67 (0x43), region = 28  ;;  %s132_s20 = sand.u32 (%p29_p3), 1, %s1484_s13  }
   0xf   : > { %s1439_s21 = smul.u32 (%p29_p3), 192, %s1488_s14 }
  0x10   : > { %s1438_s22 = smul.u32 (%p29_p3), 768, %s132_s20 }
  0x11   : > { %s1545_s25 = scalar_lea.vmem (%p29_p3), %s2143_s0, %s1439_s21 }
  0x12   : > { %v151_v0 = vld [vmem:[%s1545_s25] sm:$0xff] (%p29_p3)  ;;  %v153_v1 = vld [vmem:[%s1545_s25 + $0x8] sm:$0xff] (%p29_p3)  ;;  %v155_v2 = vld [vmem:[%s1545_s25 + $0x10] sm:$0xff] (%p29_p3)  ;;  %s1550_s26 = scalar_lea.vmem (%p29_p3), [#allocation2], %s1438_s22 }
  0x13   : > { %152 = vst [vmem:[%s1550_s26] sm:$0xff] (%p29_p3), %v151_v0  ;;  %154 = vst [vmem:[%s1550_s26 + $0x8] sm:$0xff] (%p29_p3), %v153_v1  ;;  %v157_v3 = vld [vmem:[%s1545_s25 + $0x18] sm:$0xff] (%p29_p3)  ;;  %v159_v4 = vld [vmem:[%s1545_s25 + $0x20] sm:$0xff] (%p29_p3) }
  0x14   : > { %156 = vst [vmem:[%s1550_s26 + $0x10] sm:$0xff] (%p29_p3), %v155_v2  ;;  %v161_v5 = vld [vmem:[%s1545_s25 + $0x28] sm:$0xff] (%p29_p3)  ;;  %158 = vst [vmem:[%s1550_s26 + $0x18] sm:$0xff] (%p29_p3), %v157_v3  ;;  %v163_v6 = vld [vmem:[%s1545_s25 + $0x30] sm:$0xff] (%p29_p3) }
  0x15   : > { %160 = vst [vmem:[%s1550_s26 + $0x20] sm:$0xff] %v159_v4  ;;  %162 = vst [vmem:[%s1550_s26 + $0x28] sm:$0xff] %v161_v5  ;;  %v165_v7 = vld [vmem:[%s1545_s25 + $0x38] sm:$0xff]  ;;  %v167_v8 = vld [vmem:[%s1545_s25 + $0x40] sm:$0xff] }
  0x16   : > { %164 = vst [vmem:[%s1550_s26 + $0x30] sm:$0xff] %v163_v6  ;;  %166 = vst [vmem:[%s1550_s26 + $0x38] sm:$0xff] %v165_v7  ;;  %v169_v9 = vld [vmem:[%s1545_s25 + $0x48] sm:$0xff]  ;;  %v171_v10 = vld [vmem:[%s1545_s25 + $0x50] sm:$0xff] }
  0x17   : > { %168 = vst [vmem:[%s1550_s26 + $0x40] sm:$0xff] %v167_v8  ;;  %v173_v11 = vld [vmem:[%s1545_s25 + $0x58] sm:$0xff]  ;;  %170 = vst [vmem:[%s1550_s26 + $0x48] sm:$0xff] %v169_v9  ;;  %v175_v12 = vld [vmem:[%s1545_s25 + $0x60] sm:$0xff] }
  0x18   : > { %172 = vst [vmem:[%s1550_s26 + $0x50] sm:$0xff] %v171_v10  ;;  %174 = vst [vmem:[%s1550_s26 + $0x58] sm:$0xff] %v173_v11  ;;  %v177_v13 = vld [vmem:[%s1545_s25 + $0x68] sm:$0xff]  ;;  %v179_v14 = vld [vmem:[%s1545_s25 + $0x70] sm:$0xff] }
  0x19   : > { %176 = vst [vmem:[%s1550_s26 + $0x60] sm:$0xff] %v175_v12  ;;  %178 = vst [vmem:[%s1550_s26 + $0x68] sm:$0xff] %v177_v13  ;;  %v181_v15 = vld [vmem:[%s1545_s25 + $0x78] sm:$0xff]  ;;  %v183_v16 = vld [vmem:[%s1545_s25 + $0x80] sm:$0xff] }
  0x1a   : > { %180 = vst [vmem:[%s1550_s26 + $0x70] sm:$0xff] %v179_v14  ;;  %v185_v17 = vld [vmem:[%s1545_s25 + $0x88] sm:$0xff]  ;;  %182 = vst [vmem:[%s1550_s26 + $0x78] sm:$0xff] %v181_v15  ;;  %v187_v18 = vld [vmem:[%s1545_s25 + $0x90] sm:$0xff] }
  0x1b   : > { %184 = vst [vmem:[%s1550_s26 + $0x80] sm:$0xff] %v183_v16  ;;  %186 = vst [vmem:[%s1550_s26 + $0x88] sm:$0xff] %v185_v17  ;;  %v189_v19 = vld [vmem:[%s1545_s25 + $0x98] sm:$0xff]  ;;  %v191_v20 = vld [vmem:[%s1545_s25 + $0xa0] sm:$0xff] }
  0x1c   : > { %188 = vst [vmem:[%s1550_s26 + $0x90] sm:$0xff] %v187_v18  ;;  %190 = vst [vmem:[%s1550_s26 + $0x98] sm:$0xff] %v189_v19  ;;  %v193_v21 = vld [vmem:[%s1545_s25 + $0xa8] sm:$0xff]  ;;  %v195_v22 = vld [vmem:[%s1545_s25 + $0xb0] sm:$0xff] }
  0x1d   : > { %192 = vst [vmem:[%s1550_s26 + $0xa0] sm:$0xff] %v191_v20  ;;  %v197_v23 = vld [vmem:[%s1545_s25 + $0xb8] sm:$0xff]  ;;  %194 = vst [vmem:[%s1550_s26 + $0xa8] sm:$0xff] %v193_v21  ;;  %v199_v24 = vld [vmem:[%s1545_s25 + $0x180] sm:$0xff] }
  0x1e   : > { %196 = vst [vmem:[%s1550_s26 + $0xb0] sm:$0xff] %v195_v22  ;;  %198 = vst [vmem:[%s1550_s26 + $0xb8] sm:$0xff] %v197_v23  ;;  %v201_v25 = vld [vmem:[%s1545_s25 + $0x188] sm:$0xff]  ;;  %v203_v26 = vld [vmem:[%s1545_s25 + $0x190] sm:$0xff] }
  0x1f   : > { %200 = vst [vmem:[%s1550_s26 + $0xc0] sm:$0xff] %v199_v24  ;;  %202 = vst [vmem:[%s1550_s26 + $0xc8] sm:$0xff] %v201_v25  ;;  %v205_v27 = vld [vmem:[%s1545_s25 + $0x198] sm:$0xff]  ;;  %v207_v28 = vld [vmem:[%s1545_s25 + $0x1a0] sm:$0xff] }
  0x20   : > { %204 = vst [vmem:[%s1550_s26 + $0xd0] sm:$0xff] %v203_v26  ;;  %v209_v29 = vld [vmem:[%s1545_s25 + $0x1a8] sm:$0xff]  ;;  %206 = vst [vmem:[%s1550_s26 + $0xd8] sm:$0xff] %v205_v27  ;;  %v211_v30 = vld [vmem:[%s1545_s25 + $0x1b0] sm:$0xff] }
  0x21   : > { %208 = vst [vmem:[%s1550_s26 + $0xe0] sm:$0xff] %v207_v28  ;;  %210 = vst [vmem:[%s1550_s26 + $0xe8] sm:$0xff] %v209_v29  ;;  %v213_v31 = vld [vmem:[%s1545_s25 + $0x1b8] sm:$0xff]  ;;  %v215_v32 = vld [vmem:[%s1545_s25 + $0x1c0] sm:$0xff] }
  0x22   : > { %212 = vst [vmem:[%s1550_s26 + $0xf0] sm:$0xff] %v211_v30  ;;  %214 = vst [vmem:[%s1550_s26 + $0xf8] sm:$0xff] %v213_v31  ;;  %v217_v33 = vld [vmem:[%s1545_s25 + $0x1c8] sm:$0xff]  ;;  %v219_v34 = vld [vmem:[%s1545_s25 + $0x1d0] sm:$0xff] }
  0x23   : > { %216 = vst [vmem:[%s1550_s26 + $0x100] sm:$0xff] %v215_v32  ;;  %v221_v35 = vld [vmem:[%s1545_s25 + $0x1d8] sm:$0xff]  ;;  %218 = vst [vmem:[%s1550_s26 + $0x108] sm:$0xff] %v217_v33  ;;  %v223_v36 = vld [vmem:[%s1545_s25 + $0x1e0] sm:$0xff] }
  0x24   : > { %220 = vst [vmem:[%s1550_s26 + $0x110] sm:$0xff] %v219_v34  ;;  %222 = vst [vmem:[%s1550_s26 + $0x118] sm:$0xff] %v221_v35  ;;  %v225_v37 = vld [vmem:[%s1545_s25 + $0x1e8] sm:$0xff]  ;;  %v227_v38 = vld [vmem:[%s1545_s25 + $0x1f0] sm:$0xff] }
  0x25   : > { %224 = vst [vmem:[%s1550_s26 + $0x120] sm:$0xff] %v223_v36  ;;  %226 = vst [vmem:[%s1550_s26 + $0x128] sm:$0xff] %v225_v37  ;;  %v229_v39 = vld [vmem:[%s1545_s25 + $0x1f8] sm:$0xff]  ;;  %v231_v40 = vld [vmem:[%s1545_s25 + $0x200] sm:$0xff] }
  0x26   : > { %228 = vst [vmem:[%s1550_s26 + $0x130] sm:$0xff] %v227_v38  ;;  %v233_v41 = vld [vmem:[%s1545_s25 + $0x208] sm:$0xff]  ;;  %230 = vst [vmem:[%s1550_s26 + $0x138] sm:$0xff] %v229_v39  ;;  %v235_v42 = vld [vmem:[%s1545_s25 + $0x210] sm:$0xff] }
  0x27   : > { %232 = vst [vmem:[%s1550_s26 + $0x140] sm:$0xff] %v231_v40  ;;  %234 = vst [vmem:[%s1550_s26 + $0x148] sm:$0xff] %v233_v41  ;;  %v237_v43 = vld [vmem:[%s1545_s25 + $0x218] sm:$0xff]  ;;  %v239_v44 = vld [vmem:[%s1545_s25 + $0x220] sm:$0xff] }
  0x28   : > { %236 = vst [vmem:[%s1550_s26 + $0x150] sm:$0xff] %v235_v42  ;;  %238 = vst [vmem:[%s1550_s26 + $0x158] sm:$0xff] %v237_v43  ;;  %v241_v45 = vld [vmem:[%s1545_s25 + $0x228] sm:$0xff]  ;;  %v243_v46 = vld [vmem:[%s1545_s25 + $0x230] sm:$0xff] }
  0x29   : > { %240 = vst [vmem:[%s1550_s26 + $0x160] sm:$0xff] %v239_v44  ;;  %v245_v47 = vld [vmem:[%s1545_s25 + $0x238] sm:$0xff]  ;;  %242 = vst [vmem:[%s1550_s26 + $0x168] sm:$0xff] %v241_v45  ;;  %v247_v48 = vld [vmem:[%s1545_s25 + $0x300] sm:$0xff] }
  0x2a   : > { %244 = vst [vmem:[%s1550_s26 + $0x170] sm:$0xff] %v243_v46  ;;  %246 = vst [vmem:[%s1550_s26 + $0x178] sm:$0xff] %v245_v47  ;;  %v249_v49 = vld [vmem:[%s1545_s25 + $0x308] sm:$0xff]  ;;  %v251_v50 = vld [vmem:[%s1545_s25 + $0x310] sm:$0xff] }
  0x2b   : > { %248 = vst [vmem:[%s1550_s26 + $0x180] sm:$0xff] %v247_v48  ;;  %250 = vst [vmem:[%s1550_s26 + $0x188] sm:$0xff] %v249_v49  ;;  %v253_v51 = vld [vmem:[%s1545_s25 + $0x318] sm:$0xff]  ;;  %v255_v52 = vld [vmem:[%s1545_s25 + $0x320] sm:$0xff] }
  0x2c   : > { %252 = vst [vmem:[%s1550_s26 + $0x190] sm:$0xff] %v251_v50  ;;  %v257_v53 = vld [vmem:[%s1545_s25 + $0x328] sm:$0xff]  ;;  %254 = vst [vmem:[%s1550_s26 + $0x198] sm:$0xff] %v253_v51  ;;  %v259_v54 = vld [vmem:[%s1545_s25 + $0x330] sm:$0xff] }
  0x2d   : > { %256 = vst [vmem:[%s1550_s26 + $0x1a0] sm:$0xff] %v255_v52  ;;  %258 = vst [vmem:[%s1550_s26 + $0x1a8] sm:$0xff] %v257_v53  ;;  %v261_v55 = vld [vmem:[%s1545_s25 + $0x338] sm:$0xff]  ;;  %v263_v56 = vld [vmem:[%s1545_s25 + $0x340] sm:$0xff] }
  0x2e   : > { %260 = vst [vmem:[%s1550_s26 + $0x1b0] sm:$0xff] %v259_v54  ;;  %262 = vst [vmem:[%s1550_s26 + $0x1b8] sm:$0xff] %v261_v55  ;;  %v265_v57 = vld [vmem:[%s1545_s25 + $0x348] sm:$0xff]  ;;  %v267_v58 = vld [vmem:[%s1545_s25 + $0x350] sm:$0xff] }
  0x2f   : > { %264 = vst [vmem:[%s1550_s26 + $0x1c0] sm:$0xff] %v263_v56  ;;  %v269_v59 = vld [vmem:[%s1545_s25 + $0x358] sm:$0xff]  ;;  %266 = vst [vmem:[%s1550_s26 + $0x1c8] sm:$0xff] %v265_v57  ;;  %v271_v60 = vld [vmem:[%s1545_s25 + $0x360] sm:$0xff] }
  0x30   : > { %268 = vst [vmem:[%s1550_s26 + $0x1d0] sm:$0xff] %v267_v58  ;;  %270 = vst [vmem:[%s1550_s26 + $0x1d8] sm:$0xff] %v269_v59  ;;  %v273_v61 = vld [vmem:[%s1545_s25 + $0x368] sm:$0xff]  ;;  %v275_v62 = vld [vmem:[%s1545_s25 + $0x370] sm:$0xff] }
  0x31   : > { %272 = vst [vmem:[%s1550_s26 + $0x1e0] sm:$0xff] %v271_v60  ;;  %274 = vst [vmem:[%s1550_s26 + $0x1e8] sm:$0xff] %v273_v61  ;;  %v277_v63 = vld [vmem:[%s1545_s25 + $0x378] sm:$0xff]  ;;  %v279_v0 = vld [vmem:[%s1545_s25 + $0x380] sm:$0xff] }
  0x32   : > { %276 = vst [vmem:[%s1550_s26 + $0x1f0] sm:$0xff] %v275_v62  ;;  %v281_v1 = vld [vmem:[%s1545_s25 + $0x388] sm:$0xff]  ;;  %278 = vst [vmem:[%s1550_s26 + $0x1f8] sm:$0xff] %v277_v63  ;;  %v283_v2 = vld [vmem:[%s1545_s25 + $0x390] sm:$0xff] }
  0x33   : > { %280 = vst [vmem:[%s1550_s26 + $0x200] sm:$0xff] %v279_v0  ;;  %282 = vst [vmem:[%s1550_s26 + $0x208] sm:$0xff] %v281_v1  ;;  %v285_v3 = vld [vmem:[%s1545_s25 + $0x398] sm:$0xff]  ;;  %v287_v4 = vld [vmem:[%s1545_s25 + $0x3a0] sm:$0xff] }
  0x34   : > { %284 = vst [vmem:[%s1550_s26 + $0x210] sm:$0xff] %v283_v2  ;;  %286 = vst [vmem:[%s1550_s26 + $0x218] sm:$0xff] %v285_v3  ;;  %v289_v5 = vld [vmem:[%s1545_s25 + $0x3a8] sm:$0xff]  ;;  %v291_v6 = vld [vmem:[%s1545_s25 + $0x3b0] sm:$0xff] }
  0x35   : > { %288 = vst [vmem:[%s1550_s26 + $0x220] sm:$0xff] %v287_v4  ;;  %v293_v7 = vld [vmem:[%s1545_s25 + $0x3b8] sm:$0xff]  ;;  %290 = vst [vmem:[%s1550_s26 + $0x228] sm:$0xff] %v289_v5  ;;  %v295_v8 = vld [vmem:[%s1545_s25 + $0x480] sm:$0xff] }
  0x36   : > { %292 = vst [vmem:[%s1550_s26 + $0x230] sm:$0xff] %v291_v6  ;;  %294 = vst [vmem:[%s1550_s26 + $0x238] sm:$0xff] %v293_v7  ;;  %v297_v9 = vld [vmem:[%s1545_s25 + $0x488] sm:$0xff]  ;;  %v299_v10 = vld [vmem:[%s1545_s25 + $0x490] sm:$0xff] }
  0x37   : > { %296 = vst [vmem:[%s1550_s26 + $0x240] sm:$0xff] %v295_v8  ;;  %298 = vst [vmem:[%s1550_s26 + $0x248] sm:$0xff] %v297_v9  ;;  %v301_v11 = vld [vmem:[%s1545_s25 + $0x498] sm:$0xff]  ;;  %v303_v12 = vld [vmem:[%s1545_s25 + $0x4a0] sm:$0xff] }
  0x38   : > { %300 = vst [vmem:[%s1550_s26 + $0x250] sm:$0xff] %v299_v10  ;;  %v305_v13 = vld [vmem:[%s1545_s25 + $0x4a8] sm:$0xff]  ;;  %302 = vst [vmem:[%s1550_s26 + $0x258] sm:$0xff] %v301_v11  ;;  %v307_v14 = vld [vmem:[%s1545_s25 + $0x4b0] sm:$0xff] }
  0x39   : > { %304 = vst [vmem:[%s1550_s26 + $0x260] sm:$0xff] %v303_v12  ;;  %306 = vst [vmem:[%s1550_s26 + $0x268] sm:$0xff] %v305_v13  ;;  %v309_v15 = vld [vmem:[%s1545_s25 + $0x4b8] sm:$0xff]  ;;  %v311_v16 = vld [vmem:[%s1545_s25 + $0x4c0] sm:$0xff] }
  0x3a   : > { %308 = vst [vmem:[%s1550_s26 + $0x270] sm:$0xff] %v307_v14  ;;  %310 = vst [vmem:[%s1550_s26 + $0x278] sm:$0xff] %v309_v15  ;;  %v313_v17 = vld [vmem:[%s1545_s25 + $0x4c8] sm:$0xff]  ;;  %v315_v18 = vld [vmem:[%s1545_s25 + $0x4d0] sm:$0xff] }
  0x3b   : > { %312 = vst [vmem:[%s1550_s26 + $0x280] sm:$0xff] %v311_v16  ;;  %v317_v19 = vld [vmem:[%s1545_s25 + $0x4d8] sm:$0xff]  ;;  %314 = vst [vmem:[%s1550_s26 + $0x288] sm:$0xff] %v313_v17  ;;  %v319_v20 = vld [vmem:[%s1545_s25 + $0x4e0] sm:$0xff] }
  0x3c   : > { %316 = vst [vmem:[%s1550_s26 + $0x290] sm:$0xff] %v315_v18  ;;  %318 = vst [vmem:[%s1550_s26 + $0x298] sm:$0xff] %v317_v19  ;;  %v321_v21 = vld [vmem:[%s1545_s25 + $0x4e8] sm:$0xff]  ;;  %v323_v22 = vld [vmem:[%s1545_s25 + $0x4f0] sm:$0xff] }
  0x3d   : > { %320 = vst [vmem:[%s1550_s26 + $0x2a0] sm:$0xff] %v319_v20  ;;  %322 = vst [vmem:[%s1550_s26 + $0x2a8] sm:$0xff] %v321_v21  ;;  %v325_v23 = vld [vmem:[%s1545_s25 + $0x4f8] sm:$0xff]  ;;  %v327_v24 = vld [vmem:[%s1545_s25 + $0x500] sm:$0xff] }
  0x3e   : > { %324 = vst [vmem:[%s1550_s26 + $0x2b0] sm:$0xff] %v323_v22  ;;  %v329_v25 = vld [vmem:[%s1545_s25 + $0x508] sm:$0xff]  ;;  %326 = vst [vmem:[%s1550_s26 + $0x2b8] sm:$0xff] %v325_v23  ;;  %v331_v26 = vld [vmem:[%s1545_s25 + $0x510] sm:$0xff] }
  0x3f   : > { %328 = vst [vmem:[%s1550_s26 + $0x2c0] sm:$0xff] %v327_v24  ;;  %330 = vst [vmem:[%s1550_s26 + $0x2c8] sm:$0xff] %v329_v25  ;;  %v333_v27 = vld [vmem:[%s1545_s25 + $0x518] sm:$0xff]  ;;  %v335_v28 = vld [vmem:[%s1545_s25 + $0x520] sm:$0xff] }
  0x40   : > { %332 = vst [vmem:[%s1550_s26 + $0x2d0] sm:$0xff] %v331_v26  ;;  %334 = vst [vmem:[%s1550_s26 + $0x2d8] sm:$0xff] %v333_v27  ;;  %v337_v29 = vld [vmem:[%s1545_s25 + $0x528] sm:$0xff]  ;;  %v339_v30 = vld [vmem:[%s1545_s25 + $0x530] sm:$0xff] }
  0x41   : > { %336 = vst [vmem:[%s1550_s26 + $0x2e0] sm:$0xff] %v335_v28  ;;  %v341_v31 = vld [vmem:[%s1545_s25 + $0x538] sm:$0xff]  ;;  %338 = vst [vmem:[%s1550_s26 + $0x2e8] sm:$0xff] %v337_v29 }
  0x42   : > { %340 = vst [vmem:[%s1550_s26 + $0x2f0] sm:$0xff] %v339_v30  ;;  %342 = vst [vmem:[%s1550_s26 + $0x2f8] sm:$0xff] %v341_v31 }
  0x43 PF: > { %p1220_p5 = scmp.ge.s32.totalorder %s1488_s14, 1  ;;  %p347_p6 = scmp.lt.s32.totalorder %s1488_s14, 3 }
  0x45   : > { %p348_p7 = pnand %p1220_p5, %p347_p6 }
  0x46   : > { %v480_v32 = vld [vmem:[%s2144_s1] sm:$0xff] (!%p348_p7)  ;;  %v481_v33 = vld [vmem:[%s2144_s1 + $0x8] sm:$0xff] (!%p348_p7)  ;;  %v482_v34 = vld [vmem:[%s2144_s1 + $0x10] sm:$0xff] (!%p348_p7)  ;;  %s354_s6 = sand.u32 (!%p348_p7), 1, %s1480_s12   ;;  %v1490_v35 = vmov (!%p348_p7), 0.0|0.0   ;;  %vm516_vm0 = vcmask (!%p348_p7), 261120  }
  0x47   : > { %351 = sbr.rel (%p348_p7) target bundleno = 452 (0x1c4), region = 51  ;;  %1350 = vmatprep.subr.bf16.mxu0 (!%p348_p7), %v1490_v35  ;;  %1406 = vmatprep.subr.bf16.mxu1 (!%p348_p7), %v1490_v35  ;;  %v1351_v36 = vpack.c.bf16 (!%p348_p7), %v481_v33, %v480_v32  ;;  %v483_v37 = vld [vmem:[%s2144_s1 + $0x18] sm:$0xff] (!%p348_p7)  ;;  %v484_v39 = vld [vmem:[%s2144_s1 + $0x20] sm:$0xff] (!%p348_p7)  ;;  %v485_v40 = vld [vmem:[%s2144_s1 + $0x28] sm:$0xff] (!%p348_p7)  ;;  %vm1063_vm1 = vcmask (!%p348_p7), 523264  }
  0x48   : > { %v1354_v38 = vpack.c.bf16 (!%p348_p7), %v483_v37, %v482_v34  ;;  %s1440_s9 = smul.u32 (!%p348_p7), 768, %s354_s6  ;;  %v1357_v41 = vpack.c.bf16 (!%p348_p7), %v485_v40, %v484_v39  ;;  %v486_v42 = vld [vmem:[%s2144_s1 + $0x30] sm:$0xff] (!%p348_p7)  ;;  %v487_v43 = vld [vmem:[%s2144_s1 + $0x38] sm:$0xff] (!%p348_p7)  ;;  %v488_v47 = vld [vmem:[%s2144_s1 + $0x40] sm:$0xff] (!%p348_p7) }
  0x49   : > { %1352 = vmatpush1.bf16.msra.mxu0 (!%p348_p7), %v1351_v36  ;;  %1422 = vmatpush1.bf16.msra.mxu1 (!%p348_p7), %v1351_v36  ;;  %v1360_v45 = vpack.c.bf16 (!%p348_p7), %v487_v43, %v486_v42  ;;  %v489_v48 = vld [vmem:[%s2144_s1 + $0x48] sm:$0xff] (!%p348_p7)  ;;  %v490_v50 = vld [vmem:[%s2144_s1 + $0x50] sm:$0xff] (!%p348_p7)  ;;  %v491_v51 = vld [vmem:[%s2144_s1 + $0x58] sm:$0xff] (!%p348_p7) }
  0x4a   : > { %1353 = vmatprep.subr.bf16.mxu0 (!%p348_p7), %v1490_v35  ;;  %1407 = vmatprep.subr.bf16.mxu1 (!%p348_p7), %v1490_v35  ;;  %s1774_s23 = scalar_lea.vmem (!%p348_p7), [#allocation2], %s1440_s9  ;;  %v1363_v49 = vpack.c.bf16 (!%p348_p7), %v489_v48, %v488_v47  ;;  %v1366_v52 = vpack.c.bf16 (!%p348_p7), %v491_v51, %v490_v50  ;;  %v492_v53 = vld [vmem:[%s2144_s1 + $0x60] sm:$0xff] (!%p348_p7)  ;;  %v493_v54 = vld [vmem:[%s2144_s1 + $0x68] sm:$0xff] (!%p348_p7)  ;;  %v494_v56 = vld [vmem:[%s2144_s1 + $0x70] sm:$0xff] (!%p348_p7) }
  0x4b   : > { %v385_v44 = vld [vmem:[%s1774_s23 + $0x8] sm:$0xff] (!%p348_p7)  ;;  %v1369_v55 = vpack.c.bf16 (!%p348_p7), %v493_v54, %v492_v53  ;;  %v495_v57 = vld [vmem:[%s2144_s1 + $0x78] sm:$0xff] (!%p348_p7)  ;;  %v496_v59 = vld [vmem:[%s2144_s1 + $0x80] sm:$0xff] (!%p348_p7) }
  0x4c   : > { %v457_v46 = vld [vmem:[%s1774_s23 + $0x248] sm:$0xff] (!%p348_p7)  ;;  %677 = vmatprep.mubr.f32.mxu0 (!%p348_p7), %v385_v44  ;;  %v1372_v58 = vpack.c.bf16 (!%p348_p7), %v495_v57, %v494_v56  ;;  %v498_v62 = vld [vmem:[%s2144_s1 + $0x90] sm:$0xff] (!%p348_p7)  ;;  %v499_v63 = vld [vmem:[%s2144_s1 + $0x98] sm:$0xff] (!%p348_p7) }
  0x4d   : > { %1355 = vmatpush1.bf16.msra.mxu0 (!%p348_p7), %v1354_v38  ;;  %1423 = vmatpush1.bf16.msra.mxu1 (!%p348_p7), %v1354_v38  ;;  %v497_v60 = vld [vmem:[%s2144_s1 + $0x88] sm:$0xff] (!%p348_p7)  ;;  %v1378_v0 = vpack.c.bf16 (!%p348_p7), %v499_v63, %v498_v62  ;;  %v500_v1 = vld [vmem:[%s2144_s1 + $0xa0] sm:$0xff] (!%p348_p7)  ;;  %v502_v4 = vld [vmem:[%s2144_s1 + $0xb0] sm:$0xff] (!%p348_p7) }
  0x4e   : > { %1356 = vmatprep.subr.bf16.mxu0 %v1490_v35  ;;  %1408 = vmatprep.subr.bf16.mxu1 %v1490_v35  ;;  %v1375_v61 = vpack.c.bf16 %v497_v60, %v496_v59  ;;  %v501_v2 = vld [vmem:[%s2144_s1 + $0xa8] sm:$0xff]  ;;  %v503_v5 = vld [vmem:[%s2144_s1 + $0xb8] sm:$0xff]  ;;  %v504_v7 = vld [vmem:[%s2144_s1 + $0xc0] sm:$0xff] }
  0x4f   : > { %797 = vmatprep.mubr.f32.mxu1 %v457_v46  ;;  %v1381_v3 = vpack.c.bf16 %v501_v2, %v500_v1  ;;  %v1384_v6 = vpack.c.bf16 %v503_v5, %v502_v4  ;;  %v505_v8 = vld [vmem:[%s2144_s1 + $0xc8] sm:$0xff]  ;;  %v506_v10 = vld [vmem:[%s2144_s1 + $0xd0] sm:$0xff]  ;;  %v507_v11 = vld [vmem:[%s2144_s1 + $0xd8] sm:$0xff] }
  0x50   : > { %v1387_v9 = vpack.c.bf16 %v505_v8, %v504_v7  ;;  %v1390_v12 = vpack.c.bf16 %v507_v11, %v506_v10  ;;  %v508_v13 = vld [vmem:[%s2144_s1 + $0xe0] sm:$0xff]  ;;  %v509_v14 = vld [vmem:[%s2144_s1 + $0xe8] sm:$0xff]  ;;  %v510_v16 = vld [vmem:[%s2144_s1 + $0xf0] sm:$0xff] }
  0x51   : > { %1358 = vmatpush1.bf16.msra.mxu0 %v1357_v41  ;;  %1424 = vmatpush1.bf16.msra.mxu1 %v1357_v41  ;;  %v1393_v15 = vpack.c.bf16 %v509_v14, %v508_v13  ;;  %v511_v17 = vld [vmem:[%s2144_s1 + $0xf8] sm:$0xff]  ;;  %v512_v18 = vld [vmem:[%s2144_s1 + $0x100] sm:$0xff]  ;;  %v513_v19 = vld [vmem:[%s2144_s1 + $0x108] sm:$0xff] }
  0x52   : > { %1359 = vmatprep.subr.bf16.mxu0 %v1490_v35  ;;  %1409 = vmatprep.subr.bf16.mxu1 %v1490_v35  ;;  %v1396_v20 = vpack.c.bf16 %v511_v17, %v510_v16  ;;  %v1398_v21 = vpack.c.bf16 %v513_v19, %v512_v18  ;;  %v514_v22 = vld [vmem:[%s2144_s1 + $0x110] sm:$0xff]  ;;  %v515_v23 = vld [vmem:[%s2144_s1 + $0x118] sm:$0xff]  ;;  %v384_v24 = vld [vmem:[%s1774_s23] sm:$0xff] }
  0x53   : > { %v456_v25 = vld [vmem:[%s1774_s23 + $0x240] sm:$0xff]  ;;  %v1402_v27 = vpack.c.bf16 %v515_v23, %v514_v22  ;;  %v387_v29 = vld [vmem:[%s1774_s23 + $0x18] sm:$0xff]  ;;  %v390_v33 = vld [vmem:[%s1774_s23 + $0x30] sm:$0xff] }
  0x54   : > { %v388_v26 = vld [vmem:[%s1774_s23 + $0x20] sm:$0xff]  ;;  %v459_v30 = vld [vmem:[%s1774_s23 + $0x258] sm:$0xff]  ;;  %v462_v34 = vld [vmem:[%s1774_s23 + $0x270] sm:$0xff] }
  0x55   : > { %1361 = vmatpush1.bf16.msra.mxu0 %v1360_v45  ;;  %1425 = vmatpush1.bf16.msra.mxu1 %v1360_v45  ;;  %v460_v28 = vld [vmem:[%s1774_s23 + $0x260] sm:$0xff]  ;;  %v391_v31 = vld [vmem:[%s1774_s23 + $0x38] sm:$0xff]  ;;  %v466_v36 = vld [vmem:[%s1774_s23 + $0x290] sm:$0xff] }
  0x56   : > { %1362 = vmatprep.subr.bf16.mxu0 %v1490_v35  ;;  %1410 = vmatprep.subr.bf16.mxu1 %v1490_v35  ;;  %v463_v32 = vld [vmem:[%s1774_s23 + $0x278] sm:$0xff]  ;;  %v393_v37 = vld [vmem:[%s1774_s23 + $0x48] sm:$0xff]  ;;  %v396_v41 = vld [vmem:[%s1774_s23 + $0x60] sm:$0xff] }
  0x57   : > { %v465_v38 = vld [vmem:[%s1774_s23 + $0x288] sm:$0xff]  ;;  %v468_v42 = vld [vmem:[%s1774_s23 + $0x2a0] sm:$0xff]  ;;  %v399_v45 = vld [vmem:[%s1774_s23 + $0x78] sm:$0xff] }
  0x58   : > { %v397_v39 = vld [vmem:[%s1774_s23 + $0x68] sm:$0xff]  ;;  %v400_v43 = vld [vmem:[%s1774_s23 + $0x80] sm:$0xff]  ;;  %v471_v46 = vld [vmem:[%s1774_s23 + $0x2b8] sm:$0xff] }
  0x59   : > { %1364 = vmatpush1.bf16.msra.mxu0 %v1363_v49  ;;  %1426 = vmatpush1.bf16.msra.mxu1 %v1363_v49  ;;  %v469_v40 = vld [vmem:[%s1774_s23 + $0x2a8] sm:$0xff]  ;;  %v472_v44 = vld [vmem:[%s1774_s23 + $0x2c0] sm:$0xff]  ;;  %v403_v47 = vld [vmem:[%s1774_s23 + $0x98] sm:$0xff] }
  0x5a   : > { %1365 = vmatprep.subr.bf16.mxu0 %v1490_v35  ;;  %1411 = vmatprep.subr.bf16.mxu1 %v1490_v35  ;;  %v475_v48 = vld [vmem:[%s1774_s23 + $0x2d8] sm:$0xff]  ;;  %v402_v49 = vld [vmem:[%s1774_s23 + $0x90] sm:$0xff]  ;;  %v405_v53 = vld [vmem:[%s1774_s23 + $0xa8] sm:$0xff] }
  0x5b   : > { %v474_v50 = vld [vmem:[%s1774_s23 + $0x2d0] sm:$0xff]  ;;  %v477_v54 = vld [vmem:[%s1774_s23 + $0x2e8] sm:$0xff]  ;;  %v408_v57 = vld [vmem:[%s1774_s23 + $0xc0] sm:$0xff] }
  0x5c   : > { %v406_v51 = vld [vmem:[%s1774_s23 + $0xb0] sm:$0xff]  ;;  %v412_v59 = vld [vmem:[%s1774_s23 + $0xe0] sm:$0xff]  ;;  %v395_v62 = vld [vmem:[%s1774_s23 + $0x58] sm:$0xff] }
  0x5d   : > { %1367 = vmatpush1.bf16.msra.mxu0 %v1366_v52  ;;  %1427 = vmatpush1.bf16.msra.mxu1 %v1366_v52  ;;  %v478_v52 = vld [vmem:[%s1774_s23 + $0x2f0] sm:$0xff]  ;;  %v392_v60 = vld [vmem:[%s1774_s23 + $0x40] sm:$0xff]  ;;  %v415_v63 = vld [vmem:[%s1774_s23 + $0xf8] sm:$0xff] }
  0x5e   : > { %1368 = vmatprep.subr.bf16.mxu0 %v1490_v35  ;;  %1412 = vmatprep.subr.bf16.mxu1 %v1490_v35  ;;  %v386_v56 = vld [vmem:[%s1774_s23 + $0x10] sm:$0xff]  ;;  %v401_v2 = vld [vmem:[%s1774_s23 + $0x88] sm:$0xff]  ;;  %v404_v4 = vld [vmem:[%s1774_s23 + $0xa0] sm:$0xff] }
  0x5f   : > { %v414_v1 = vld [vmem:[%s1774_s23 + $0xf0] sm:$0xff]  ;;  %v417_v5 = vld [vmem:[%s1774_s23 + $0x108] sm:$0xff]  ;;  %v424_v11 = vld [vmem:[%s1774_s23 + $0x140] sm:$0xff] }
  0x60   : > { %v421_v7 = vld [vmem:[%s1774_s23 + $0x128] sm:$0xff]  ;;  %v410_v8 = vld [vmem:[%s1774_s23 + $0xd0] sm:$0xff]  ;;  %v423_v13 = vld [vmem:[%s1774_s23 + $0x138] sm:$0xff] }
  0x61   : > { %1370 = vmatpush1.bf16.msra.mxu0 %v1369_v55  ;;  %1428 = vmatpush1.bf16.msra.mxu1 %v1369_v55  ;;  %v409_v55 = vld [vmem:[%s1774_s23 + $0xc8] sm:$0xff]  ;;  %v419_v14 = vld [vmem:[%s1774_s23 + $0x118] sm:$0xff]  ;;  %v422_v16 = vld [vmem:[%s1774_s23 + $0x130] sm:$0xff] }
  0x62   : > { %1371 = vmatprep.subr.bf16.mxu0 %v1490_v35  ;;  %1413 = vmatprep.subr.bf16.mxu1 %v1490_v35  ;;  %v413_v10 = vld [vmem:[%s1774_s23 + $0xe8] sm:$0xff]  ;;  %v426_v17 = vld [vmem:[%s1774_s23 + $0x150] sm:$0xff]  ;;  %v431_v22 = vld [vmem:[%s1774_s23 + $0x178] sm:$0xff] }
  0x63   : > { %v425_v18 = vld [vmem:[%s1774_s23 + $0x148] sm:$0xff]  ;;  %v430_v19 = vld [vmem:[%s1774_s23 + $0x170] sm:$0xff] }
  0x64   : > { %v433_v23 = vld [vmem:[%s1774_s23 + $0x188] sm:$0xff] }
  0x65   : > { %1373 = vmatpush1.bf16.msra.mxu0 %v1372_v58  ;;  %1429 = vmatpush1.bf16.msra.mxu1 %v1372_v58  ;;  %v389_v58 = vld [vmem:[%s1774_s23 + $0x28] sm:$0xff] }
  0x66   : > { %1374 = vmatprep.subr.bf16.mxu0 %v1490_v35  ;;  %1414 = vmatprep.subr.bf16.mxu1 %v1490_v35 }
  0x69   : > { %1376 = vmatpush1.bf16.msra.mxu0 %v1375_v61  ;;  %1430 = vmatpush1.bf16.msra.mxu1 %v1375_v61  ;;  %v411_v61 = vld [vmem:[%s1774_s23 + $0xd8] sm:$0xff] }
  0x6a   : > { %1377 = vmatprep.subr.bf16.mxu0 %v1490_v35  ;;  %1415 = vmatprep.subr.bf16.mxu1 %v1490_v35 }
  0x6d   : > { %1379 = vmatpush1.bf16.msra.mxu0 %v1378_v0  ;;  %1431 = vmatpush1.bf16.msra.mxu1 %v1378_v0  ;;  %v398_v0 = vld [vmem:[%s1774_s23 + $0x70] sm:$0xff] }
  0x6e   : > { %1380 = vmatprep.subr.bf16.mxu0 %v1490_v35  ;;  %1416 = vmatprep.subr.bf16.mxu1 %v1490_v35 }
  0x71   : > { %1382 = vmatpush1.bf16.msra.mxu0 %v1381_v3  ;;  %1432 = vmatpush1.bf16.msra.mxu1 %v1381_v3  ;;  %v418_v3 = vld [vmem:[%s1774_s23 + $0x110] sm:$0xff] }
  0x72   : > { %1383 = vmatprep.subr.bf16.mxu0 %v1490_v35  ;;  %1417 = vmatprep.subr.bf16.mxu1 %v1490_v35 }
  0x75   : > { %1385 = vmatpush1.bf16.msra.mxu0 %v1384_v6  ;;  %1433 = vmatpush1.bf16.msra.mxu1 %v1384_v6  ;;  %v407_v6 = vld [vmem:[%s1774_s23 + $0xb8] sm:$0xff] }
  0x76   : > { %1386 = vmatprep.subr.bf16.mxu0 %v1490_v35  ;;  %1418 = vmatprep.subr.bf16.mxu1 %v1490_v35 }
  0x79   : > { %1388 = vmatpush1.bf16.msra.mxu0 %v1387_v9  ;;  %1434 = vmatpush1.bf16.msra.mxu1 %v1387_v9  ;;  %v420_v9 = vld [vmem:[%s1774_s23 + $0x120] sm:$0xff] }
  0x7a   : > { %1389 = vmatprep.subr.bf16.mxu0 %v1490_v35  ;;  %1419 = vmatprep.subr.bf16.mxu1 %v1490_v35 }
  0x7d   : > { %1391 = vmatpush1.bf16.msra.mxu0 %v1390_v12  ;;  %1435 = vmatpush1.bf16.msra.mxu1 %v1390_v12  ;;  %v416_v12 = vld [vmem:[%s1774_s23 + $0x100] sm:$0xff] }
  0x7e   : > { %1392 = vmatprep.subr.bf16.mxu0 %v1490_v35  ;;  %1420 = vmatprep.subr.bf16.mxu1 %v1490_v35 }
  0x81   : > { %1394 = vmatpush1.bf16.msra.mxu0 %v1393_v15  ;;  %1436 = vmatpush1.bf16.msra.mxu1 %v1393_v15  ;;  %v427_v15 = vld [vmem:[%s1774_s23 + $0x158] sm:$0xff] }
  0x82   : > { %1395 = vmatprep.subr.bf16.mxu0 %v1490_v35  ;;  %1421 = vmatprep.subr.bf16.mxu1 %v1490_v35  ;;  %v394_v35 = vld [vmem:[%s1774_s23 + $0x50] sm:$0xff] }
  0x85   : > { %1397 = vmatpush1.bf16.msra.mxu0 %v1396_v20  ;;  %1437 = vmatpush1.bf16.msra.mxu1 %v1396_v20  ;;  %v428_v20 = vld [vmem:[%s1774_s23 + $0x160] sm:$0xff] }
  0x86   : > { %1399 = vmatprep.subr.bf16.mxu1 %v1398_v21 }
  0x88   : > { %678 = vmatmul.mubr.f32.vlgmr.msra.gmra.mrb[0].mxu0 %v384_v24  ;;  %798 = vmatmul.mubr.f32.vlgmr.msra.gmra.mrb[0].mxu1 %v456_v25  ;;  %v434_v24 = vld [vmem:[%s1774_s23 + $0x190] sm:$0xff]  ;;  %v432_v25 = vld [vmem:[%s1774_s23 + $0x180] sm:$0xff] }
  0x89   : > { %1401 = vmatpush3.bf16.msra.mxu1 %v1398_v21  ;;  %682 = vmatprep.mubr.f32.mxu0 %v388_v26  ;;  %v429_v21 = vld [vmem:[%s1774_s23 + $0x168] sm:$0xff] }
  0x8a   : > { %802 = vmatprep.mubr.f32.mxu1 %v460_v28  ;;  %1403 = vmatprep.subr.bf16.mxu1 %v1402_v27  ;;  %v437_v26 = vld [vmem:[%s1774_s23 + $0x1a8] sm:$0xff]  ;;  %v440_v28 = vld [vmem:[%s1774_s23 + $0x1c0] sm:$0xff] }
  0x8c   : > { %683 = vmatmul.mubr.f32.gmra.mrb[2].mxu0 %v387_v29  ;;  %803 = vmatmul.mubr.f32.gmra.mrb[2].mxu1 %v459_v30  ;;  %v435_v29 = vld [vmem:[%s1774_s23 + $0x198] sm:$0xff] }
  0x8d   : > { %687 = vmatprep.mubr.f32.mxu0 %v391_v31  ;;  %807 = vmatprep.mubr.f32.mxu1 %v463_v32  ;;  %v443_v30 = vld [vmem:[%s1774_s23 + $0x1d8] sm:$0xff]  ;;  %v446_v32 = vld [vmem:[%s1774_s23 + $0x1f0] sm:$0xff] }
  0x8e   : > { %1405 = vmatpush3.bf16.msra.mxu1 %v1402_v27  ;;  %v436_v27 = vld [vmem:[%s1774_s23 + $0x1a0] sm:$0xff]  ;;  %v439_v31 = vld [vmem:[%s1774_s23 + $0x1b8] sm:$0xff] }
  0x90   : > { %688 = vmatmul.mubr.f32.gmra.mrb[4].mxu0 %v390_v33  ;;  %808 = vmatmul.mubr.f32.gmra.mrb[4].mxu1 %v462_v34  ;;  %v438_v33 = vld [vmem:[%s1774_s23 + $0x1b0] sm:$0xff]  ;;  %v449_v34 = vld [vmem:[%s1774_s23 + $0x208] sm:$0xff] }
  0x91   : > { %692 = vmatprep.mubr.f32.mxu0 %v394_v35  ;;  %812 = vmatprep.mubr.f32.mxu1 %v466_v36  ;;  %v442_v35 = vld [vmem:[%s1774_s23 + $0x1d0] sm:$0xff]  ;;  %v452_v36 = vld [vmem:[%s1774_s23 + $0x220] sm:$0xff] }
  0x94   : > { %693 = vmatmul.mubr.f32.gmra.mrb[6].mxu0 %v393_v37  ;;  %813 = vmatmul.mubr.f32.gmra.mrb[6].mxu1 %v465_v38  ;;  %v441_v37 = vld [vmem:[%s1774_s23 + $0x1c8] sm:$0xff]  ;;  %v455_v38 = vld [vmem:[%s1774_s23 + $0x238] sm:$0xff] }
  0x95   : > { %697 = vmatprep.mubr.f32.mxu0 %v397_v39  ;;  %817 = vmatprep.mubr.f32.mxu1 %v469_v40  ;;  %v445_v39 = vld [vmem:[%s1774_s23 + $0x1e8] sm:$0xff]  ;;  %v458_v40 = vld [vmem:[%s1774_s23 + $0x250] sm:$0xff] }
  0x98   : > { %698 = vmatmul.mubr.f32.gmra.mrb[8].mxu0 %v396_v41  ;;  %818 = vmatmul.mubr.f32.gmra.mrb[8].mxu1 %v468_v42  ;;  %v444_v41 = vld [vmem:[%s1774_s23 + $0x1e0] sm:$0xff]  ;;  %v461_v42 = vld [vmem:[%s1774_s23 + $0x268] sm:$0xff] }
  0x99   : > { %702 = vmatprep.mubr.f32.mxu0 %v400_v43  ;;  %822 = vmatprep.mubr.f32.mxu1 %v472_v44  ;;  %v448_v43 = vld [vmem:[%s1774_s23 + $0x200] sm:$0xff] }
  0x9a   : > { %v464_v44 = vld [vmem:[%s1774_s23 + $0x280] sm:$0xff] }
  0x9c   : > { %703 = vmatmul.mubr.f32.gmra.mrb[10].mxu0 %v399_v45  ;;  %823 = vmatmul.mubr.f32.gmra.mrb[10].mxu1 %v471_v46  ;;  %v447_v45 = vld [vmem:[%s1774_s23 + $0x1f8] sm:$0xff] }
  0x9d   : > { %707 = vmatprep.mubr.f32.mxu0 %v403_v47  ;;  %827 = vmatprep.mubr.f32.mxu1 %v475_v48  ;;  %v467_v46 = vld [vmem:[%s1774_s23 + $0x298] sm:$0xff]  ;;  %v470_v48 = vld [vmem:[%s1774_s23 + $0x2b0] sm:$0xff] }
  0x9e   : > { %v451_v47 = vld [vmem:[%s1774_s23 + $0x218] sm:$0xff] }
  0xa0   : > { %708 = vmatmul.mubr.f32.gmra.mrb[12].mxu0 %v402_v49  ;;  %828 = vmatmul.mubr.f32.gmra.mrb[12].mxu1 %v474_v50  ;;  %v450_v49 = vld [vmem:[%s1774_s23 + $0x210] sm:$0xff]  ;;  %v473_v50 = vld [vmem:[%s1774_s23 + $0x2c8] sm:$0xff] }
  0xa1   : > { %712 = vmatprep.mubr.f32.mxu0 %v406_v51  ;;  %832 = vmatprep.mubr.f32.mxu1 %v478_v52  ;;  %v454_v51 = vld [vmem:[%s1774_s23 + $0x230] sm:$0xff]  ;;  %v476_v52 = vld [vmem:[%s1774_s23 + $0x2e0] sm:$0xff] }
  0xa4   : > { %713 = vmatmul.mubr.f32.gmra.mrb[14].mxu0 %v405_v53  ;;  %833 = vmatmul.mubr.f32.gmra.mrb[14].mxu1 %v477_v54  ;;  %v453_v53 = vld [vmem:[%s1774_s23 + $0x228] sm:$0xff]  ;;  %v479_v54 = vld [vmem:[%s1774_s23 + $0x2f8] sm:$0xff]  ;;  %s1221_s23 = sshll.u32 %s1213_s15, 3 }
  0xa5   : > { %717 = vmatprep.mubr.f32.mxu0 %v409_v55  ;;  %1302 = vmatprep.mubr.msk.f32.mxu1 %vm516_vm0, %v386_v56  ;;  %p379_p8 = scmp.lt.s32.totalorder %s1221_s23, 15 }
  0xa7   : > { %s2151_s23 = smov (!%p379_p8, %s1221_s23), 15 }
  0xa8   : > { %718 = vmatmul.mubr.f32.gmra.mrb[16].mxu0 %v408_v57  ;;  %1303 = vmatmul.mubr.msk.f32.vlgmr.msra.gmra.mrb[16].mxu1 %vm516_vm0, %v389_v58  ;;  %s1222_s11 = sshll.u32 %s2151_s23, 3 }
  0xa9   : > { %722 = vmatprep.mubr.f32.mxu0 %v412_v59  ;;  %1305 = vmatprep.mubr.msk.f32.mxu1 %vm516_vm0, %v392_v60  ;;  %s2086_s18 = scalar_lea.vmem %s2146_s3, %s1222_s11 }
  0xac   : > { %723 = vmatmul.mubr.f32.gmra.mrb[18].mxu0 %v411_v61  ;;  %1306 = vmatmul.mubr.msk.f32.gmra.mrb[18].mxu1 %vm516_vm0, %v395_v62 }
  0xad   : > { %727 = vmatprep.mubr.f32.mxu0 %v415_v63  ;;  %1308 = vmatprep.mubr.msk.f32.mxu1 %vm516_vm0, %v398_v0 }
  0xb0   : > { %728 = vmatmul.mubr.f32.gmra.mrb[20].mxu0 %v414_v1  ;;  %1309 = vmatmul.mubr.msk.f32.gmra.mrb[20].mxu1 %vm516_vm0, %v401_v2 }
  0xb1   : > { %732 = vmatprep.mubr.f32.mxu0 %v418_v3  ;;  %1311 = vmatprep.mubr.msk.f32.mxu1 %vm516_vm0, %v404_v4 }
  0xb4   : > { %733 = vmatmul.mubr.f32.gmra.mrb[22].mxu0 %v417_v5  ;;  %1312 = vmatmul.mubr.msk.f32.gmra.mrb[22].mxu1 %vm516_vm0, %v407_v6 }
  0xb5   : > { %737 = vmatprep.mubr.f32.mxu0 %v421_v7  ;;  %1314 = vmatprep.mubr.msk.f32.mxu1 %vm516_vm0, %v410_v8 }
  0xb8   : > { %738 = vmatmul.mubr.f32.gmra.mrb[24].mxu0 %v420_v9  ;;  %1315 = vmatmul.mubr.msk.f32.gmra.mrb[24].mxu1 %vm516_vm0, %v413_v10 }
  0xb9   : > { %742 = vmatprep.mubr.f32.mxu0 %v424_v11  ;;  %1317 = vmatprep.mubr.msk.f32.mxu1 %vm516_vm0, %v416_v12 }
  0xbc   : > { %743 = vmatmul.mubr.f32.gmra.mrb[26].mxu0 %v423_v13  ;;  %1318 = vmatmul.mubr.msk.f32.gmra.mrb[26].mxu1 %vm516_vm0, %v419_v14 }
  0xbd   : > { %747 = vmatprep.mubr.f32.mxu0 %v427_v15  ;;  %1320 = vmatprep.mubr.msk.f32.mxu1 %vm516_vm0, %v422_v16 }
  0xc0   : > { %748 = vmatmul.mubr.f32.gmra.mrb[28].mxu0 %v426_v17  ;;  %1321 = vmatmul.mubr.msk.f32.gmra.mrb[28].mxu1 %vm516_vm0, %v425_v18 }
  0xc1   : > { %752 = vmatprep.mubr.f32.mxu0 %v430_v19  ;;  %1323 = vmatprep.mubr.msk.f32.mxu1 %vm516_vm0, %v428_v20 }
  0xc4   : > { %753 = vmatmul.mubr.f32.gmra.mrb[30].mxu0 %v429_v21  ;;  %1324 = vmatmul.mubr.msk.f32.gmra.mrb[30].mxu1 %vm516_vm0, %v431_v22 }
  0xc5   : > { %757 = vmatprep.mubr.f32.mxu0 %v433_v23  ;;  %1326 = vmatprep.mubr.msk.f32.mxu1 %vm516_vm0, %v434_v24 }
  0xc8   : > { %758 = vmatmul.mubr.f32.gmra.mrb[32].mxu0 %v432_v25  ;;  %1327 = vmatmul.mubr.msk.f32.gmra.mrb[32].mxu1 %vm516_vm0, %v437_v26 }
  0xc9   : > { %762 = vmatprep.mubr.f32.mxu0 %v436_v27  ;;  %1329 = vmatprep.mubr.msk.f32.mxu1 %vm516_vm0, %v440_v28 }
  0xcc   : > { %763 = vmatmul.mubr.f32.gmra.mrb[34].mxu0 %v435_v29  ;;  %1330 = vmatmul.mubr.msk.f32.gmra.mrb[34].mxu1 %vm516_vm0, %v443_v30 }
  0xcd   : > { %767 = vmatprep.mubr.f32.mxu0 %v439_v31  ;;  %1332 = vmatprep.mubr.msk.f32.mxu1 %vm516_vm0, %v446_v32 }
  0xd0   : > { %768 = vmatmul.mubr.f32.gmra.mrb[36].mxu0 %v438_v33  ;;  %1333 = vmatmul.mubr.msk.f32.gmra.mrb[36].mxu1 %vm516_vm0, %v449_v34 }
  0xd1   : > { %772 = vmatprep.mubr.f32.mxu0 %v442_v35  ;;  %1335 = vmatprep.mubr.msk.f32.mxu1 %vm516_vm0, %v452_v36 }
  0xd4   : > { %773 = vmatmul.mubr.f32.gmra.mrb[38].mxu0 %v441_v37  ;;  %1336 = vmatmul.mubr.msk.f32.gmra.mrb[38].mxu1 %vm516_vm0, %v455_v38 }
  0xd5   : > { %777 = vmatprep.mubr.f32.mxu0 %v445_v39  ;;  %1338 = vmatprep.mubr.msk.f32.mxu1 %vm516_vm0, %v458_v40 }
  0xd8   : > { %778 = vmatmul.mubr.f32.gmra.mrb[40].mxu0 %v444_v41  ;;  %1339 = vmatmul.mubr.msk.f32.gmra.mrb[40].mxu1 %vm516_vm0, %v461_v42 }
  0xd9   : > { %782 = vmatprep.mubr.f32.mxu0 %v448_v43  ;;  %1341 = vmatprep.mubr.msk.f32.mxu1 %vm516_vm0, %v464_v44 }
  0xdc   : > { %783 = vmatmul.mubr.f32.gmra.mrb[42].mxu0 %v447_v45  ;;  %1342 = vmatmul.mubr.msk.f32.gmra.mrb[42].mxu1 %vm516_vm0, %v467_v46 }
  0xdd   : > { %787 = vmatprep.mubr.f32.mxu0 %v451_v47  ;;  %1344 = vmatprep.mubr.msk.f32.mxu1 %vm516_vm0, %v470_v48 }
  0xe0   : > { %788 = vmatmul.mubr.f32.gmra.mrb[44].mxu0 %v450_v49  ;;  %1345 = vmatmul.mubr.msk.f32.gmra.mrb[44].mxu1 %vm516_vm0, %v473_v50 }
  0xe1   : > { %792 = vmatprep.mubr.f32.mxu0 %v454_v51  ;;  %1347 = vmatprep.mubr.msk.f32.mxu1 %vm516_vm0, %v476_v52 }
  0xe4   : > { %793 = vmatmul.mubr.f32.gmra.mrb[46].mxu0 %v453_v53  ;;  %1348 = vmatmul.mubr.msk.f32.gmra.mrb[46].mxu1 %vm516_vm0, %v479_v54 }
 0x15b   : > { %v679_v55 = vpop.f32.mrb[0].mxu0  ;;  %v2014_v56 = vpop.f32.mrb[0].mxu1 }
 0x15c   : > { %v681_v57 = vpop.f32.mrb[1].mxu0  ;;  %v801_v58 = vpop.f32.mrb[1].mxu1 }
 0x15f   : > { %v684_v59 = vpop.f32.mrb[2].mxu0  ;;  %v2016_v60 = vpop.f32.mrb[2].mxu1 }
 0x160   : > { %v686_v61 = vpop.f32.mrb[3].mxu0  ;;  %v806_v62 = vpop.f32.mrb[3].mxu1 }
 0x163   : > { %v689_v63 = vpop.f32.mrb[4].mxu0  ;;  %v2018_v0 = vpop.f32.mrb[4].mxu1 }
 0x164   : > { %v691_v1 = vpop.f32.mrb[5].mxu0  ;;  %v811_v2 = vpop.f32.mrb[5].mxu1 }
 0x167   : > { %v694_v3 = vpop.f32.mrb[6].mxu0  ;;  %v2020_v4 = vpop.f32.mrb[6].mxu1 }
 0x168   : > { %v696_v5 = vpop.f32.mrb[7].mxu0  ;;  %v816_v6 = vpop.f32.mrb[7].mxu1 }
 0x16b   : > { %v699_v7 = vpop.f32.mrb[8].mxu0  ;;  %v2022_v8 = vpop.f32.mrb[8].mxu1 }
 0x16c   : > { %v701_v9 = vpop.f32.mrb[9].mxu0  ;;  %v821_v10 = vpop.f32.mrb[9].mxu1 }
 0x16f   : > { %v704_v11 = vpop.f32.mrb[10].mxu0  ;;  %v2024_v12 = vpop.f32.mrb[10].mxu1 }
 0x170   : > { %v706_v13 = vpop.f32.mrb[11].mxu0  ;;  %v826_v14 = vpop.f32.mrb[11].mxu1 }
 0x173   : > { %v709_v15 = vpop.f32.mrb[12].mxu0  ;;  %v2026_v16 = vpop.f32.mrb[12].mxu1 }
 0x174   : > { %v711_v17 = vpop.f32.mrb[13].mxu0  ;;  %v831_v18 = vpop.f32.mrb[13].mxu1 }
 0x177   : > { %v714_v19 = vpop.f32.mrb[14].mxu0  ;;  %v2028_v20 = vpop.f32.mrb[14].mxu1 }
 0x178   : > { %v716_v21 = vpop.f32.mrb[15].mxu0  ;;  %v836_v22 = vpop.f32.mrb[15].mxu1 }
 0x17b   : > { %v719_v23 = vpop.f32.mrb[16].mxu0  ;;  %v1304_v24 = vpop.f32.mrb[16].mxu1 }
 0x17c   : > { %v910_v25 = vadd.f32 %v1304_v24, %v684_v59  ;;  %v721_v26 = vpop.f32.mrb[17].mxu0  ;;  %v904_v27 = vpop.f32.mrb[17].mxu1 }
 0x17d   : > { %v905_v28 = vadd.f32 %v904_v27, %v679_v55 }
 0x17e   : > { %v1071_v53 = vsel %vm1063_vm1, %v910_v25, -inf }
 0x17f   : > { %v724_v29 = vpop.f32.mrb[18].mxu0  ;;  %v1307_v30 = vpop.f32.mrb[18].mxu1  ;;  %v1064_v55 = vsel %vm1063_vm1, %v905_v28, -inf }
 0x180   : > { %v920_v31 = vadd.f32 %v1307_v30, %v694_v3  ;;  %v726_v32 = vpop.f32.mrb[19].mxu0  ;;  %v914_v33 = vpop.f32.mrb[19].mxu1 }
 0x181   : > { %v915_v34 = vadd.f32 %v914_v33, %v689_v63 }
 0x182   : > { %v1085_v5 = vsel %vm1063_vm1, %v920_v31, -inf }
 0x183   : > { %v729_v35 = vpop.f32.mrb[20].mxu0  ;;  %v1310_v36 = vpop.f32.mrb[20].mxu1 }
 0x184   : > { %v930_v37 = vadd.f32 %v1310_v36, %v704_v11  ;;  %v731_v38 = vpop.f32.mrb[21].mxu0  ;;  %v924_v39 = vpop.f32.mrb[21].mxu1 }
 0x185   : > { %v925_v40 = vadd.f32 %v924_v39, %v699_v7  ;;  %v1078_v7 = vsel %vm1063_vm1, %v915_v34, -inf }
 0x186   : > { %v2039_v21 = vsel %vm1063_vm1, %v930_v37, -inf }
 0x187   : > { %v734_v41 = vpop.f32.mrb[22].mxu0  ;;  %v1313_v42 = vpop.f32.mrb[22].mxu1 }
 0x188   : > { %v940_v43 = vadd.f32 %v1313_v42, %v714_v19  ;;  %v736_v44 = vpop.f32.mrb[23].mxu0  ;;  %v934_v45 = vpop.f32.mrb[23].mxu1 }
 0x189   : > { %v935_v46 = vadd.f32 %v934_v45, %v709_v15 }
 0x18a   : > { %v2049_v33 = vsel %vm1063_vm1, %v940_v43, -inf }
 0x18b   : > { %v739_v47 = vpop.f32.mrb[24].mxu0  ;;  %v1316_v48 = vpop.f32.mrb[24].mxu1 }
 0x18c   : > { %v950_v49 = vadd.f32 %v1316_v48, %v724_v29  ;;  %v741_v50 = vpop.f32.mrb[25].mxu0  ;;  %v944_v51 = vpop.f32.mrb[25].mxu1 }
 0x18d   : > { %v945_v52 = vadd.f32 %v944_v51, %v719_v23  ;;  %v1092_v23 = vsel %vm1063_vm1, %v925_v40, -inf }
 0x18e   : > { %v1072_v54 = vsel %vm1063_vm1, %v950_v49, -inf }
 0x18f   : > { %v1073_v57 = vmax.f32 %v1071_v53, %v1072_v54  ;;  %v1065_v58 = vsel %vm1063_vm1, %v945_v52, -inf  ;;  %v744_v59 = vpop.f32.mrb[26].mxu0  ;;  %v1319_v61 = vpop.f32.mrb[26].mxu1 }
 0x190   : > { %v1066_v62 = vmax.f32 %v1064_v55, %v1065_v58  ;;  %v960_v63 = vadd.f32 %v1319_v61, %v734_v41  ;;  %v746_v1 = vpop.f32.mrb[27].mxu0  ;;  %v954_v2 = vpop.f32.mrb[27].mxu1 }
 0x191   : > { %v955_v3 = vadd.f32 %v954_v2, %v729_v35  ;;  %v2055_v35 = vsel %vm1063_vm1, %v935_v46, -inf }
 0x192   : > { %v1086_v6 = vsel %vm1063_vm1, %v960_v63, -inf }
 0x193   : > { %v1087_v9 = vmax.f32 %v1085_v5, %v1086_v6  ;;  %v1079_v10 = vsel %vm1063_vm1, %v955_v3, -inf  ;;  %v749_v11 = vpop.f32.mrb[28].mxu0  ;;  %v1322_v13 = vpop.f32.mrb[28].mxu1 }
 0x194   : > { %v1080_v14 = vmax.f32 %v1078_v7, %v1079_v10  ;;  %v970_v15 = vadd.f32 %v1322_v13, %v744_v59  ;;  %v751_v17 = vpop.f32.mrb[29].mxu0  ;;  %v964_v18 = vpop.f32.mrb[29].mxu1 }
 0x195   : > { %v965_v19 = vadd.f32 %v964_v18, %v739_v47 }
 0x196   : > { %v2042_v22 = vsel %vm1063_vm1, %v970_v15, -inf }
 0x197   : > { %v1101_v24 = vmax.f32 %v2039_v21, %v2042_v22  ;;  %v1093_v25 = vsel %vm1063_vm1, %v965_v19, -inf  ;;  %v754_v26 = vpop.f32.mrb[30].mxu0  ;;  %v1325_v27 = vpop.f32.mrb[30].mxu1 }
 0x198   : > { %v1094_v28 = vmax.f32 %v1092_v23, %v1093_v25  ;;  %v980_v29 = vadd.f32 %v1325_v27, %v754_v26  ;;  %v756_v30 = vpop.f32.mrb[31].mxu0  ;;  %v974_v31 = vpop.f32.mrb[31].mxu1  ;;  %v2077_v23 = vld [vmem:[%s2145_s2] ss:$0 sm:$0xff] }
 0x199   : > { %v975_v32 = vadd.f32 %v974_v31, %v749_v11 }
 0x19a   : > { %v2052_v34 = vsel %vm1063_vm1, %v980_v29, -inf }
 0x19b   : > { %v1115_v36 = vmax.f32 %v2049_v33, %v2052_v34  ;;  %v2060_v37 = vsel %vm1063_vm1, %v975_v32, -inf  ;;  %v759_v38 = vpop.f32.mrb[32].mxu0  ;;  %v1328_v39 = vpop.f32.mrb[32].mxu1 }
 0x19c   : > { %v1108_v40 = vmax.f32 %v2055_v35, %v2060_v37  ;;  %v761_v41 = vpop.f32.mrb[33].mxu0  ;;  %v984_v42 = vpop.f32.mrb[33].mxu1 }
 0x19d   : > { %v985_v43 = vadd.f32 %v984_v42, %v759_v38 }
 0x19f   : > { %v1067_v44 = vsel %vm1063_vm1, %v985_v43, -inf  ;;  %v764_v45 = vpop.f32.mrb[34].mxu0  ;;  %v1331_v46 = vpop.f32.mrb[34].mxu1 }
 0x1a0   : > { %v1068_v47 = vmax.f32 %v1066_v62, %v1067_v44  ;;  %v990_v48 = vadd.f32 %v1328_v39, %v764_v45  ;;  %v766_v49 = vpop.f32.mrb[35].mxu0  ;;  %v994_v50 = vpop.f32.mrb[35].mxu1 }
 0x1a2   : > { %v1074_v51 = vsel %vm1063_vm1, %v990_v48, -inf }
 0x1a3   : > { %v1075_v52 = vmax.f32 %v1073_v57, %v1074_v51  ;;  %v769_v53 = vpop.f32.mrb[36].mxu0  ;;  %v1334_v54 = vpop.f32.mrb[36].mxu1 }
 0x1a4   : > { %v995_v55 = vadd.f32 %v994_v50, %v769_v53  ;;  %v771_v58 = vpop.f32.mrb[37].mxu0  ;;  %v1004_v59 = vpop.f32.mrb[37].mxu1 }
 0x1a6   : > { %v1081_v61 = vsel %vm1063_vm1, %v995_v55, -inf }
 0x1a7   : > { %v1082_v63 = vmax.f32 %v1080_v14, %v1081_v61  ;;  %v774_v1 = vpop.f32.mrb[38].mxu0  ;;  %v1337_v2 = vpop.f32.mrb[38].mxu1 }
 0x1a8   : > { %v1000_v62 = vadd.f32 %v1331_v46, %v774_v1  ;;  %v776_v3 = vpop.f32.mrb[39].mxu0  ;;  %v1014_v5 = vpop.f32.mrb[39].mxu1 }
 0x1aa   : > { %v1088_v6 = vsel %vm1063_vm1, %v1000_v62, -inf }
 0x1ab   : > { %v1089_v7 = vmax.f32 %v1087_v9, %v1088_v6  ;;  %v779_v57 = vpop.f32.mrb[40].mxu0  ;;  %v1340_v10 = vpop.f32.mrb[40].mxu1 }
 0x1ac   : > { %v1005_v11 = vadd.f32 %v1004_v59, %v779_v57  ;;  %v1030_v13 = vadd.f32 %v1340_v10, %v2016_v60  ;;  %v781_v15 = vpop.f32.mrb[41].mxu0  ;;  %v1024_v17 = vpop.f32.mrb[41].mxu1 }
 0x1ad   : > { %v1025_v18 = vadd.f32 %v1024_v17, %v2014_v56 }
 0x1ae   : > { %v1095_v14 = vsel %vm1063_vm1, %v1005_v11, -inf  ;;  %v1076_v19 = vsel %vm1063_vm1, %v1030_v13, -inf }
 0x1af   : > { %v1096_v9 = vmax.f32 %v1094_v28, %v1095_v14  ;;  %v1077_v25 = vmax.f32 %v1075_v52, %v1076_v19  ;;  %v1069_v26 = vsel %vm1063_vm1, %v1025_v18, -inf  ;;  %v784_v27 = vpop.f32.mrb[42].mxu0  ;;  %v1343_v60 = vpop.f32.mrb[42].mxu1 }
 0x1b0   : > { %v1070_v29 = vmax.f32 %v1068_v47, %v1069_v26  ;;  %v1010_v30 = vadd.f32 %v1334_v54, %v784_v27  ;;  %v1040_v56 = vadd.f32 %v1343_v60, %v2020_v4  ;;  %v786_v31 = vpop.f32.mrb[43].mxu0  ;;  %v1034_v32 = vpop.f32.mrb[43].mxu1 }
 0x1b1   : > { %v1128_v38 = vadd.f32 %v2077_v23, %v1077_v25  ;;  %v1035_v39 = vadd.f32 %v1034_v32, %v2018_v0 }
 0x1b2   : > { %v1127_v28 = vadd.f32 %v2077_v23, %v1070_v29  ;;  %v1102_v41 = vsel %vm1063_vm1, %v1010_v30, -inf  ;;  %v1090_v42 = vsel %vm1063_vm1, %v1040_v56, -inf }
 0x1b3   : > { %v1136_v4 = vmax.f32 %v1128_v38, 0.0  ;;  %v1103_v43 = vmax.f32 %v1101_v24, %v1102_v41  ;;  %v1091_v44 = vmax.f32 %v1089_v7, %v1090_v42  ;;  %v1083_v0 = vsel %vm1063_vm1, %v1035_v39, -inf  ;;  %v789_v45 = vpop.f32.mrb[44].mxu0  ;;  %v1346_v46 = vpop.f32.mrb[44].mxu1 }
 0x1b4   : > { %v1135_v47 = vmax.f32 %v1127_v28, 0.0  ;;  %v1084_v48 = vmax.f32 %v1082_v63, %v1083_v0  ;;  %v1015_v49 = vadd.f32 %v1014_v5, %v789_v45  ;;  %v1050_v50 = vadd.f32 %v1346_v46, %v2024_v12  ;;  %v791_v51 = vpop.f32.mrb[45].mxu0  ;;  %v1044_v52 = vpop.f32.mrb[45].mxu1 }
 0x1b5   : > { %1144 = vst.msk [vmem:[%s2086_s18 + $0x8] sm:$0xff] %vm1063_vm1, %v1136_v4  ;;  %v1130_v53 = vadd.f32 %v2077_v23, %v1091_v44  ;;  %v1045_v54 = vadd.f32 %v1044_v52, %v2022_v8 }
 0x1b6   : > { %1143 = vst.msk [vmem:[%s2086_s18] sm:$0xff] %vm1063_vm1, %v1135_v47  ;;  %v1129_v21 = vadd.f32 %v2077_v23, %v1084_v48  ;;  %v1109_v22 = vsel %vm1063_vm1, %v1015_v49, -inf  ;;  %v1104_v24 = vsel %vm1063_vm1, %v1050_v50, -inf }
 0x1b7   : > { %v1138_v55 = vmax.f32 %v1130_v53, 0.0  ;;  %v1110_v12 = vmax.f32 %v1108_v40, %v1109_v22  ;;  %v1105_v58 = vmax.f32 %v1103_v43, %v1104_v24  ;;  %v1097_v59 = vsel %vm1063_vm1, %v1045_v54, -inf  ;;  %v794_v61 = vpop.f32.mrb[46].mxu0  ;;  %v1349_v8 = vpop.f32.mrb[46].mxu1 }
 0x1b8   : > { %v1137_v63 = vmax.f32 %v1129_v21, 0.0  ;;  %v1098_v1 = vmax.f32 %v1096_v9, %v1097_v59  ;;  %v1020_v62 = vadd.f32 %v1337_v2, %v794_v61  ;;  %v1060_v3 = vadd.f32 %v1349_v8, %v2028_v20  ;;  %v796_v5 = vpop.f32.mrb[47].mxu0  ;;  %v1054_v6 = vpop.f32.mrb[47].mxu1 }
 0x1b9   : > { %1146 = vst.msk [vmem:[%s2086_s18 + $0x18] sm:$0xff] %vm1063_vm1, %v1138_v55  ;;  %v1132_v7 = vadd.f32 %v2077_v23, %v1105_v58  ;;  %v1055_v35 = vadd.f32 %v1054_v6, %v2026_v16 }
 0x1ba   : > { %1145 = vst.msk [vmem:[%s2086_s18 + $0x10] sm:$0xff] %vm1063_vm1, %v1137_v63  ;;  %v1131_v37 = vadd.f32 %v2077_v23, %v1098_v1  ;;  %v1116_v40 = vsel %vm1063_vm1, %v1020_v62, -inf  ;;  %v1118_v11 = vsel %vm1063_vm1, %v1060_v3, -inf }
 0x1bb   : > { %v1140_v2 = vmax.f32 %v1132_v7, 0.0  ;;  %v1117_v20 = vmax.f32 %v1115_v36, %v1116_v40  ;;  %v1111_v57 = vsel %vm1063_vm1, %v1055_v35, -inf }
 0x1bc   : > { %v1139_v10 = vmax.f32 %v1131_v37, 0.0  ;;  %v1112_v13 = vmax.f32 %v1110_v12, %v1111_v57 }
 0x1bd   : > { %1148 = vst.msk [vmem:[%s2086_s18 + $0x28] sm:$0xff] %vm1063_vm1, %v1140_v2  ;;  %v1119_v16 = vmax.f32 %v1117_v20, %v1118_v11 }
 0x1be   : > { %1147 = vst.msk [vmem:[%s2086_s18 + $0x20] sm:$0xff] %vm1063_vm1, %v1139_v10  ;;  %v1133_v15 = vadd.f32 %v2077_v23, %v1112_v13 }
 0x1bf   : > { %v1134_v17 = vadd.f32 %v2077_v23, %v1119_v16 }
 0x1c0   : > { %v1141_v18 = vmax.f32 %v1133_v15, 0.0 }
 0x1c1   : > { %v1142_v14 = vmax.f32 %v1134_v17, 0.0 }
 0x1c2   : > { %1149 = vst.msk [vmem:[%s2086_s18 + $0x30] sm:$0xff] %vm1063_vm1, %v1141_v18 }
 0x1c3   : > { %1150 = vst.msk [vmem:[%s2086_s18 + $0x38] sm:$0xff] %vm1063_vm1, %v1142_v14 }
 0x1c4 PF: > { %p10_p9 = scmp.ge.s32.totalorder %s1528_s16, 4   ;;  %s2147_s12 = smov %s1484_s13 }
 0x1c5   : > { %s2148_s13 = smov %s1537_s19  ;;  %s2149_s14 = smov %s1528_s16 }
 0x1c6   :  { %12 = sbr.rel (!%p10_p9) target bundleno = 2 (0x2), region = 90 }

// kernel: traffic_light_cnn_forward.5
= control target key start
LH: loop header
LB: loop body
LE: loop exit
PB: predicated region body
PF: predicated region fallthrough
CT: control target
= control target key end

     0   :  { %vm3954_vm0 = vmmov 0   ;;  %vm2938_vm1 = vcmask 15360   ;;  %s4859_s1 = inlined_call_operand.vmem [shape: bf16[4096,128], index: 1, kind: input, shape index: {}]   ;;  %s4860_s0 = inlined_call_operand.vmem [shape: bf16[8,4096], index: 0, kind: input, shape index: {}]   ;;  %s4861_s2 = inlined_call_operand.vmem [shape: f32[1,128], index: 2, kind: input, shape index: {}]   ;;  %s4862_s3 = inlined_call_operand.vmem [shape: f32[128,2], index: 3, kind: input, shape index: {}]   ;;  %s4863_s4 = inlined_call_operand.vmem [shape: f32[1,2], index: 4, kind: input, shape index: {}]   ;;  %s4864_s5 = inlined_call_operand.vmem [shape: f32[8,2], index: 5, kind: output, shape index: {}]  }
   0x1   :  { %v3665_v0 = vld [vmem:[%s4859_s1 + $0x40] sm:$0xff]   ;;  %v3669_v4 = vld [vmem:[%s4859_s1 + $0x48] sm:$0xff]   ;;  %v3673_v8 = vld [vmem:[%s4859_s1 + $0x50] sm:$0xff]  }
   0x2   :  { %v3666_v1 = vld [vmem:[%s4859_s1 + $0xc0] sm:$0xff]   ;;  %3234 = vmatprep.subr.bf16.mxu0 %v3665_v0  ;;  %v3670_v5 = vld [vmem:[%s4859_s1 + $0xc8] sm:$0xff]   ;;  %v3674_v9 = vld [vmem:[%s4859_s1 + $0xd0] sm:$0xff]  }
   0x3   :  { %v3667_v2 = vld [vmem:[%s4859_s1] sm:$0xff]   ;;  %3256 = vmatprep.subr.bf16.mxu1 %v3666_v1  ;;  %v3671_v6 = vld [vmem:[%s4859_s1 + $0x8] sm:$0xff]   ;;  %v3675_v10 = vld [vmem:[%s4859_s1 + $0x10] sm:$0xff]  }
   0x4   :  { %v3668_v3 = vld [vmem:[%s4859_s1 + $0x80] sm:$0xff]   ;;  %3235 = vmatpush3.bf16.msra.mxu0 %v3667_v2  ;;  %v3672_v7 = vld [vmem:[%s4859_s1 + $0x88] sm:$0xff]   ;;  %v3676_v11 = vld [vmem:[%s4859_s1 + $0x90] sm:$0xff]  }
   0x5   :  { %3257 = vmatpush3.bf16.msra.mxu1 %v3668_v3  ;;  %3236 = vmatprep.subr.bf16.mxu0 %v3669_v4  ;;  %v3677_v12 = vld [vmem:[%s4859_s1 + $0x58] sm:$0xff]   ;;  %v3681_v16 = vld [vmem:[%s4859_s1 + $0x60] sm:$0xff]   ;;  %v3685_v20 = vld [vmem:[%s4859_s1 + $0x68] sm:$0xff]  }
   0x6   :  { %3258 = vmatprep.subr.bf16.mxu1 %v3670_v5  ;;  %v3678_v13 = vld [vmem:[%s4859_s1 + $0xd8] sm:$0xff]   ;;  %v3682_v17 = vld [vmem:[%s4859_s1 + $0xe0] sm:$0xff]   ;;  %v3686_v21 = vld [vmem:[%s4859_s1 + $0xe8] sm:$0xff]  }
   0x7   :  { %v3679_v14 = vld [vmem:[%s4859_s1 + $0x18] sm:$0xff]   ;;  %v3683_v18 = vld [vmem:[%s4859_s1 + $0x20] sm:$0xff]   ;;  %v3687_v22 = vld [vmem:[%s4859_s1 + $0x28] sm:$0xff]  }
   0x8   :  { %3237 = vmatpush3.bf16.msra.mxu0 %v3671_v6  ;;  %v3680_v15 = vld [vmem:[%s4859_s1 + $0x98] sm:$0xff]   ;;  %v3684_v19 = vld [vmem:[%s4859_s1 + $0xa0] sm:$0xff]   ;;  %v3688_v23 = vld [vmem:[%s4859_s1 + $0xa8] sm:$0xff]  }
   0x9   :  { %3259 = vmatpush3.bf16.msra.mxu1 %v3672_v7  ;;  %3238 = vmatprep.subr.bf16.mxu0 %v3673_v8  ;;  %v3689_v24 = vld [vmem:[%s4859_s1 + $0x70] sm:$0xff]   ;;  %v3693_v28 = vld [vmem:[%s4859_s1 + $0x78] sm:$0xff]   ;;  %v21_v32 = vld [vmem:[%s4860_s0] sm:$0xff] }
   0xa   :  { %3260 = vmatprep.subr.bf16.mxu1 %v3674_v9  ;;  %v3690_v25 = vld [vmem:[%s4859_s1 + $0xf0] sm:$0xff]   ;;  %v3694_v29 = vld [vmem:[%s4859_s1 + $0xf8] sm:$0xff]   ;;  %v22_v33 = vld [vmem:[%s4860_s0 + $0x8] sm:$0xff]  ;;  %v2945_v34 = vcombine.low %v21_v32, %v21_v32  ;;  %v2946_v35 = vcombine.high %v21_v32, %v21_v32 }
   0xb   :  { %v3691_v26 = vld [vmem:[%s4859_s1 + $0x30] sm:$0xff]   ;;  %v3695_v30 = vld [vmem:[%s4859_s1 + $0x38] sm:$0xff]   ;;  %v2947_v36 = vcombine.low %v22_v33, %v22_v33  ;;  %v2948_v37 = vcombine.high %v22_v33, %v22_v33  ;;  %v3701_v38 = vld [vmem:[%s4859_s1 + $0x140] sm:$0xff]  }
   0xc   :  { %3239 = vmatpush3.bf16.msra.mxu0 %v3675_v10  ;;  %v3692_v27 = vld [vmem:[%s4859_s1 + $0xb0] sm:$0xff]   ;;  %v3696_v31 = vld [vmem:[%s4859_s1 + $0xb8] sm:$0xff]   ;;  %v3702_v39 = vld [vmem:[%s4859_s1 + $0x1c0] sm:$0xff]   ;;  %2236 = vmatprep.mubr.bf16.mxu0 %v2946_v35 }
   0xd   :  { %3261 = vmatpush3.bf16.msra.mxu1 %v3676_v11  ;;  %3240 = vmatprep.subr.bf16.mxu0 %v3677_v12  ;;  %v3703_v40 = vld [vmem:[%s4859_s1 + $0x100] sm:$0xff]   ;;  %v3705_v42 = vld [vmem:[%s4859_s1 + $0x148] sm:$0xff]   ;;  %v3709_v46 = vld [vmem:[%s4859_s1 + $0x150] sm:$0xff]  }
   0xe   :  { %3262 = vmatprep.subr.bf16.mxu1 %v3678_v13  ;;  %2276 = vmatprep.mubr.bf16.mxu1 %v2948_v37  ;;  %v3704_v41 = vld [vmem:[%s4859_s1 + $0x180] sm:$0xff]   ;;  %v3706_v43 = vld [vmem:[%s4859_s1 + $0x1c8] sm:$0xff]   ;;  %v3710_v47 = vld [vmem:[%s4859_s1 + $0x1d0] sm:$0xff]  }
   0xf   :  { %v3707_v44 = vld [vmem:[%s4859_s1 + $0x108] sm:$0xff]   ;;  %v3711_v48 = vld [vmem:[%s4859_s1 + $0x110] sm:$0xff]   ;;  %v3713_v50 = vld [vmem:[%s4859_s1 + $0x158] sm:$0xff]  }
  0x10   :  { %3241 = vmatpush3.bf16.msra.mxu0 %v3679_v14  ;;  %v3708_v45 = vld [vmem:[%s4859_s1 + $0x188] sm:$0xff]   ;;  %v3712_v49 = vld [vmem:[%s4859_s1 + $0x190] sm:$0xff]   ;;  %v3714_v51 = vld [vmem:[%s4859_s1 + $0x1d8] sm:$0xff]  }
  0x11   :  { %3263 = vmatpush3.bf16.msra.mxu1 %v3680_v15  ;;  %3242 = vmatprep.subr.bf16.mxu0 %v3681_v16  ;;  %v3715_v52 = vld [vmem:[%s4859_s1 + $0x118] sm:$0xff]   ;;  %v3717_v54 = vld [vmem:[%s4859_s1 + $0x160] sm:$0xff]   ;;  %v3721_v58 = vld [vmem:[%s4859_s1 + $0x168] sm:$0xff]  }
  0x12   :  { %3264 = vmatprep.subr.bf16.mxu1 %v3682_v17  ;;  %v3716_v53 = vld [vmem:[%s4859_s1 + $0x198] sm:$0xff]   ;;  %v3718_v55 = vld [vmem:[%s4859_s1 + $0x1e0] sm:$0xff]   ;;  %v3722_v59 = vld [vmem:[%s4859_s1 + $0x1e8] sm:$0xff]  }
  0x13   :  { %v3719_v56 = vld [vmem:[%s4859_s1 + $0x120] sm:$0xff]   ;;  %v3723_v60 = vld [vmem:[%s4859_s1 + $0x128] sm:$0xff]   ;;  %v3725_v62 = vld [vmem:[%s4859_s1 + $0x170] sm:$0xff]  }
  0x14   :  { %3243 = vmatpush3.bf16.msra.mxu0 %v3683_v18  ;;  %v3720_v57 = vld [vmem:[%s4859_s1 + $0x1a0] sm:$0xff]   ;;  %v3724_v61 = vld [vmem:[%s4859_s1 + $0x1a8] sm:$0xff]   ;;  %v3726_v63 = vld [vmem:[%s4859_s1 + $0x1f0] sm:$0xff]  }
  0x15   :  { %3265 = vmatpush3.bf16.msra.mxu1 %v3684_v19  ;;  %3244 = vmatprep.subr.bf16.mxu0 %v3685_v20  ;;  %v3727_v0 = vld [vmem:[%s4859_s1 + $0x130] sm:$0xff]   ;;  %v3729_v2 = vld [vmem:[%s4859_s1 + $0x178] sm:$0xff]   ;;  %v3737_v12 = vld [vmem:[%s4859_s1 + $0x240] sm:$0xff]  }
  0x16   :  { %3266 = vmatprep.subr.bf16.mxu1 %v3686_v21  ;;  %v3728_v1 = vld [vmem:[%s4859_s1 + $0x1b0] sm:$0xff]   ;;  %v3730_v3 = vld [vmem:[%s4859_s1 + $0x1f8] sm:$0xff]   ;;  %v3738_v13 = vld [vmem:[%s4859_s1 + $0x2c0] sm:$0xff]  }
  0x17   :  { %v3731_v4 = vld [vmem:[%s4859_s1 + $0x138] sm:$0xff]   ;;  %v23_v6 = vld [vmem:[%s4860_s0 + $0x10] sm:$0xff]  ;;  %v3739_v14 = vld [vmem:[%s4859_s1 + $0x200] sm:$0xff]  }
  0x18   :  { %3245 = vmatpush3.bf16.msra.mxu0 %v3687_v22  ;;  %v3732_v5 = vld [vmem:[%s4859_s1 + $0x1b8] sm:$0xff]   ;;  %v2949_v7 = vcombine.low %v23_v6, %v23_v6  ;;  %v2950_v8 = vcombine.high %v23_v6, %v23_v6  ;;  %v3740_v15 = vld [vmem:[%s4859_s1 + $0x280] sm:$0xff]   ;;  %v3741_v16 = vld [vmem:[%s4859_s1 + $0x248] sm:$0xff]  }
  0x19   :  { %3267 = vmatpush3.bf16.msra.mxu1 %v3688_v23  ;;  %3246 = vmatprep.subr.bf16.mxu0 %v3689_v24  ;;  %v24_v9 = vld [vmem:[%s4860_s0 + $0x18] sm:$0xff]  ;;  %v3742_v17 = vld [vmem:[%s4859_s1 + $0x2c8] sm:$0xff]   ;;  %v3745_v20 = vld [vmem:[%s4859_s1 + $0x250] sm:$0xff]  }
  0x1a   :  { %3268 = vmatprep.subr.bf16.mxu1 %v3690_v25  ;;  %v2951_v10 = vcombine.low %v24_v9, %v24_v9  ;;  %v2952_v11 = vcombine.high %v24_v9, %v24_v9  ;;  %v3743_v18 = vld [vmem:[%s4859_s1 + $0x208] sm:$0xff]   ;;  %v3746_v21 = vld [vmem:[%s4859_s1 + $0x2d0] sm:$0xff]   ;;  %v3749_v24 = vld [vmem:[%s4859_s1 + $0x258] sm:$0xff]  }
  0x1b   :  { %v3744_v19 = vld [vmem:[%s4859_s1 + $0x288] sm:$0xff]   ;;  %v3747_v22 = vld [vmem:[%s4859_s1 + $0x210] sm:$0xff]   ;;  %v3750_v25 = vld [vmem:[%s4859_s1 + $0x2d8] sm:$0xff]  }
  0x1c   :  { %3247 = vmatpush3.bf16.msra.mxu0 %v3691_v26  ;;  %v3748_v23 = vld [vmem:[%s4859_s1 + $0x290] sm:$0xff]   ;;  %v3751_v26 = vld [vmem:[%s4859_s1 + $0x218] sm:$0xff]   ;;  %v3757_v32 = vld [vmem:[%s4859_s1 + $0x268] sm:$0xff]  }
  0x1d   :  { %3269 = vmatpush3.bf16.msra.mxu1 %v3692_v27  ;;  %3248 = vmatprep.subr.bf16.mxu0 %v3693_v28  ;;  %v3752_v27 = vld [vmem:[%s4859_s1 + $0x298] sm:$0xff]   ;;  %v3753_v28 = vld [vmem:[%s4859_s1 + $0x260] sm:$0xff]   ;;  %v3758_v33 = vld [vmem:[%s4859_s1 + $0x2e8] sm:$0xff]  }
  0x1e   :  { %3270 = vmatprep.subr.bf16.mxu1 %v3694_v29  ;;  %v3754_v29 = vld [vmem:[%s4859_s1 + $0x2e0] sm:$0xff]   ;;  %v3760_v35 = vld [vmem:[%s4859_s1 + $0x2a8] sm:$0xff]   ;;  %v3762_v37 = vld [vmem:[%s4859_s1 + $0x2f0] sm:$0xff]  }
  0x1f   :  { %v3793_v6 = vld [vmem:[%s4859_s1 + $0x368] sm:$0xff]  }
  0x20   :  { %3249 = vmatpush3.bf16.msra.mxu0 %v3695_v30  ;;  %v3755_v30 = vld [vmem:[%s4859_s1 + $0x220] sm:$0xff]   ;;  %v3796_v9 = vld [vmem:[%s4859_s1 + $0x3a8] sm:$0xff]  }
  0x21   :  { %3271 = vmatpush3.bf16.msra.mxu1 %v3696_v31  ;;  %3278 = vmatprep.subr.bf16.mxu0 %v3701_v38  ;;  %v3756_v31 = vld [vmem:[%s4859_s1 + $0x2a0] sm:$0xff]   ;;  %v3763_v38 = vld [vmem:[%s4859_s1 + $0x230] sm:$0xff]  }
  0x22   :  { %3300 = vmatprep.subr.bf16.mxu1 %v3702_v39  ;;  %v3764_v39 = vld [vmem:[%s4859_s1 + $0x2b0] sm:$0xff]  }
  0x23   :  { %2237 = vmatmul.mubr.bf16.vlgmr.msra.gmra.mrb[0].mxu0 %v2945_v34  ;;  %v3759_v34 = vld [vmem:[%s4859_s1 + $0x228] sm:$0xff]  }
  0x24   :  { %2277 = vmatmul.mubr.bf16.vlgmr.msra.gmra.mrb[0].mxu1 %v2947_v36  ;;  %3279 = vmatpush3.bf16.msra.mxu0 %v3703_v40  ;;  %v3761_v36 = vld [vmem:[%s4859_s1 + $0x270] sm:$0xff]   ;;  %v3765_v40 = vld [vmem:[%s4859_s1 + $0x278] sm:$0xff]  }
  0x25   :  { %3301 = vmatpush3.bf16.msra.mxu1 %v3704_v41  ;;  %3280 = vmatprep.subr.bf16.mxu0 %v3705_v42  ;;  %v3766_v41 = vld [vmem:[%s4859_s1 + $0x2f8] sm:$0xff]  }
  0x26   :  { %3302 = vmatprep.subr.bf16.mxu1 %v3706_v43  ;;  %2316 = vmatprep.mubr.bf16.mxu0 %v2950_v8  ;;  %v3767_v42 = vld [vmem:[%s4859_s1 + $0x238] sm:$0xff]   ;;  %v3795_v8 = vld [vmem:[%s4859_s1 + $0x328] sm:$0xff]  }
  0x27   :  { %2356 = vmatprep.mubr.bf16.mxu1 %v2952_v11  ;;  %v3768_v43 = vld [vmem:[%s4859_s1 + $0x2b8] sm:$0xff]   ;;  %v3798_v11 = vld [vmem:[%s4859_s1 + $0x3f0] sm:$0xff]  }
  0x28   :  { %3281 = vmatpush3.bf16.msra.mxu0 %v3707_v44  ;;  %v25_v44 = vld [vmem:[%s4860_s0 + $0x20] sm:$0xff] }
  0x29   :  { %3303 = vmatpush3.bf16.msra.mxu1 %v3708_v45  ;;  %3282 = vmatprep.subr.bf16.mxu0 %v3709_v46  ;;  %v26_v45 = vld [vmem:[%s4860_s0 + $0x28] sm:$0xff]  ;;  %v2953_v46 = vcombine.low %v25_v44, %v25_v44 }
  0x2a   :  { %3304 = vmatprep.subr.bf16.mxu1 %v3710_v47  ;;  %v2954_v47 = vcombine.high %v25_v44, %v25_v44  ;;  %v3829_v44 = vld [vmem:[%s4859_s1 + $0x468] sm:$0xff]  }
  0x2c   :  { %3283 = vmatpush3.bf16.msra.mxu0 %v3711_v48  ;;  %v2955_v48 = vcombine.low %v26_v45, %v26_v45 }
  0x2d   :  { %3305 = vmatpush3.bf16.msra.mxu1 %v3712_v49  ;;  %3284 = vmatprep.subr.bf16.mxu0 %v3713_v50  ;;  %v2956_v49 = vcombine.high %v26_v45, %v26_v45  ;;  %v3773_v50 = vld [vmem:[%s4859_s1 + $0x340] sm:$0xff]   ;;  %v3830_v45 = vld [vmem:[%s4859_s1 + $0x4e8] sm:$0xff]  }
  0x2e   :  { %3306 = vmatprep.subr.bf16.mxu1 %v3714_v51  ;;  %v3774_v51 = vld [vmem:[%s4859_s1 + $0x3c0] sm:$0xff]  }
  0x30   :  { %3285 = vmatpush3.bf16.msra.mxu0 %v3715_v52  ;;  %v3775_v52 = vld [vmem:[%s4859_s1 + $0x300] sm:$0xff]  }
  0x31   :  { %3307 = vmatpush3.bf16.msra.mxu1 %v3716_v53  ;;  %3286 = vmatprep.subr.bf16.mxu0 %v3717_v54  ;;  %v3776_v53 = vld [vmem:[%s4859_s1 + $0x380] sm:$0xff]   ;;  %v3777_v54 = vld [vmem:[%s4859_s1 + $0x348] sm:$0xff]  }
  0x32   :  { %3308 = vmatprep.subr.bf16.mxu1 %v3718_v55  ;;  %v3778_v55 = vld [vmem:[%s4859_s1 + $0x3c8] sm:$0xff]  }
  0x34   :  { %3287 = vmatpush3.bf16.msra.mxu0 %v3719_v56  ;;  %v3779_v56 = vld [vmem:[%s4859_s1 + $0x308] sm:$0xff]  }
  0x35   :  { %3309 = vmatpush3.bf16.msra.mxu1 %v3720_v57  ;;  %3288 = vmatprep.subr.bf16.mxu0 %v3721_v58  ;;  %v3780_v57 = vld [vmem:[%s4859_s1 + $0x388] sm:$0xff]   ;;  %v3781_v58 = vld [vmem:[%s4859_s1 + $0x350] sm:$0xff]  }
  0x36   :  { %3310 = vmatprep.subr.bf16.mxu1 %v3722_v59  ;;  %v3782_v59 = vld [vmem:[%s4859_s1 + $0x3d0] sm:$0xff]  }
  0x38   :  { %3289 = vmatpush3.bf16.msra.mxu0 %v3723_v60  ;;  %v3783_v60 = vld [vmem:[%s4859_s1 + $0x310] sm:$0xff]  }
  0x39   :  { %3311 = vmatpush3.bf16.msra.mxu1 %v3724_v61  ;;  %3290 = vmatprep.subr.bf16.mxu0 %v3725_v62  ;;  %v3784_v61 = vld [vmem:[%s4859_s1 + $0x390] sm:$0xff]   ;;  %v3785_v62 = vld [vmem:[%s4859_s1 + $0x358] sm:$0xff]  }
  0x3a   :  { %3312 = vmatprep.subr.bf16.mxu1 %v3726_v63  ;;  %v3786_v63 = vld [vmem:[%s4859_s1 + $0x3d8] sm:$0xff]  }
  0x3c   :  { %3291 = vmatpush3.bf16.msra.mxu0 %v3727_v0  ;;  %v3787_v0 = vld [vmem:[%s4859_s1 + $0x318] sm:$0xff]  }
  0x3d   :  { %3313 = vmatpush3.bf16.msra.mxu1 %v3728_v1  ;;  %3292 = vmatprep.subr.bf16.mxu0 %v3729_v2  ;;  %v3788_v1 = vld [vmem:[%s4859_s1 + $0x398] sm:$0xff]   ;;  %v3789_v2 = vld [vmem:[%s4859_s1 + $0x360] sm:$0xff]  }
  0x3e   :  { %3314 = vmatprep.subr.bf16.mxu1 %v3730_v3  ;;  %v3790_v3 = vld [vmem:[%s4859_s1 + $0x3e0] sm:$0xff]  }
  0x40   :  { %3293 = vmatpush3.bf16.msra.mxu0 %v3731_v4  ;;  %v3791_v4 = vld [vmem:[%s4859_s1 + $0x320] sm:$0xff]  }
  0x41   :  { %3315 = vmatpush3.bf16.msra.mxu1 %v3732_v5  ;;  %3322 = vmatprep.subr.bf16.mxu0 %v3737_v12  ;;  %v3792_v5 = vld [vmem:[%s4859_s1 + $0x3a0] sm:$0xff]   ;;  %v3799_v12 = vld [vmem:[%s4859_s1 + $0x330] sm:$0xff]  }
  0x42   :  { %3344 = vmatprep.subr.bf16.mxu1 %v3738_v13  ;;  %v3800_v13 = vld [vmem:[%s4859_s1 + $0x3b0] sm:$0xff]  }
  0x43   :  { %2317 = vmatmul.mubr.bf16.vlgmr.msra.gmra.mrb[4].mxu0 %v2949_v7  ;;  %v3794_v7 = vld [vmem:[%s4859_s1 + $0x3e8] sm:$0xff]  }
  0x44   :  { %2357 = vmatmul.mubr.bf16.vlgmr.msra.gmra.mrb[4].mxu1 %v2951_v10  ;;  %3323 = vmatpush3.bf16.msra.mxu0 %v3739_v14  ;;  %v3797_v10 = vld [vmem:[%s4859_s1 + $0x370] sm:$0xff]   ;;  %v3801_v14 = vld [vmem:[%s4859_s1 + $0x378] sm:$0xff]  }
  0x45   :  { %3345 = vmatpush3.bf16.msra.mxu1 %v3740_v15  ;;  %3324 = vmatprep.subr.bf16.mxu0 %v3741_v16  ;;  %v3802_v15 = vld [vmem:[%s4859_s1 + $0x3f8] sm:$0xff]  }
  0x46   :  { %3346 = vmatprep.subr.bf16.mxu1 %v3742_v17  ;;  %2396 = vmatprep.mubr.bf16.mxu0 %v2954_v47  ;;  %v3803_v16 = vld [vmem:[%s4859_s1 + $0x338] sm:$0xff]   ;;  %v3832_v47 = vld [vmem:[%s4859_s1 + $0x4a8] sm:$0xff]  }
  0x47   :  { %2436 = vmatprep.mubr.bf16.mxu1 %v2956_v49  ;;  %v3804_v17 = vld [vmem:[%s4859_s1 + $0x3b8] sm:$0xff]   ;;  %v3834_v49 = vld [vmem:[%s4859_s1 + $0x4f0] sm:$0xff]  }
  0x48   :  { %3325 = vmatpush3.bf16.msra.mxu0 %v3743_v18  ;;  %v27_v18 = vld [vmem:[%s4860_s0 + $0x30] sm:$0xff] }
  0x49   :  { %3347 = vmatpush3.bf16.msra.mxu1 %v3744_v19  ;;  %3326 = vmatprep.subr.bf16.mxu0 %v3745_v20  ;;  %v28_v19 = vld [vmem:[%s4860_s0 + $0x38] sm:$0xff]  ;;  %v2957_v20 = vcombine.low %v27_v18, %v27_v18 }
  0x4a   :  { %3348 = vmatprep.subr.bf16.mxu1 %v3746_v21  ;;  %v2958_v21 = vcombine.high %v27_v18, %v27_v18  ;;  %v3865_v18 = vld [vmem:[%s4859_s1 + $0x568] sm:$0xff]  }
  0x4c   :  { %3327 = vmatpush3.bf16.msra.mxu0 %v3747_v22  ;;  %v2959_v22 = vcombine.low %v28_v19, %v28_v19 }
  0x4d   :  { %3349 = vmatpush3.bf16.msra.mxu1 %v3748_v23  ;;  %3328 = vmatprep.subr.bf16.mxu0 %v3749_v24  ;;  %v3809_v23 = vld [vmem:[%s4859_s1 + $0x440] sm:$0xff]   ;;  %v2960_v24 = vcombine.high %v28_v19, %v28_v19  ;;  %v3866_v19 = vld [vmem:[%s4859_s1 + $0x5e8] sm:$0xff]  }
  0x4e   :  { %3350 = vmatprep.subr.bf16.mxu1 %v3750_v25  ;;  %v3810_v25 = vld [vmem:[%s4859_s1 + $0x4c0] sm:$0xff]  }
  0x50   :  { %3329 = vmatpush3.bf16.msra.mxu0 %v3751_v26  ;;  %v3811_v26 = vld [vmem:[%s4859_s1 + $0x400] sm:$0xff]  }
  0x51   :  { %3351 = vmatpush3.bf16.msra.mxu1 %v3752_v27  ;;  %3330 = vmatprep.subr.bf16.mxu0 %v3753_v28  ;;  %v3812_v27 = vld [vmem:[%s4859_s1 + $0x480] sm:$0xff]   ;;  %v3813_v28 = vld [vmem:[%s4859_s1 + $0x448] sm:$0xff]  }
  0x52   :  { %3352 = vmatprep.subr.bf16.mxu1 %v3754_v29  ;;  %v3814_v29 = vld [vmem:[%s4859_s1 + $0x4c8] sm:$0xff]  }
  0x54   :  { %3331 = vmatpush3.bf16.msra.mxu0 %v3755_v30  ;;  %v3815_v30 = vld [vmem:[%s4859_s1 + $0x408] sm:$0xff]  }
  0x55   :  { %3353 = vmatpush3.bf16.msra.mxu1 %v3756_v31  ;;  %3332 = vmatprep.subr.bf16.mxu0 %v3757_v32  ;;  %v3816_v31 = vld [vmem:[%s4859_s1 + $0x488] sm:$0xff]   ;;  %v3817_v32 = vld [vmem:[%s4859_s1 + $0x450] sm:$0xff]  }
  0x56   :  { %3354 = vmatprep.subr.bf16.mxu1 %v3758_v33  ;;  %v3818_v33 = vld [vmem:[%s4859_s1 + $0x4d0] sm:$0xff]  }
  0x58   :  { %3333 = vmatpush3.bf16.msra.mxu0 %v3759_v34  ;;  %v3819_v34 = vld [vmem:[%s4859_s1 + $0x410] sm:$0xff]  }
  0x59   :  { %3355 = vmatpush3.bf16.msra.mxu1 %v3760_v35  ;;  %3334 = vmatprep.subr.bf16.mxu0 %v3761_v36  ;;  %v3820_v35 = vld [vmem:[%s4859_s1 + $0x490] sm:$0xff]   ;;  %v3821_v36 = vld [vmem:[%s4859_s1 + $0x458] sm:$0xff]  }
  0x5a   :  { %3356 = vmatprep.subr.bf16.mxu1 %v3762_v37  ;;  %v3822_v37 = vld [vmem:[%s4859_s1 + $0x4d8] sm:$0xff]  }
  0x5c   :  { %3335 = vmatpush3.bf16.msra.mxu0 %v3763_v38  ;;  %v3823_v38 = vld [vmem:[%s4859_s1 + $0x418] sm:$0xff]  }
  0x5d   :  { %3357 = vmatpush3.bf16.msra.mxu1 %v3764_v39  ;;  %3336 = vmatprep.subr.bf16.mxu0 %v3765_v40  ;;  %v3824_v39 = vld [vmem:[%s4859_s1 + $0x498] sm:$0xff]   ;;  %v3825_v40 = vld [vmem:[%s4859_s1 + $0x460] sm:$0xff]  }
  0x5e   :  { %3358 = vmatprep.subr.bf16.mxu1 %v3766_v41  ;;  %v3826_v41 = vld [vmem:[%s4859_s1 + $0x4e0] sm:$0xff]  }
  0x60   :  { %3337 = vmatpush3.bf16.msra.mxu0 %v3767_v42  ;;  %v3827_v42 = vld [vmem:[%s4859_s1 + $0x420] sm:$0xff]  }
  0x61   :  { %3359 = vmatpush3.bf16.msra.mxu1 %v3768_v43  ;;  %3366 = vmatprep.subr.bf16.mxu0 %v3773_v50  ;;  %v3828_v43 = vld [vmem:[%s4859_s1 + $0x4a0] sm:$0xff]   ;;  %v3835_v50 = vld [vmem:[%s4859_s1 + $0x430] sm:$0xff]  }
  0x62   :  { %3388 = vmatprep.subr.bf16.mxu1 %v3774_v51  ;;  %v3836_v51 = vld [vmem:[%s4859_s1 + $0x4b0] sm:$0xff]  }
  0x63   :  { %2397 = vmatmul.mubr.bf16.vlgmr.msra.gmra.mrb[8].mxu0 %v2953_v46  ;;  %v3831_v46 = vld [vmem:[%s4859_s1 + $0x428] sm:$0xff]  }
  0x64   :  { %2437 = vmatmul.mubr.bf16.vlgmr.msra.gmra.mrb[8].mxu1 %v2955_v48  ;;  %3367 = vmatpush3.bf16.msra.mxu0 %v3775_v52  ;;  %v3833_v48 = vld [vmem:[%s4859_s1 + $0x470] sm:$0xff]   ;;  %v3837_v52 = vld [vmem:[%s4859_s1 + $0x478] sm:$0xff]  }
  0x65   :  { %3389 = vmatpush3.bf16.msra.mxu1 %v3776_v53  ;;  %3368 = vmatprep.subr.bf16.mxu0 %v3777_v54  ;;  %v3838_v53 = vld [vmem:[%s4859_s1 + $0x4f8] sm:$0xff]  }
  0x66   :  { %3390 = vmatprep.subr.bf16.mxu1 %v3778_v55  ;;  %2476 = vmatprep.mubr.bf16.mxu0 %v2958_v21  ;;  %v3839_v54 = vld [vmem:[%s4859_s1 + $0x438] sm:$0xff]   ;;  %v3868_v21 = vld [vmem:[%s4859_s1 + $0x5a8] sm:$0xff]  }
  0x67   :  { %2516 = vmatprep.mubr.bf16.mxu1 %v2960_v24  ;;  %v3840_v55 = vld [vmem:[%s4859_s1 + $0x4b8] sm:$0xff]   ;;  %v3871_v24 = vld [vmem:[%s4859_s1 + $0x530] sm:$0xff]  }
  0x68   :  { %3369 = vmatpush3.bf16.msra.mxu0 %v3779_v56  ;;  %v29_v56 = vld [vmem:[%s4860_s0 + $0x40] sm:$0xff] }
  0x69   :  { %3391 = vmatpush3.bf16.msra.mxu1 %v3780_v57  ;;  %3370 = vmatprep.subr.bf16.mxu0 %v3781_v58  ;;  %v2961_v57 = vcombine.low %v29_v56, %v29_v56  ;;  %v2962_v58 = vcombine.high %v29_v56, %v29_v56  ;;  %v3901_v56 = vld [vmem:[%s4859_s1 + $0x668] sm:$0xff]  }
  0x6a   :  { %3392 = vmatprep.subr.bf16.mxu1 %v3782_v59  ;;  %v30_v59 = vld [vmem:[%s4860_s0 + $0x48] sm:$0xff] }
  0x6c   :  { %3371 = vmatpush3.bf16.msra.mxu0 %v3783_v60  ;;  %v2963_v60 = vcombine.low %v30_v59, %v30_v59 }
  0x6d   :  { %3393 = vmatpush3.bf16.msra.mxu1 %v3784_v61  ;;  %3372 = vmatprep.subr.bf16.mxu0 %v3785_v62  ;;  %v2964_v61 = vcombine.high %v30_v59, %v30_v59  ;;  %v3845_v62 = vld [vmem:[%s4859_s1 + $0x540] sm:$0xff]   ;;  %v3904_v59 = vld [vmem:[%s4859_s1 + $0x6a8] sm:$0xff]  }
  0x6e   :  { %3394 = vmatprep.subr.bf16.mxu1 %v3786_v63  ;;  %v3846_v63 = vld [vmem:[%s4859_s1 + $0x5c0] sm:$0xff]  }
  0x70   :  { %3373 = vmatpush3.bf16.msra.mxu0 %v3787_v0  ;;  %v3847_v0 = vld [vmem:[%s4859_s1 + $0x500] sm:$0xff]  }
  0x71   :  { %3395 = vmatpush3.bf16.msra.mxu1 %v3788_v1  ;;  %3374 = vmatprep.subr.bf16.mxu0 %v3789_v2  ;;  %v3848_v1 = vld [vmem:[%s4859_s1 + $0x580] sm:$0xff]   ;;  %v3849_v2 = vld [vmem:[%s4859_s1 + $0x548] sm:$0xff]  }
  0x72   :  { %3396 = vmatprep.subr.bf16.mxu1 %v3790_v3  ;;  %v3850_v3 = vld [vmem:[%s4859_s1 + $0x5c8] sm:$0xff]  }
  0x74   :  { %3375 = vmatpush3.bf16.msra.mxu0 %v3791_v4  ;;  %v3851_v4 = vld [vmem:[%s4859_s1 + $0x508] sm:$0xff]  }
  0x75   :  { %3397 = vmatpush3.bf16.msra.mxu1 %v3792_v5  ;;  %3376 = vmatprep.subr.bf16.mxu0 %v3793_v6  ;;  %v3852_v5 = vld [vmem:[%s4859_s1 + $0x588] sm:$0xff]   ;;  %v3853_v6 = vld [vmem:[%s4859_s1 + $0x550] sm:$0xff]  }
  0x76   :  { %3398 = vmatprep.subr.bf16.mxu1 %v3794_v7  ;;  %v3854_v7 = vld [vmem:[%s4859_s1 + $0x5d0] sm:$0xff]  }
  0x78   :  { %3377 = vmatpush3.bf16.msra.mxu0 %v3795_v8  ;;  %v3855_v8 = vld [vmem:[%s4859_s1 + $0x510] sm:$0xff]  }
  0x79   :  { %3399 = vmatpush3.bf16.msra.mxu1 %v3796_v9  ;;  %3378 = vmatprep.subr.bf16.mxu0 %v3797_v10  ;;  %v3856_v9 = vld [vmem:[%s4859_s1 + $0x590] sm:$0xff]   ;;  %v3857_v10 = vld [vmem:[%s4859_s1 + $0x558] sm:$0xff]  }
  0x7a   :  { %3400 = vmatprep.subr.bf16.mxu1 %v3798_v11  ;;  %v3858_v11 = vld [vmem:[%s4859_s1 + $0x5d8] sm:$0xff]  }
  0x7c   :  { %3379 = vmatpush3.bf16.msra.mxu0 %v3799_v12  ;;  %v3859_v12 = vld [vmem:[%s4859_s1 + $0x518] sm:$0xff]  }
  0x7d   :  { %3401 = vmatpush3.bf16.msra.mxu1 %v3800_v13  ;;  %3380 = vmatprep.subr.bf16.mxu0 %v3801_v14  ;;  %v3860_v13 = vld [vmem:[%s4859_s1 + $0x598] sm:$0xff]   ;;  %v3861_v14 = vld [vmem:[%s4859_s1 + $0x560] sm:$0xff]  }
  0x7e   :  { %3402 = vmatprep.subr.bf16.mxu1 %v3802_v15  ;;  %v3862_v15 = vld [vmem:[%s4859_s1 + $0x5e0] sm:$0xff]  }
  0x80   :  { %3381 = vmatpush3.bf16.msra.mxu0 %v3803_v16  ;;  %v3863_v16 = vld [vmem:[%s4859_s1 + $0x520] sm:$0xff]  }
  0x81   :  { %3403 = vmatpush3.bf16.msra.mxu1 %v3804_v17  ;;  %3410 = vmatprep.subr.bf16.mxu0 %v3809_v23  ;;  %v3864_v17 = vld [vmem:[%s4859_s1 + $0x5a0] sm:$0xff]   ;;  %v3870_v23 = vld [vmem:[%s4859_s1 + $0x5f0] sm:$0xff]  }
  0x82   :  { %3432 = vmatprep.subr.bf16.mxu1 %v3810_v25  ;;  %v3872_v25 = vld [vmem:[%s4859_s1 + $0x5b0] sm:$0xff]  }
  0x83   :  { %2477 = vmatmul.mubr.bf16.vlgmr.msra.gmra.mrb[12].mxu0 %v2957_v20  ;;  %v3867_v20 = vld [vmem:[%s4859_s1 + $0x528] sm:$0xff]  }
  0x84   :  { %2517 = vmatmul.mubr.bf16.vlgmr.msra.gmra.mrb[12].mxu1 %v2959_v22  ;;  %3411 = vmatpush3.bf16.msra.mxu0 %v3811_v26  ;;  %v3869_v22 = vld [vmem:[%s4859_s1 + $0x570] sm:$0xff]   ;;  %v3873_v26 = vld [vmem:[%s4859_s1 + $0x578] sm:$0xff]  }
  0x85   :  { %3433 = vmatpush3.bf16.msra.mxu1 %v3812_v27  ;;  %3412 = vmatprep.subr.bf16.mxu0 %v3813_v28  ;;  %v3874_v27 = vld [vmem:[%s4859_s1 + $0x5f8] sm:$0xff]  }
  0x86   :  { %3434 = vmatprep.subr.bf16.mxu1 %v3814_v29  ;;  %2556 = vmatprep.mubr.bf16.mxu0 %v2962_v58  ;;  %v3875_v28 = vld [vmem:[%s4859_s1 + $0x538] sm:$0xff]   ;;  %v3903_v58 = vld [vmem:[%s4859_s1 + $0x628] sm:$0xff]  }
  0x87   :  { %2596 = vmatprep.mubr.bf16.mxu1 %v2964_v61  ;;  %v3876_v29 = vld [vmem:[%s4859_s1 + $0x5b8] sm:$0xff]   ;;  %v3906_v61 = vld [vmem:[%s4859_s1 + $0x6f0] sm:$0xff]  }
  0x88   :  { %3413 = vmatpush3.bf16.msra.mxu0 %v3815_v30  ;;  %v31_v30 = vld [vmem:[%s4860_s0 + $0x50] sm:$0xff] }
  0x89   :  { %3435 = vmatpush3.bf16.msra.mxu1 %v3816_v31  ;;  %3414 = vmatprep.subr.bf16.mxu0 %v3817_v32  ;;  %v32_v31 = vld [vmem:[%s4860_s0 + $0x58] sm:$0xff]  ;;  %v2965_v32 = vcombine.low %v31_v30, %v31_v30 }
  0x8a   :  { %3436 = vmatprep.subr.bf16.mxu1 %v3818_v33  ;;  %v2966_v33 = vcombine.high %v31_v30, %v31_v30  ;;  %v3936_v30 = vld [vmem:[%s4859_s1 + $0x7a0] sm:$0xff]  }
  0x8c   :  { %3415 = vmatpush3.bf16.msra.mxu0 %v3819_v34  ;;  %v2967_v34 = vcombine.low %v32_v31, %v32_v31 }
  0x8d   :  { %3437 = vmatpush3.bf16.msra.mxu1 %v3820_v35  ;;  %3416 = vmatprep.subr.bf16.mxu0 %v3821_v36  ;;  %v2968_v35 = vcombine.high %v32_v31, %v32_v31  ;;  %v3881_v36 = vld [vmem:[%s4859_s1 + $0x640] sm:$0xff]  }
  0x8e   :  { %3438 = vmatprep.subr.bf16.mxu1 %v3822_v37  ;;  %v3882_v37 = vld [vmem:[%s4859_s1 + $0x6c0] sm:$0xff]  }
  0x90   :  { %3417 = vmatpush3.bf16.msra.mxu0 %v3823_v38  ;;  %v3883_v38 = vld [vmem:[%s4859_s1 + $0x600] sm:$0xff]  }
  0x91   :  { %3439 = vmatpush3.bf16.msra.mxu1 %v3824_v39  ;;  %3418 = vmatprep.subr.bf16.mxu0 %v3825_v40  ;;  %v3884_v39 = vld [vmem:[%s4859_s1 + $0x680] sm:$0xff]   ;;  %v3885_v40 = vld [vmem:[%s4859_s1 + $0x648] sm:$0xff]  }
  0x92   :  { %3440 = vmatprep.subr.bf16.mxu1 %v3826_v41  ;;  %v3886_v41 = vld [vmem:[%s4859_s1 + $0x6c8] sm:$0xff]  }
  0x94   :  { %3419 = vmatpush3.bf16.msra.mxu0 %v3827_v42  ;;  %v3887_v42 = vld [vmem:[%s4859_s1 + $0x608] sm:$0xff]  }
  0x95   :  { %3441 = vmatpush3.bf16.msra.mxu1 %v3828_v43  ;;  %3420 = vmatprep.subr.bf16.mxu0 %v3829_v44  ;;  %v3888_v43 = vld [vmem:[%s4859_s1 + $0x688] sm:$0xff]   ;;  %v3889_v44 = vld [vmem:[%s4859_s1 + $0x650] sm:$0xff]  }
  0x96   :  { %3442 = vmatprep.subr.bf16.mxu1 %v3830_v45  ;;  %v3890_v45 = vld [vmem:[%s4859_s1 + $0x6d0] sm:$0xff]  }
  0x98   :  { %3421 = vmatpush3.bf16.msra.mxu0 %v3831_v46  ;;  %v3891_v46 = vld [vmem:[%s4859_s1 + $0x610] sm:$0xff]  }
  0x99   :  { %3443 = vmatpush3.bf16.msra.mxu1 %v3832_v47  ;;  %3422 = vmatprep.subr.bf16.mxu0 %v3833_v48  ;;  %v3892_v47 = vld [vmem:[%s4859_s1 + $0x690] sm:$0xff]   ;;  %v3893_v48 = vld [vmem:[%s4859_s1 + $0x658] sm:$0xff]  }
  0x9a   :  { %3444 = vmatprep.subr.bf16.mxu1 %v3834_v49  ;;  %v3894_v49 = vld [vmem:[%s4859_s1 + $0x6d8] sm:$0xff]  }
  0x9c   :  { %3423 = vmatpush3.bf16.msra.mxu0 %v3835_v50  ;;  %v3895_v50 = vld [vmem:[%s4859_s1 + $0x618] sm:$0xff]  }
  0x9d   :  { %3445 = vmatpush3.bf16.msra.mxu1 %v3836_v51  ;;  %3424 = vmatprep.subr.bf16.mxu0 %v3837_v52  ;;  %v3896_v51 = vld [vmem:[%s4859_s1 + $0x698] sm:$0xff]   ;;  %v3897_v52 = vld [vmem:[%s4859_s1 + $0x660] sm:$0xff]  }
  0x9e   :  { %3446 = vmatprep.subr.bf16.mxu1 %v3838_v53  ;;  %v3898_v53 = vld [vmem:[%s4859_s1 + $0x6e0] sm:$0xff]  }
  0xa0   :  { %3425 = vmatpush3.bf16.msra.mxu0 %v3839_v54  ;;  %v3899_v54 = vld [vmem:[%s4859_s1 + $0x620] sm:$0xff]  }
  0xa1   :  { %3447 = vmatpush3.bf16.msra.mxu1 %v3840_v55  ;;  %3454 = vmatprep.subr.bf16.mxu0 %v3845_v62  ;;  %v3900_v55 = vld [vmem:[%s4859_s1 + $0x6a0] sm:$0xff]   ;;  %v3907_v62 = vld [vmem:[%s4859_s1 + $0x630] sm:$0xff]  }
  0xa2   :  { %3476 = vmatprep.subr.bf16.mxu1 %v3846_v63  ;;  %v3908_v63 = vld [vmem:[%s4859_s1 + $0x6b0] sm:$0xff]  }
  0xa3   :  { %2557 = vmatmul.mubr.bf16.vlgmr.msra.gmra.mrb[16].mxu0 %v2961_v57  ;;  %v3902_v57 = vld [vmem:[%s4859_s1 + $0x6e8] sm:$0xff]  }
  0xa4   :  { %2597 = vmatmul.mubr.bf16.vlgmr.msra.gmra.mrb[16].mxu1 %v2963_v60  ;;  %3455 = vmatpush3.bf16.msra.mxu0 %v3847_v0  ;;  %v3905_v60 = vld [vmem:[%s4859_s1 + $0x670] sm:$0xff]   ;;  %v3909_v0 = vld [vmem:[%s4859_s1 + $0x678] sm:$0xff]  }
  0xa5   :  { %3477 = vmatpush3.bf16.msra.mxu1 %v3848_v1  ;;  %3456 = vmatprep.subr.bf16.mxu0 %v3849_v2  ;;  %v3910_v1 = vld [vmem:[%s4859_s1 + $0x6f8] sm:$0xff]  }
  0xa6   :  { %3478 = vmatprep.subr.bf16.mxu1 %v3850_v3  ;;  %2636 = vmatprep.mubr.bf16.mxu0 %v2966_v33  ;;  %v3911_v2 = vld [vmem:[%s4859_s1 + $0x638] sm:$0xff]  }
  0xa7   :  { %2676 = vmatprep.mubr.bf16.mxu1 %v2968_v35  ;;  %v3912_v3 = vld [vmem:[%s4859_s1 + $0x6b8] sm:$0xff]  }
  0xa8   :  { %3457 = vmatpush3.bf16.msra.mxu0 %v3851_v4  ;;  %v33_v4 = vld [vmem:[%s4860_s0 + $0x60] sm:$0xff] }
  0xa9   :  { %3479 = vmatpush3.bf16.msra.mxu1 %v3852_v5  ;;  %3458 = vmatprep.subr.bf16.mxu0 %v3853_v6  ;;  %v34_v5 = vld [vmem:[%s4860_s0 + $0x68] sm:$0xff]  ;;  %v2969_v6 = vcombine.low %v33_v4, %v33_v4 }
  0xaa   :  { %3480 = vmatprep.subr.bf16.mxu1 %v3854_v7  ;;  %v2970_v7 = vcombine.high %v33_v4, %v33_v4 }
  0xac   :  { %3459 = vmatpush3.bf16.msra.mxu0 %v3855_v8  ;;  %v2971_v8 = vcombine.low %v34_v5, %v34_v5 }
  0xad   :  { %3481 = vmatpush3.bf16.msra.mxu1 %v3856_v9  ;;  %3460 = vmatprep.subr.bf16.mxu0 %v3857_v10  ;;  %v3917_v9 = vld [vmem:[%s4859_s1 + $0x740] sm:$0xff]   ;;  %v2972_v10 = vcombine.high %v34_v5, %v34_v5 }
  0xae   :  { %3482 = vmatprep.subr.bf16.mxu1 %v3858_v11  ;;  %v3918_v11 = vld [vmem:[%s4859_s1 + $0x7c0] sm:$0xff]  }
  0xb0   :  { %3461 = vmatpush3.bf16.msra.mxu0 %v3859_v12  ;;  %v3919_v12 = vld [vmem:[%s4859_s1 + $0x700] sm:$0xff]  }
  0xb1   :  { %3483 = vmatpush3.bf16.msra.mxu1 %v3860_v13  ;;  %3462 = vmatprep.subr.bf16.mxu0 %v3861_v14  ;;  %v3920_v13 = vld [vmem:[%s4859_s1 + $0x780] sm:$0xff]   ;;  %v3921_v14 = vld [vmem:[%s4859_s1 + $0x748] sm:$0xff]  }
  0xb2   :  { %3484 = vmatprep.subr.bf16.mxu1 %v3862_v15  ;;  %v3922_v15 = vld [vmem:[%s4859_s1 + $0x7c8] sm:$0xff]  }
  0xb4   :  { %3463 = vmatpush3.bf16.msra.mxu0 %v3863_v16  ;;  %v3923_v16 = vld [vmem:[%s4859_s1 + $0x708] sm:$0xff]  }
  0xb5   :  { %3485 = vmatpush3.bf16.msra.mxu1 %v3864_v17  ;;  %3464 = vmatprep.subr.bf16.mxu0 %v3865_v18  ;;  %v3924_v17 = vld [vmem:[%s4859_s1 + $0x788] sm:$0xff]   ;;  %v3925_v18 = vld [vmem:[%s4859_s1 + $0x750] sm:$0xff]  }
  0xb6   :  { %3486 = vmatprep.subr.bf16.mxu1 %v3866_v19  ;;  %v3926_v19 = vld [vmem:[%s4859_s1 + $0x7d0] sm:$0xff]  }
  0xb8   :  { %3465 = vmatpush3.bf16.msra.mxu0 %v3867_v20  ;;  %v3927_v20 = vld [vmem:[%s4859_s1 + $0x710] sm:$0xff]  }
  0xb9   :  { %3487 = vmatpush3.bf16.msra.mxu1 %v3868_v21  ;;  %3466 = vmatprep.subr.bf16.mxu0 %v3869_v22  ;;  %v3928_v21 = vld [vmem:[%s4859_s1 + $0x790] sm:$0xff]   ;;  %v3929_v22 = vld [vmem:[%s4859_s1 + $0x758] sm:$0xff]  }
  0xba   :  { %3488 = vmatprep.subr.bf16.mxu1 %v3870_v23  ;;  %v3930_v23 = vld [vmem:[%s4859_s1 + $0x7d8] sm:$0xff]  }
  0xbc   :  { %3467 = vmatpush3.bf16.msra.mxu0 %v3871_v24  ;;  %v3931_v24 = vld [vmem:[%s4859_s1 + $0x718] sm:$0xff]  }
  0xbd   :  { %3489 = vmatpush3.bf16.msra.mxu1 %v3872_v25  ;;  %3468 = vmatprep.subr.bf16.mxu0 %v3873_v26  ;;  %v3932_v25 = vld [vmem:[%s4859_s1 + $0x798] sm:$0xff]   ;;  %v3933_v26 = vld [vmem:[%s4859_s1 + $0x760] sm:$0xff]  }
  0xbe   :  { %3490 = vmatprep.subr.bf16.mxu1 %v3874_v27  ;;  %v3934_v27 = vld [vmem:[%s4859_s1 + $0x7e0] sm:$0xff]  }
  0xc0   :  { %3469 = vmatpush3.bf16.msra.mxu0 %v3875_v28  ;;  %v3935_v28 = vld [vmem:[%s4859_s1 + $0x720] sm:$0xff]  }
  0xc1   :  { %3491 = vmatpush3.bf16.msra.mxu1 %v3876_v29  ;;  %3498 = vmatprep.subr.bf16.mxu0 %v3881_v36 }
  0xc2   :  { %3520 = vmatprep.subr.bf16.mxu1 %v3882_v37  ;;  %v3937_v37 = vld [vmem:[%s4859_s1 + $0x768] sm:$0xff]  }
  0xc3   :  { %2637 = vmatmul.mubr.bf16.vlgmr.msra.gmra.mrb[20].mxu0 %v2965_v32  ;;  %v2944_v32 = vld [vmem:[%s4861_s2] ss:$0 sm:$0xff] }
  0xc4   :  { %2677 = vmatmul.mubr.bf16.vlgmr.msra.gmra.mrb[20].mxu1 %v2967_v34  ;;  %3499 = vmatpush3.bf16.msra.mxu0 %v3883_v38 }
  0xc5   :  { %3521 = vmatpush3.bf16.msra.mxu1 %v3884_v39  ;;  %3500 = vmatprep.subr.bf16.mxu0 %v3885_v40  ;;  %v3938_v39 = vld [vmem:[%s4859_s1 + $0x7e8] sm:$0xff]  }
  0xc6   :  { %3522 = vmatprep.subr.bf16.mxu1 %v3886_v41  ;;  %2716 = vmatprep.mubr.bf16.mxu0 %v2970_v7 }
  0xc7   :  { %2756 = vmatprep.mubr.bf16.mxu1 %v2972_v10 }
  0xc8   :  { %3501 = vmatpush3.bf16.msra.mxu0 %v3887_v42  ;;  %v3939_v42 = vld [vmem:[%s4859_s1 + $0x728] sm:$0xff]  }
  0xc9   :  { %3523 = vmatpush3.bf16.msra.mxu1 %v3888_v43  ;;  %3502 = vmatprep.subr.bf16.mxu0 %v3889_v44  ;;  %v3940_v44 = vld [vmem:[%s4859_s1 + $0x7a8] sm:$0xff]  }
  0xca   :  { %3524 = vmatprep.subr.bf16.mxu1 %v3890_v45 }
  0xcc   :  { %3503 = vmatpush3.bf16.msra.mxu0 %v3891_v46 }
  0xcd   :  { %3525 = vmatpush3.bf16.msra.mxu1 %v3892_v47  ;;  %3504 = vmatprep.subr.bf16.mxu0 %v3893_v48  ;;  %v3941_v47 = vld [vmem:[%s4859_s1 + $0x770] sm:$0xff]  }
  0xce   :  { %3526 = vmatprep.subr.bf16.mxu1 %v3894_v49  ;;  %v3942_v48 = vld [vmem:[%s4859_s1 + $0x7f0] sm:$0xff]  }
  0xcf   :  { %v3943_v49 = vld [vmem:[%s4859_s1 + $0x730] sm:$0xff]  }
  0xd0   :  { %3505 = vmatpush3.bf16.msra.mxu0 %v3895_v50  ;;  %v3944_v50 = vld [vmem:[%s4859_s1 + $0x7b0] sm:$0xff]  }
  0xd1   :  { %3527 = vmatpush3.bf16.msra.mxu1 %v3896_v51  ;;  %3506 = vmatprep.subr.bf16.mxu0 %v3897_v52  ;;  %v3945_v51 = vld [vmem:[%s4859_s1 + $0x778] sm:$0xff]  }
  0xd2   :  { %3528 = vmatprep.subr.bf16.mxu1 %v3898_v53  ;;  %v3946_v52 = vld [vmem:[%s4859_s1 + $0x7f8] sm:$0xff]  }
  0xd3   :  { %v3947_v53 = vld [vmem:[%s4859_s1 + $0x738] sm:$0xff]  }
  0xd4   :  { %3507 = vmatpush3.bf16.msra.mxu0 %v3899_v54  ;;  %v3948_v54 = vld [vmem:[%s4859_s1 + $0x7b8] sm:$0xff]  }
  0xd5   :  { %3529 = vmatpush3.bf16.msra.mxu1 %v3900_v55  ;;  %3508 = vmatprep.subr.bf16.mxu0 %v3901_v56  ;;  %v35_v55 = vld [vmem:[%s4860_s0 + $0x70] sm:$0xff]  ;;  %v36_v56 = vld [vmem:[%s4860_s0 + $0x78] sm:$0xff] }
  0xd6   :  { %3530 = vmatprep.subr.bf16.mxu1 %v3902_v57  ;;  %v2973_v57 = vcombine.low %v35_v55, %v35_v55 }
  0xd8   :  { %3509 = vmatpush3.bf16.msra.mxu0 %v3903_v58  ;;  %v2974_v58 = vcombine.high %v35_v55, %v35_v55  ;;  %v2859_v55 = vld [vmem:[%s4862_s3 + $0x70] sm:$0xff] }
  0xd9   :  { %3531 = vmatpush3.bf16.msra.mxu1 %v3904_v59  ;;  %3510 = vmatprep.subr.bf16.mxu0 %v3905_v60  ;;  %v2975_v59 = vcombine.low %v36_v56, %v36_v56  ;;  %v2976_v60 = vcombine.high %v36_v56, %v36_v56  ;;  %v2860_v56 = vld [vmem:[%s4862_s3 + $0x78] sm:$0xff] }
  0xda   :  { %3532 = vmatprep.subr.bf16.mxu1 %v3906_v61 }
  0xdc   :  { %3511 = vmatpush3.bf16.msra.mxu0 %v3907_v62 }
  0xdd   :  { %3533 = vmatpush3.bf16.msra.mxu1 %v3908_v63  ;;  %3512 = vmatprep.subr.bf16.mxu0 %v3909_v0 }
  0xde   :  { %3534 = vmatprep.subr.bf16.mxu1 %v3910_v1 }
  0xe0   :  { %3513 = vmatpush3.bf16.msra.mxu0 %v3911_v2 }
  0xe1   :  { %3535 = vmatpush3.bf16.msra.mxu1 %v3912_v3  ;;  %3542 = vmatprep.subr.bf16.mxu0 %v3917_v9 }
  0xe2   :  { %3564 = vmatprep.subr.bf16.mxu1 %v3918_v11 }
  0xe3   :  { %2717 = vmatmul.mubr.bf16.vlgmr.msra.gmra.mrb[24].mxu0 %v2969_v6 }
  0xe4   :  { %2757 = vmatmul.mubr.bf16.vlgmr.msra.gmra.mrb[24].mxu1 %v2971_v8  ;;  %3543 = vmatpush3.bf16.msra.mxu0 %v3919_v12 }
  0xe5   :  { %3565 = vmatpush3.bf16.msra.mxu1 %v3920_v13  ;;  %3544 = vmatprep.subr.bf16.mxu0 %v3921_v14 }
  0xe6   :  { %3566 = vmatprep.subr.bf16.mxu1 %v3922_v15  ;;  %2796 = vmatprep.mubr.bf16.mxu0 %v2974_v58  ;;  %v3955_v58 = vmov 0.0  }
  0xe7   :  { %2836 = vmatprep.mubr.bf16.mxu1 %v2976_v60 }
  0xe8   :  { %3545 = vmatpush3.bf16.msra.mxu0 %v3923_v16 }
  0xe9   :  { %3567 = vmatpush3.bf16.msra.mxu1 %v3924_v17  ;;  %3546 = vmatprep.subr.bf16.mxu0 %v3925_v18 }
  0xea   :  { %3568 = vmatprep.subr.bf16.mxu1 %v3926_v19 }
  0xec   :  { %3547 = vmatpush3.bf16.msra.mxu0 %v3927_v20 }
  0xed   :  { %3569 = vmatpush3.bf16.msra.mxu1 %v3928_v21  ;;  %3548 = vmatprep.subr.bf16.mxu0 %v3929_v22  ;;  %v3953_v21 = vmov 0.0|0.0   ;;  %v2845_v22 = vld [vmem:[%s4862_s3] sm:$0xff] }
  0xee   :  { %3570 = vmatprep.subr.bf16.mxu1 %v3930_v23  ;;  %v2846_v23 = vld [vmem:[%s4862_s3 + $0x8] sm:$0xff] }
  0xf0   :  { %3549 = vmatpush3.bf16.msra.mxu0 %v3931_v24  ;;  %v2847_v24 = vld [vmem:[%s4862_s3 + $0x10] sm:$0xff] }
  0xf1   :  { %3571 = vmatpush3.bf16.msra.mxu1 %v3932_v25  ;;  %3550 = vmatprep.subr.bf16.mxu0 %v3933_v26  ;;  %v3639_v25 = vpack.c.bf16 %v2846_v23, %v2845_v22  ;;  %v2848_v26 = vld [vmem:[%s4862_s3 + $0x18] sm:$0xff] }
  0xf2   :  { %3572 = vmatprep.subr.bf16.mxu1 %v3934_v27  ;;  %v3642_v27 = vpack.c.bf16 %v2848_v26, %v2847_v24 }
  0xf4   :  { %3551 = vmatpush3.bf16.msra.mxu0 %v3935_v28  ;;  %v2849_v28 = vld [vmem:[%s4862_s3 + $0x20] sm:$0xff] }
  0xf5   :  { %3573 = vmatpush3.bf16.msra.mxu1 %v3936_v30  ;;  %3552 = vmatprep.subr.bf16.mxu0 %v3937_v37  ;;  %v2855_v37 = vld [vmem:[%s4862_s3 + $0x50] sm:$0xff] }
  0xf6   :  { %v3250_v29 = vpop.f32.mrb[0].mxu0  ;;  %3574 = vmatprep.subr.bf16.mxu1 %v3938_v39 }
  0xf7   :  { %v3272_v31 = vpop.f32.mrb[0].mxu1  ;;  %v3251_v33 = vpop.f32.mrb[1].mxu0 }
  0xf8   :  { %v3273_v34 = vpop.f32.mrb[1].mxu1  ;;  %v3252_v35 = vadd.f32 %v3251_v33, %v3250_v29  ;;  %v3253_v38 = vpop.f32.mrb[2].mxu0  ;;  %3553 = vmatpush3.bf16.msra.mxu0 %v3939_v42  ;;  %v2850_v29 = vld [vmem:[%s4862_s3 + $0x28] sm:$0xff] }
  0xf9   :  { %v3274_v36 = vadd.f32 %v3273_v34, %v3272_v31  ;;  %v3275_v40 = vpop.f32.mrb[2].mxu1  ;;  %v3254_v43 = vpop.f32.mrb[3].mxu0  ;;  %3575 = vmatpush3.bf16.msra.mxu1 %v3940_v44  ;;  %3554 = vmatprep.subr.bf16.mxu0 %v3941_v47  ;;  %v3645_v30 = vpack.c.bf16 %v2850_v29, %v2849_v28  ;;  %v2851_v31 = vld [vmem:[%s4862_s3 + $0x30] sm:$0xff]  ;;  %v2853_v34 = vld [vmem:[%s4862_s3 + $0x40] sm:$0xff]  ;;  %v2856_v38 = vld [vmem:[%s4862_s3 + $0x58] sm:$0xff] }
  0xfa   :  { %v2239_v41 = vadd.f32 %v3252_v35, %v2944_v32  ;;  %v3276_v45 = vpop.f32.mrb[3].mxu1  ;;  %3576 = vmatprep.subr.bf16.mxu1 %v3942_v48  ;;  %v2852_v32 = vld [vmem:[%s4862_s3 + $0x38] sm:$0xff]  ;;  %v2854_v35 = vld [vmem:[%s4862_s3 + $0x48] sm:$0xff]  ;;  %v3654_v39 = vpack.c.bf16 %v2856_v38, %v2855_v37 }
  0xfb   :  { %v3648_v33 = vpack.c.bf16 %v2852_v32, %v2851_v31 }
  0xfc   :  { %v2279_v46 = vadd.f32 %v3274_v36, %v2239_v41  ;;  %3555 = vmatpush3.bf16.msra.mxu0 %v3943_v49  ;;  %v3651_v36 = vpack.c.bf16 %v2854_v35, %v2853_v34 }
  0xfd   :  { %3577 = vmatpush3.bf16.msra.mxu1 %v3944_v50  ;;  %3556 = vmatprep.subr.bf16.mxu0 %v3945_v51  ;;  %v2857_v51 = vld [vmem:[%s4862_s3 + $0x60] sm:$0xff] }
  0xfe   :  { %3578 = vmatprep.subr.bf16.mxu1 %v3946_v52  ;;  %v2858_v52 = vld [vmem:[%s4862_s3 + $0x68] sm:$0xff] }
 0x100   :  { %3557 = vmatpush3.bf16.msra.mxu0 %v3947_v53  ;;  %v3657_v53 = vpack.c.bf16 %v2858_v52, %v2857_v51 }
 0x101   :  { %3579 = vmatpush3.bf16.msra.mxu1 %v3948_v54  ;;  %3638 = vmatprep.subr.bf16.mxu0 %v3953_v21 }
 0x103   :  { %2797 = vmatmul.mubr.bf16.vlgmr.msra.gmra.mrb[28].mxu0 %v2973_v57  ;;  %v3660_v57 = vpack.c.bf16 %v2860_v56, %v2859_v55 }
 0x104   :  { %2837 = vmatmul.mubr.bf16.vlgmr.msra.gmra.mrb[28].mxu1 %v2975_v59  ;;  %3640 = vmatpush3.bf16.msra.mxu0 %v3639_v25 }
 0x105   :  { %3641 = vmatprep.subr.bf16.mxu0 %v3953_v21  ;;  %3635 = vmatprep.mubr.msk.f32.mxu0 %vm3954_vm0, %v3955_v58 }
 0x108   :  { %3643 = vmatpush3.bf16.msra.mxu0 %v3642_v27 }
 0x109   :  { %3644 = vmatprep.subr.bf16.mxu0 %v3953_v21 }
 0x10c   :  { %3646 = vmatpush3.bf16.msra.mxu0 %v3645_v30 }
 0x10d   :  { %3647 = vmatprep.subr.bf16.mxu0 %v3953_v21 }
 0x110   :  { %3649 = vmatpush3.bf16.msra.mxu0 %v3648_v33 }
 0x111   :  { %3650 = vmatprep.subr.bf16.mxu0 %v3953_v21 }
 0x114   :  { %3652 = vmatpush3.bf16.msra.mxu0 %v3651_v36 }
 0x115   :  { %3653 = vmatprep.subr.bf16.mxu0 %v3953_v21 }
 0x116   :  { %v3294_v61 = vpop.f32.mrb[4].mxu0 }
 0x117   :  { %v3316_v62 = vpop.f32.mrb[4].mxu1  ;;  %v3295_v63 = vpop.f32.mrb[5].mxu0 }
 0x118   :  { %v3317_v0 = vpop.f32.mrb[5].mxu1  ;;  %v3296_v1 = vadd.f32 %v3295_v63, %v3294_v61  ;;  %v3297_v3 = vpop.f32.mrb[6].mxu0  ;;  %3655 = vmatpush3.bf16.msra.mxu0 %v3654_v39 }
 0x119   :  { %v3318_v2 = vadd.f32 %v3317_v0, %v3316_v62  ;;  %v3319_v4 = vpop.f32.mrb[6].mxu1  ;;  %v3298_v5 = vpop.f32.mrb[7].mxu0  ;;  %3656 = vmatprep.subr.bf16.mxu0 %v3953_v21 }
 0x11a   :  { %v3320_v6 = vpop.f32.mrb[7].mxu1  ;;  %v2319_v7 = vadd.f32 %v3296_v1, %v2279_v46 }
 0x11c   :  { %v2359_v8 = vadd.f32 %v3318_v2, %v2319_v7  ;;  %3658 = vmatpush3.bf16.msra.mxu0 %v3657_v53 }
 0x11d   :  { %3659 = vmatprep.subr.bf16.mxu0 %v3953_v21 }
 0x120   :  { %3661 = vmatpush3.bf16.msra.mxu0 %v3660_v57 }
 0x136   :  { %v3338_v9 = vpop.f32.mrb[8].mxu0 }
 0x137   :  { %v3360_v10 = vpop.f32.mrb[8].mxu1  ;;  %v3339_v11 = vpop.f32.mrb[9].mxu0 }
 0x138   :  { %v3340_v12 = vadd.f32 %v3339_v11, %v3338_v9  ;;  %v3361_v13 = vpop.f32.mrb[9].mxu1  ;;  %v3341_v14 = vpop.f32.mrb[10].mxu0 }
 0x139   :  { %v3362_v15 = vadd.f32 %v3361_v13, %v3360_v10  ;;  %v3363_v16 = vpop.f32.mrb[10].mxu1  ;;  %v3342_v17 = vpop.f32.mrb[11].mxu0 }
 0x13a   :  { %v2399_v18 = vadd.f32 %v3340_v12, %v2359_v8  ;;  %v3364_v19 = vpop.f32.mrb[11].mxu1 }
 0x13c   :  { %v2439_v20 = vadd.f32 %v3362_v15, %v2399_v18 }
 0x156   :  { %v3382_v40 = vpop.f32.mrb[12].mxu0 }
 0x157   :  { %v3404_v41 = vpop.f32.mrb[12].mxu1  ;;  %v3383_v42 = vpop.f32.mrb[13].mxu0 }
 0x158   :  { %v3384_v43 = vadd.f32 %v3383_v42, %v3382_v40  ;;  %v3405_v44 = vpop.f32.mrb[13].mxu1  ;;  %v3385_v45 = vpop.f32.mrb[14].mxu0 }
 0x159   :  { %v3406_v46 = vadd.f32 %v3405_v44, %v3404_v41  ;;  %v3407_v47 = vpop.f32.mrb[14].mxu1  ;;  %v3386_v48 = vpop.f32.mrb[15].mxu0  ;;  %v3233_v44 = vld [vmem:[%s4863_s4] ss:$0 sm:$0xff] }
 0x15a   :  { %v2479_v49 = vadd.f32 %v3384_v43, %v2439_v20  ;;  %v3408_v50 = vpop.f32.mrb[15].mxu1 }
 0x15c   :  { %v2519_v54 = vadd.f32 %v3406_v46, %v2479_v49 }
 0x176   :  { %v3426_v59 = vpop.f32.mrb[16].mxu0 }
 0x177   :  { %v3448_v60 = vpop.f32.mrb[16].mxu1  ;;  %v3427_v61 = vpop.f32.mrb[17].mxu0 }
 0x178   :  { %v3449_v62 = vpop.f32.mrb[17].mxu1  ;;  %v3428_v63 = vadd.f32 %v3427_v61, %v3426_v59  ;;  %v3429_v1 = vpop.f32.mrb[18].mxu0 }
 0x179   :  { %v3450_v0 = vadd.f32 %v3449_v62, %v3448_v60  ;;  %v3451_v2 = vpop.f32.mrb[18].mxu1  ;;  %v3430_v3 = vpop.f32.mrb[19].mxu0 }
 0x17a   :  { %v3452_v4 = vpop.f32.mrb[19].mxu1  ;;  %v2559_v5 = vadd.f32 %v3428_v63, %v2519_v54 }
 0x17c   :  { %v2599_v6 = vadd.f32 %v3450_v0, %v2559_v5 }
 0x196   :  { %v3470_v7 = vpop.f32.mrb[20].mxu0 }
 0x197   :  { %v3492_v8 = vpop.f32.mrb[20].mxu1  ;;  %v3471_v9 = vpop.f32.mrb[21].mxu0 }
 0x198   :  { %v3472_v10 = vadd.f32 %v3471_v9, %v3470_v7  ;;  %v3493_v11 = vpop.f32.mrb[21].mxu1  ;;  %v3473_v12 = vpop.f32.mrb[22].mxu0 }
 0x199   :  { %v3494_v13 = vadd.f32 %v3493_v11, %v3492_v8  ;;  %v3495_v14 = vpop.f32.mrb[22].mxu1  ;;  %v3474_v15 = vpop.f32.mrb[23].mxu0 }
 0x19a   :  { %v2639_v16 = vadd.f32 %v3472_v10, %v2599_v6  ;;  %v3496_v17 = vpop.f32.mrb[23].mxu1 }
 0x19c   :  { %v2679_v18 = vadd.f32 %v3494_v13, %v2639_v16 }
 0x1b6   :  { %v3514_v19 = vpop.f32.mrb[24].mxu0 }
 0x1b7   :  { %v3536_v20 = vpop.f32.mrb[24].mxu1  ;;  %v3515_v21 = vpop.f32.mrb[25].mxu0 }
 0x1b8   :  { %v3516_v22 = vadd.f32 %v3515_v21, %v3514_v19  ;;  %v3537_v23 = vpop.f32.mrb[25].mxu1  ;;  %v3517_v24 = vpop.f32.mrb[26].mxu0 }
 0x1b9   :  { %v3538_v25 = vadd.f32 %v3537_v23, %v3536_v20  ;;  %v3539_v26 = vpop.f32.mrb[26].mxu1  ;;  %v3518_v27 = vpop.f32.mrb[27].mxu0 }
 0x1ba   :  { %v2719_v28 = vadd.f32 %v3516_v22, %v2679_v18  ;;  %v3540_v29 = vpop.f32.mrb[27].mxu1 }
 0x1bc   :  { %v2759_v30 = vadd.f32 %v3538_v25, %v2719_v28 }
 0x1d6   :  { %v3558_v31 = vpop.f32.mrb[28].mxu0 }
 0x1d7   :  { %v3580_v32 = vpop.f32.mrb[28].mxu1  ;;  %v3559_v33 = vpop.f32.mrb[29].mxu0 }
 0x1d8   :  { %v3560_v34 = vadd.f32 %v3559_v33, %v3558_v31  ;;  %v3581_v35 = vpop.f32.mrb[29].mxu1  ;;  %v3561_v36 = vpop.f32.mrb[30].mxu0 }
 0x1d9   :  { %v3582_v37 = vadd.f32 %v3581_v35, %v3580_v32  ;;  %v3583_v38 = vpop.f32.mrb[30].mxu1  ;;  %v3562_v39 = vpop.f32.mrb[31].mxu0 }
 0x1da   :  { %v2799_v40 = vadd.f32 %v3560_v34, %v2759_v30  ;;  %v3584_v41 = vpop.f32.mrb[31].mxu1 }
 0x1dc   :  { %v2839_v42 = vadd.f32 %v3582_v37, %v2799_v40 }
 0x1de   :  { %v2844_v43 = vmax.f32 %v2839_v42, 0.0 }
 0x1e0   :  { %3636 = vmatmul.mubr.f32.vlgmr.msra.gmra.mrb[32].mxu0 %v2844_v43 }
 0x2b3   :  { %v2934_v45 = vpop.f32.mrb[32].mxu0 }
 0x2b4   :  { %v2935_v46 = vadd.f32 %v3233_v44, %v2934_v45  ;;  %v3637_v47 = vpop.f32.mrb[33].mxu0 }
 0x2b6   :  { %2939 = vst.msk [vmem:[%s4864_s5] sm:$0xff] %vm2938_vm1, %v2935_v46 }

</bundles_post_ra>
